<compile_context>
chip_gen: v7x
topology: tpu7x:2x2x1
jax: 0.10.0
libtpu: 0.0.40
codegen_flags: <defaults>
</compile_context>

<pallas_src>
import math

import jax
import jax.numpy as jnp
from jax.experimental import pallas as pl
from jax.experimental.pallas import tpu as pltpu

# ----------------------------- tiny config ----------------------------------
VOCAB = 64              # synthetic GPT-2 vocab
VOCAB_PAD = 128         # lane-dense LM head / logits width
D = 32                  # gpt_embedding_size (n_embd)
NH = 2                  # attention heads
HD = D // NH            # head dim
NLAYER = 2              # transformer layers
PREFIX_SIZE = 16        # CLIP feature size
PREFIX_LEN = 8          # <= 10  -> clip_project is the MLP variant
T = 8                   # number of text tokens
B = 2                   # batch
S = PREFIX_LEN + T      # total sequence length fed to GPT-2
MAX_POS = 32            # synthetic n_positions
EPS = 1e-5
CLIP_HID = D * PREFIX_LEN // 2     # 128
CLIP_OUT = D * PREFIX_LEN          # 256

_VMEM = pl.BlockSpec(memory_space=pltpu.MemorySpace.VMEM)


# ----------------------------- in-kernel helpers -----------------------------
def _layernorm(x, g, b):
    mu = jnp.mean(x, axis=-1, keepdims=True)
    var = jnp.mean((x - mu) ** 2, axis=-1, keepdims=True)
    return (x - mu) * jax.lax.rsqrt(var + EPS) * g + b


def _gelu_new(x):
    # GPT-2 "gelu_new" (tanh approximation)
    return 0.5 * x * (1.0 + jnp.tanh(0.7978845608028654 * (x + 0.044715 * x * x * x)))


# ------------------------------- fused kernel --------------------------------
def fused_forward_kernel(tok_ref, prefix_ref, mask_ref, pos_bias_ref,
                         wte_ref, wte_t_ref, cw1_ref, cw2x_ref,
                         nb_ref, wah_ref, bah_ref, w2d_ref,
                         out_ref):
    """Whole ClipCaptionModel forward: logits = GPT2(cat(clip_proj, wte(tok)))."""
    f32 = jnp.float32
    bf16 = jnp.bfloat16

    # ---- embedding_text = wte(tokens) as a one-hot matmul (bf16 MXU) --------
    tok = tok_ref[...]                                                   # (B*T,1) i32
    iota_v = jax.lax.broadcasted_iota(jnp.int32, (B * T, VOCAB), 1)
    onehot = jnp.where(iota_v == tok, 1.0, 0.0).astype(bf16)             # (B*T, V)
    emb_tok = jnp.dot(onehot, wte_ref[...],
                      preferred_element_type=f32)                        # (B*T, D)

    # ---- prefix_projections = clip_project(prefix): Linear -> Tanh -> Linear
    cb1 = nb_ref[NLAYER, 2:3, 0:CLIP_HID]                                # (1, hid)
    h1 = jnp.dot(prefix_ref[...].astype(bf16), cw1_ref[...],
                 preferred_element_type=f32) + cb1                       # (B, hid)
    h1 = jnp.tanh(h1)                                                    # f32 (EUP)

    # Second Linear: produce the (B*PREFIX_LEN, D) ROWS directly with one
    # block-diagonal matmul (weight pre-rearranged to (PL*hid, D) in wrapper).
    h1_rep = jnp.concatenate(
        [jnp.broadcast_to(h1[b:b + 1, :], (PREFIX_LEN, CLIP_HID)) for b in range(B)],
        axis=0)                                                          # (B*PL, hid)
    row = jax.lax.broadcasted_iota(jnp.int32, (B * PREFIX_LEN, CLIP_HID), 0)
    pieces = []
    for p in range(PREFIX_LEN):                                          # static unroll
        sel = (row == p)
        for b in range(1, B):
            sel = sel | (row == b * PREFIX_LEN + p)
        pieces.append(jnp.where(sel, h1_rep, 0.0))
    lhs_big = jnp.concatenate(pieces, axis=1).astype(bf16)               # (B*PL, PL*hid)
    proj = jnp.dot(lhs_big, cw2x_ref[...],
                   preferred_element_type=f32)                           # (B*PL, D)

    # ---- cat(prefix_proj, text_emb) per batch + fused wpe/clip_b2 slab ------
    rows = []
    for b in range(B):
        rows.append(proj[b * PREFIX_LEN:(b + 1) * PREFIX_LEN, :])        # (PL, D)
        rows.append(emb_tok[b * T:(b + 1) * T, :])                       # (T, D)
    x = jnp.concatenate(rows, axis=0) + pos_bias_ref[...]                # (B*S, D)

    # ---- masks ---------------------------------------------------------------
    r = jax.lax.broadcasted_iota(jnp.int32, (S, S), 0)
    c = jax.lax.broadcasted_iota(jnp.int32, (S, S), 1)
    causal = jnp.where(c <= r, 0.0, -1e9).astype(f32)[None, :, :]        # (1,S,S)
    pad_bias = ((mask_ref[...] - 1.0) * 1e9)[:, None, :]                 # (B,1,S)
    # NOTE: causal + pad can stack to -2e9; still finite in f32, and the
    # max-subtraction below must stay AFTER the mask adds.
    scale = 1.0 / math.sqrt(HD)

    # ---- GPT-2 stack on the flattened (B*S, D) slab ---------------------------
    for l in range(NLAYER):                                              # static unroll
        ln1g = nb_ref[l, 0:1, 0:D]; ln1b = nb_ref[l, 1:2, 0:D]
        ln2g = nb_ref[l, 2:3, 0:D]; ln2b = nb_ref[l, 3:4, 0:D]
        bo = nb_ref[l, 4:5, 0:D]
        bpr = nb_ref[l, 5:6, 0:D]
        bfc = nb_ref[l, 6:7, 0:4 * D]

        # --- causal multi-head self-attention (per-head, lane-0-aligned) ---
        h = _layernorm(x, ln1g, ln1b)                                    # f32
        h_bf = h.astype(bf16)
        attn = jnp.zeros((B * S, D), f32)
        for hh in range(NH):                                             # static unroll
            wq = wah_ref[l, hh, 0]; wk = wah_ref[l, hh, 1]; wv = wah_ref[l, hh, 2]
            bq = bah_ref[l, 3 * hh + 0:3 * hh + 1, :]
            bk = bah_ref[l, 3 * hh + 1:3 * hh + 2, :]
            bv = bah_ref[l, 3 * hh + 2:3 * hh + 3, :]
            q = (jnp.dot(h_bf, wq, preferred_element_type=f32) + bq).reshape(B, S, HD)
            k = (jnp.dot(h_bf, wk, preferred_element_type=f32) + bk).reshape(B, S, HD)
            v = (jnp.dot(h_bf, wv, preferred_element_type=f32) + bv).reshape(B, S, HD)
            s = jnp.einsum('bqd,bkd->bqk', q.astype(bf16), k.astype(bf16),
                           preferred_element_type=f32) * scale           # (B,S,S)
            s = s + causal + pad_bias
            s = s - jnp.max(s, axis=-1, keepdims=True)
            pmat = jnp.exp(s)
            pmat = pmat * pl.reciprocal(jnp.sum(pmat, axis=-1, keepdims=True),
                                        approx=True)
            o = jnp.einsum('bqk,bkd->bqd', pmat.astype(bf16), v.astype(bf16),
                           preferred_element_type=f32)                   # (B,S,HD)
            # fold the head directly into the output projection (no concat)
            wo_h = w2d_ref[l, hh * HD:(hh + 1) * HD, 0:D]                # (HD, D) bf16
            attn = attn + jnp.dot(o.reshape(B * S, HD).astype(bf16), wo_h,
                                  preferred_element_type=f32)
        x = x + attn + bo                                                # residual

        # --- MLP ---
        h2 = _layernorm(x, ln2g, ln2b)
        wfc = w2d_ref[l, D:2 * D, 0:4 * D]                               # (D, 4D) bf16
        wpr = w2d_ref[l, 2 * D:6 * D, 0:D]                               # (4D, D) bf16
        m = jnp.dot(h2.astype(bf16), wfc, preferred_element_type=f32) + bfc
        m = _gelu_new(m)                                                 # f32
        m = jnp.dot(m.astype(bf16), wpr, preferred_element_type=f32) + bpr
        x = x + m                                                        # residual

    # ---- final LN + tied LM head (pre-transposed, 128-padded wte) -----------
    lnfg = nb_ref[NLAYER, 0:1, 0:D]; lnfb = nb_ref[NLAYER, 1:2, 0:D]
    hf = _layernorm(x, lnfg, lnfb)                                       # (B*S, D)
    out_ref[...] = jnp.dot(hf.astype(bf16), wte_t_ref[...],
                           preferred_element_type=f32)                   # (B*S, 128)


# --------------------------- parameter init ----------------------------------
def init_params(key):
    keys = iter(jax.random.split(key, 32))

    def nrm(shape):
        return jax.random.normal(next(keys), shape, jnp.float32) * 0.02

    return {
        'wte': nrm((VOCAB, D)),
        'wpe': nrm((MAX_POS, D)),
        'clip_w1': nrm((PREFIX_SIZE, CLIP_HID)),
        'clip_b1': jnp.zeros((1, CLIP_HID), jnp.float32),
        'clip_w2': nrm((CLIP_HID, CLIP_OUT)),
        'clip_b2': jnp.zeros((1, CLIP_OUT), jnp.float32),
        'lnf_g': jnp.ones((1, D), jnp.float32),
        'lnf_b': jnp.zeros((1, D), jnp.float32),
        'ln1_g': jnp.ones((NLAYER, 1, D), jnp.float32),
        'ln1_b': jnp.zeros((NLAYER, 1, D), jnp.float32),
        'wqkv': nrm((NLAYER, D, 3 * D)),
        'bqkv': jnp.zeros((NLAYER, 1, 3 * D), jnp.float32),
        'wo': nrm((NLAYER, D, D)),
        'bo': jnp.zeros((NLAYER, 1, D), jnp.float32),
        'ln2_g': jnp.ones((NLAYER, 1, D), jnp.float32),
        'ln2_b': jnp.zeros((NLAYER, 1, D), jnp.float32),
        'wfc': nrm((NLAYER, D, 4 * D)),
        'bfc': jnp.zeros((NLAYER, 1, 4 * D), jnp.float32),
        'wproj': nrm((NLAYER, 4 * D, D)),
        'bproj': jnp.zeros((NLAYER, 1, D), jnp.float32),
    }


def pack_params(p):
    """One-time wrapper-side repacking of logical params into kernel slabs."""
    bf16 = jnp.bfloat16
    # tied LM head: wte transposed and zero-padded to 128 vocab lanes
    wte_pad = jnp.zeros((VOCAB_PAD, D), jnp.float32).at[:VOCAB].set(p['wte'])
    wte_t = wte_pad.T.astype(bf16)                                       # (D, 128)
    # clip second linear rearranged so the block-diag matmul emits (B*PL,D) rows
    cw2x = (p['clip_w2'].reshape(CLIP_HID, PREFIX_LEN, D)
            .transpose(1, 0, 2).reshape(PREFIX_LEN * CLIP_HID, D).astype(bf16))
    # positional embedding tiled over batch, clip_b2 folded onto prefix rows
    wpe_s = p['wpe'][:S]
    cb2_rows = p['clip_b2'].reshape(PREFIX_LEN, D)
    seq_bias = wpe_s.at[:PREFIX_LEN].add(cb2_rows)                       # (S, D)
    pos_bias = jnp.tile(seq_bias, (B, 1))                                # (B*S, D)
    # all LN gammas/betas + biases in one (NLAYER+1, 8, 128) f32 slab
    nb = jnp.zeros((NLAYER + 1, 8, 128), jnp.float32)
    for l in range(NLAYER):
        nb = nb.at[l, 0, :D].set(p['ln1_g'][l, 0])
        nb = nb.at[l, 1, :D].set(p['ln1_b'][l, 0])
        nb = nb.at[l, 2, :D].set(p['ln2_g'][l, 0])
        nb = nb.at[l, 3, :D].set(p['ln2_b'][l, 0])
        nb = nb.at[l, 4, :D].set(p['bo'][l, 0])
        nb = nb.at[l, 5, :D].set(p['bproj'][l, 0])
        nb = nb.at[l, 6, :4 * D].set(p['bfc'][l, 0])
    nb = nb.at[NLAYER, 0, :D].set(p['lnf_g'][0])
    nb = nb.at[NLAYER, 1, :D].set(p['lnf_b'][0])
    nb = nb.at[NLAYER, 2, :CLIP_HID].set(p['clip_b1'][0])
    # per-head q/k/v weights and biases (lane-0-aligned per-head dots)
    wah = (p['wqkv'].reshape(NLAYER, D, 3, NH, HD)
           .transpose(0, 3, 2, 1, 4).astype(bf16))                       # (L,NH,3,D,HD)
    bah = (p['bqkv'].reshape(NLAYER, 3, NH, HD)
           .transpose(0, 2, 1, 3).reshape(NLAYER, NH * 3, HD))           # (L,NH*3,HD)
    # wo / wfc / wproj packed into one (NLAYER, 6D, 4D) slab
    w2d = jnp.zeros((NLAYER, 6 * D, 4 * D), jnp.float32)
    w2d = w2d.at[:, 0:D, 0:D].set(p['wo'])
    w2d = w2d.at[:, D:2 * D, :].set(p['wfc'])
    w2d = w2d.at[:, 2 * D:6 * D, 0:D].set(p['wproj'])
    return {
        'wte_emb': p['wte'].astype(bf16),
        'wte_t': wte_t,
        'clip_w1': p['clip_w1'].astype(bf16),
        'clip_w2x': cw2x,
        'pos_bias': pos_bias,
        'nb': nb,
        'w_attn': wah,
        'b_attn': bah,
        'w2d': w2d.astype(bf16),
    }


# ------------------------------ forward --------------------------------------
@jax.jit
def _forward(tokens_flat, prefix, mask, packed):
    logits = pl.pallas_call(
        fused_forward_kernel,
        out_shape=jax.ShapeDtypeStruct((B * S, VOCAB_PAD), jnp.float32),
        in_specs=[_VMEM] * 12,
        out_specs=_VMEM,
    )(tokens_flat, prefix, mask, packed['pos_bias'],
      packed['wte_emb'], packed['wte_t'], packed['clip_w1'], packed['clip_w2x'],
      packed['nb'], packed['w_attn'], packed['b_attn'], packed['w2d'])
    return logits[:, :VOCAB].reshape(B, S, VOCAB)


def clip_caption_forward(tokens, prefix, packed, mask=None):
    Bt, Tt = tokens.shape
    assert (Bt, Tt) == (B, T), (Bt, Tt)
    if mask is None:
        mask = jnp.ones((Bt, S), jnp.float32)
    mask = mask.astype(jnp.float32)
    tokens_flat = tokens.reshape(-1, 1).astype(jnp.int32)                # (B*T, 1)
    return _forward(tokens_flat, prefix, mask, packed)                   # (B, S, V)


# -------------------------------- main ----------------------------------------
if __name__ == "__main__":
    key = jax.random.PRNGKey(0)
    k_tok, k_pref, k_par = jax.random.split(key, 3)

    tokens = jax.random.randint(k_tok, (B, T), 0, VOCAB, dtype=jnp.int32)
    prefix = jax.random.normal(k_pref, (B, PREFIX_SIZE), jnp.float32)
    params = init_params(k_par)
    packed = pack_params(params)

    logits = clip_caption_forward(tokens, prefix, packed, mask=None)
    logits = jax.block_until_ready(logits)

    assert logits.shape == (B, PREFIX_LEN + T, VOCAB), logits.shape
    assert bool(jnp.all(jnp.isfinite(logits)))
    print("KERNEL_OK")
</pallas_src>

<mosaic_0001>
module attributes {stable_mosaic.version = 11 : i64} {
  func.func @fused_forward_kernel(%arg0: memref<16x1xi32, #tpu.memory_space<vmem>>, %arg1: memref<2x16xf32, #tpu.memory_space<vmem>>, %arg2: memref<2x16xf32, #tpu.memory_space<vmem>>, %arg3: memref<32x32xf32, #tpu.memory_space<vmem>>, %arg4: memref<64x32xbf16, #tpu.memory_space<vmem>>, %arg5: memref<32x128xbf16, #tpu.memory_space<vmem>>, %arg6: memref<16x128xbf16, #tpu.memory_space<vmem>>, %arg7: memref<1024x32xbf16, #tpu.memory_space<vmem>>, %arg8: memref<3x8x128xf32, #tpu.memory_space<vmem>>, %arg9: memref<2x2x3x32x16xbf16, #tpu.memory_space<vmem>>, %arg10: memref<2x6x16xf32, #tpu.memory_space<vmem>>, %arg11: memref<2x192x128xbf16, #tpu.memory_space<vmem>>, %arg12: memref<32x128xf32, #tpu.memory_space<vmem>>) attributes {dimension_semantics = [], scalar_prefetch = 0 : i64, scratch_operands = 0 : i64, tpu.core_type = #tpu.core_type<tc>} {
    %c0 = arith.constant 0 : index
    %c0_0 = arith.constant 0 : index
    %0 = vector.load %arg0[%c0, %c0_0] : memref<16x1xi32, #tpu.memory_space<vmem>>, vector<16x1xi32>
    %1 = tpu.iota {dimensions = array<i32: 1>} : vector<16x64xi32>
    %2 = vector.broadcast %0 : vector<16x1xi32> to vector<16x64xi32>
    %3 = arith.cmpi eq, %1, %2 : vector<16x64xi32>
    %cst = arith.constant 1.000000e+00 : f32
    %cst_1 = arith.constant 0.000000e+00 : f32
    %4 = vector.broadcast %cst : f32 to vector<16x64xf32>
    %5 = vector.broadcast %cst_1 : f32 to vector<16x64xf32>
    %6 = arith.select %3, %4, %5 : vector<16x64xi1>, vector<16x64xf32>
    %7 = arith.truncf %6 : vector<16x64xf32> to vector<16x64xbf16>
    %c0_2 = arith.constant 0 : index
    %c0_3 = arith.constant 0 : index
    %8 = vector.load %arg4[%c0_2, %c0_3] : memref<64x32xbf16, #tpu.memory_space<vmem>>, vector<64x32xbf16>
    %cst_4 = arith.constant dense<0.000000e+00> : vector<16x32xf32>
    %9 = tpu.matmul %7, %8, %cst_4 {dimension_numbers = #tpu.dot_dimension_numbers<[1], [0], [0], [1], [0, 0, 1, 1], [], []>} : vector<16x64xbf16>, vector<64x32xbf16>, vector<16x32xf32> -> vector<16x32xf32>
    %c2 = arith.constant 2 : index
    %c2_5 = arith.constant 2 : index
    %c0_6 = arith.constant 0 : index
    %10 = vector.load %arg8[%c2, %c2_5, %c0_6] : memref<3x8x128xf32, #tpu.memory_space<vmem>>, vector<1x1x128xf32>
    %11 = vector.shape_cast %10 : vector<1x1x128xf32> to vector<1x128xf32>
    %c0_7 = arith.constant 0 : index
    %c0_8 = arith.constant 0 : index
    %12 = vector.load %arg1[%c0_7, %c0_8] : memref<2x16xf32, #tpu.memory_space<vmem>>, vector<2x16xf32>
    %13 = arith.truncf %12 : vector<2x16xf32> to vector<2x16xbf16>
    %c0_9 = arith.constant 0 : index
    %c0_10 = arith.constant 0 : index
    %14 = vector.load %arg6[%c0_9, %c0_10] : memref<16x128xbf16, #tpu.memory_space<vmem>>, vector<16x128xbf16>
    %cst_11 = arith.constant dense<0.000000e+00> : vector<2x128xf32>
    %15 = tpu.matmul %13, %14, %cst_11 {dimension_numbers = #tpu.dot_dimension_numbers<[1], [0], [0], [1], [0, 0, 1, 1], [], []>} : vector<2x16xbf16>, vector<16x128xbf16>, vector<2x128xf32> -> vector<2x128xf32>
    %16 = vector.broadcast %11 : vector<1x128xf32> to vector<2x128xf32>
    %17 = arith.addf %15, %16 : vector<2x128xf32>
    %18 = math.tanh %17 : vector<2x128xf32>
    %19 = vector.extract_strided_slice %18 {offsets = [0, 0], sizes = [1, 128], strides = [1, 1]} : vector<2x128xf32> to vector<1x128xf32>
    %20 = vector.shape_cast %19 : vector<1x128xf32> to vector<1x128xf32>
    %21 = vector.broadcast %20 : vector<1x128xf32> to vector<8x128xf32>
    %22 = vector.extract_strided_slice %18 {offsets = [1, 0], sizes = [1, 128], strides = [1, 1]} : vector<2x128xf32> to vector<1x128xf32>
    %23 = vector.shape_cast %22 : vector<1x128xf32> to vector<1x128xf32>
    %24 = vector.broadcast %23 : vector<1x128xf32> to vector<8x128xf32>
    %25 = tpu.concatenate %21, %24 in 0 : vector<8x128xf32>, vector<8x128xf32> -> vector<16x128xf32>
    %26 = tpu.iota {dimensions = array<i32: 0>} : vector<16x128xi32>
    %c0_i32 = arith.constant 0 : i32
    %27 = vector.broadcast %c0_i32 : i32 to vector<16x128xi32>
    %28 = arith.cmpi eq, %26, %27 : vector<16x128xi32>
    %c8_i32 = arith.constant 8 : i32
    %29 = vector.broadcast %c8_i32 : i32 to vector<16x128xi32>
    %30 = arith.cmpi eq, %26, %29 : vector<16x128xi32>
    %31 = arith.ori %28, %30 : vector<16x128xi1>
    %cst_12 = arith.constant 0.000000e+00 : f32
    %32 = vector.broadcast %cst_12 : f32 to vector<16x128xf32>
    %33 = arith.select %31, %25, %32 : vector<16x128xi1>, vector<16x128xf32>
    %c1_i32 = arith.constant 1 : i32
    %34 = vector.broadcast %c1_i32 : i32 to vector<16x128xi32>
    %35 = arith.cmpi eq, %26, %34 : vector<16x128xi32>
    %c9_i32 = arith.constant 9 : i32
    %36 = vector.broadcast %c9_i32 : i32 to vector<16x128xi32>
    %37 = arith.cmpi eq, %26, %36 : vector<16x128xi32>
    %38 = arith.ori %35, %37 : vector<16x128xi1>
    %cst_13 = arith.constant 0.000000e+00 : f32
    %39 = vector.broadcast %cst_13 : f32 to vector<16x128xf32>
    %40 = arith.select %38, %25, %39 : vector<16x128xi1>, vector<16x128xf32>
    %c2_i32 = arith.constant 2 : i32
    %41 = vector.broadcast %c2_i32 : i32 to vector<16x128xi32>
    %42 = arith.cmpi eq, %26, %41 : vector<16x128xi32>
    %c10_i32 = arith.constant 10 : i32
    %43 = vector.broadcast %c10_i32 : i32 to vector<16x128xi32>
    %44 = arith.cmpi eq, %26, %43 : vector<16x128xi32>
    %45 = arith.ori %42, %44 : vector<16x128xi1>
    %cst_14 = arith.constant 0.000000e+00 : f32
    %46 = vector.broadcast %cst_14 : f32 to vector<16x128xf32>
    %47 = arith.select %45, %25, %46 : vector<16x128xi1>, vector<16x128xf32>
    %c3_i32 = arith.constant 3 : i32
    %48 = vector.broadcast %c3_i32 : i32 to vector<16x128xi32>
    %49 = arith.cmpi eq, %26, %48 : vector<16x128xi32>
    %c11_i32 = arith.constant 11 : i32
    %50 = vector.broadcast %c11_i32 : i32 to vector<16x128xi32>
    %51 = arith.cmpi eq, %26, %50 : vector<16x128xi32>
    %52 = arith.ori %49, %51 : vector<16x128xi1>
    %cst_15 = arith.constant 0.000000e+00 : f32
    %53 = vector.broadcast %cst_15 : f32 to vector<16x128xf32>
    %54 = arith.select %52, %25, %53 : vector<16x128xi1>, vector<16x128xf32>
    %c4_i32 = arith.constant 4 : i32
    %55 = vector.broadcast %c4_i32 : i32 to vector<16x128xi32>
    %56 = arith.cmpi eq, %26, %55 : vector<16x128xi32>
    %c12_i32 = arith.constant 12 : i32
    %57 = vector.broadcast %c12_i32 : i32 to vector<16x128xi32>
    %58 = arith.cmpi eq, %26, %57 : vector<16x128xi32>
    %59 = arith.ori %56, %58 : vector<16x128xi1>
    %cst_16 = arith.constant 0.000000e+00 : f32
    %60 = vector.broadcast %cst_16 : f32 to vector<16x128xf32>
    %61 = arith.select %59, %25, %60 : vector<16x128xi1>, vector<16x128xf32>
    %c5_i32 = arith.constant 5 : i32
    %62 = vector.broadcast %c5_i32 : i32 to vector<16x128xi32>
    %63 = arith.cmpi eq, %26, %62 : vector<16x128xi32>
    %c13_i32 = arith.constant 13 : i32
    %64 = vector.broadcast %c13_i32 : i32 to vector<16x128xi32>
    %65 = arith.cmpi eq, %26, %64 : vector<16x128xi32>
    %66 = arith.ori %63, %65 : vector<16x128xi1>
    %cst_17 = arith.constant 0.000000e+00 : f32
    %67 = vector.broadcast %cst_17 : f32 to vector<16x128xf32>
    %68 = arith.select %66, %25, %67 : vector<16x128xi1>, vector<16x128xf32>
    %c6_i32 = arith.constant 6 : i32
    %69 = vector.broadcast %c6_i32 : i32 to vector<16x128xi32>
    %70 = arith.cmpi eq, %26, %69 : vector<16x128xi32>
    %c14_i32 = arith.constant 14 : i32
    %71 = vector.broadcast %c14_i32 : i32 to vector<16x128xi32>
    %72 = arith.cmpi eq, %26, %71 : vector<16x128xi32>
    %73 = arith.ori %70, %72 : vector<16x128xi1>
    %cst_18 = arith.constant 0.000000e+00 : f32
    %74 = vector.broadcast %cst_18 : f32 to vector<16x128xf32>
    %75 = arith.select %73, %25, %74 : vector<16x128xi1>, vector<16x128xf32>
    %c7_i32 = arith.constant 7 : i32
    %76 = vector.broadcast %c7_i32 : i32 to vector<16x128xi32>
    %77 = arith.cmpi eq, %26, %76 : vector<16x128xi32>
    %c15_i32 = arith.constant 15 : i32
    %78 = vector.broadcast %c15_i32 : i32 to vector<16x128xi32>
    %79 = arith.cmpi eq, %26, %78 : vector<16x128xi32>
    %80 = arith.ori %77, %79 : vector<16x128xi1>
    %cst_19 = arith.constant 0.000000e+00 : f32
    %81 = vector.broadcast %cst_19 : f32 to vector<16x128xf32>
    %82 = arith.select %80, %25, %81 : vector<16x128xi1>, vector<16x128xf32>
    %83 = tpu.concatenate %33, %40, %47, %54, %61, %68, %75, %82 in 1 : vector<16x128xf32>, vector<16x128xf32>, vector<16x128xf32>, vector<16x128xf32>, vector<16x128xf32>, vector<16x128xf32>, vector<16x128xf32>, vector<16x128xf32> -> vector<16x1024xf32>
    %84 = arith.truncf %83 : vector<16x1024xf32> to vector<16x1024xbf16>
    %c0_20 = arith.constant 0 : index
    %c0_21 = arith.constant 0 : index
    %85 = vector.load %arg7[%c0_20, %c0_21] : memref<1024x32xbf16, #tpu.memory_space<vmem>>, vector<1024x32xbf16>
    %cst_22 = arith.constant dense<0.000000e+00> : vector<16x32xf32>
    %86 = tpu.matmul %84, %85, %cst_22 {dimension_numbers = #tpu.dot_dimension_numbers<[1], [0], [0], [1], [0, 0, 1, 1], [], []>} : vector<16x1024xbf16>, vector<1024x32xbf16>, vector<16x32xf32> -> vector<16x32xf32>
    %87 = vector.extract_strided_slice %86 {offsets = [0, 0], sizes = [8, 32], strides = [1, 1]} : vector<16x32xf32> to vector<8x32xf32>
    %88 = vector.extract_strided_slice %9 {offsets = [0, 0], sizes = [8, 32], strides = [1, 1]} : vector<16x32xf32> to vector<8x32xf32>
    %89 = vector.extract_strided_slice %86 {offsets = [8, 0], sizes = [8, 32], strides = [1, 1]} : vector<16x32xf32> to vector<8x32xf32>
    %90 = vector.extract_strided_slice %9 {offsets = [8, 0], sizes = [8, 32], strides = [1, 1]} : vector<16x32xf32> to vector<8x32xf32>
    %91 = tpu.concatenate %87, %88, %89, %90 in 0 : vector<8x32xf32>, vector<8x32xf32>, vector<8x32xf32>, vector<8x32xf32> -> vector<32x32xf32>
    %c0_23 = arith.constant 0 : index
    %c0_24 = arith.constant 0 : index
    %92 = vector.load %arg3[%c0_23, %c0_24] : memref<32x32xf32, #tpu.memory_space<vmem>>, vector<32x32xf32>
    %93 = arith.addf %91, %92 : vector<32x32xf32>
    %94 = tpu.iota {dimensions = array<i32: 0>} : vector<16x16xi32>
    %95 = tpu.iota {dimensions = array<i32: 1>} : vector<16x16xi32>
    %96 = arith.cmpi sle, %95, %94 : vector<16x16xi32>
    %cst_25 = arith.constant 0.000000e+00 : f32
    %cst_26 = arith.constant -1.000000e+09 : f32
    %97 = vector.broadcast %cst_25 : f32 to vector<16x16xf32>
    %98 = vector.broadcast %cst_26 : f32 to vector<16x16xf32>
    %99 = arith.select %96, %97, %98 : vector<16x16xi1>, vector<16x16xf32>
    %100 = vector.shape_cast %99 : vector<16x16xf32> to vector<1x16x16xf32>
    %c0_27 = arith.constant 0 : index
    %c0_28 = arith.constant 0 : index
    %101 = vector.load %arg2[%c0_27, %c0_28] : memref<2x16xf32, #tpu.memory_space<vmem>>, vector<2x16xf32>
    %cst_29 = arith.constant 1.000000e+00 : f32
    %102 = vector.broadcast %cst_29 : f32 to vector<2x16xf32>
    %103 = arith.subf %101, %102 : vector<2x16xf32>
    %cst_30 = arith.constant 1.000000e+09 : f32
    %104 = vector.broadcast %cst_30 : f32 to vector<2x16xf32>
    %105 = arith.mulf %103, %104 : vector<2x16xf32>
    %106 = vector.shape_cast %105 : vector<2x16xf32> to vector<2x1x16xf32>
    %c0_31 = arith.constant 0 : index
    %c0_32 = arith.constant 0 : index
    %c0_33 = arith.constant 0 : index
    %107 = vector.load %arg8[%c0_31, %c0_32, %c0_33] : memref<3x8x128xf32, #tpu.memory_space<vmem>>, vector<1x1x32xf32>
    %108 = vector.shape_cast %107 : vector<1x1x32xf32> to vector<1x32xf32>
    %c0_34 = arith.constant 0 : index
    %c1 = arith.constant 1 : index
    %c0_35 = arith.constant 0 : index
    %109 = vector.load %arg8[%c0_34, %c1, %c0_35] : memref<3x8x128xf32, #tpu.memory_space<vmem>>, vector<1x1x32xf32>
    %110 = vector.shape_cast %109 : vector<1x1x32xf32> to vector<1x32xf32>
    %c0_36 = arith.constant 0 : index
    %c2_37 = arith.constant 2 : index
    %c0_38 = arith.constant 0 : index
    %111 = vector.load %arg8[%c0_36, %c2_37, %c0_38] : memref<3x8x128xf32, #tpu.memory_space<vmem>>, vector<1x1x32xf32>
    %112 = vector.shape_cast %111 : vector<1x1x32xf32> to vector<1x32xf32>
    %c0_39 = arith.constant 0 : index
    %c3 = arith.constant 3 : index
    %c0_40 = arith.constant 0 : index
    %113 = vector.load %arg8[%c0_39, %c3, %c0_40] : memref<3x8x128xf32, #tpu.memory_space<vmem>>, vector<1x1x32xf32>
    %114 = vector.shape_cast %113 : vector<1x1x32xf32> to vector<1x32xf32>
    %c0_41 = arith.constant 0 : index
    %c4 = arith.constant 4 : index
    %c0_42 = arith.constant 0 : index
    %115 = vector.load %arg8[%c0_41, %c4, %c0_42] : memref<3x8x128xf32, #tpu.memory_space<vmem>>, vector<1x1x32xf32>
    %116 = vector.shape_cast %115 : vector<1x1x32xf32> to vector<1x32xf32>
    %c0_43 = arith.constant 0 : index
    %c5 = arith.constant 5 : index
    %c0_44 = arith.constant 0 : index
    %117 = vector.load %arg8[%c0_43, %c5, %c0_44] : memref<3x8x128xf32, #tpu.memory_space<vmem>>, vector<1x1x32xf32>
    %118 = vector.shape_cast %117 : vector<1x1x32xf32> to vector<1x32xf32>
    %c0_45 = arith.constant 0 : index
    %c6 = arith.constant 6 : index
    %c0_46 = arith.constant 0 : index
    %119 = vector.load %arg8[%c0_45, %c6, %c0_46] : memref<3x8x128xf32, #tpu.memory_space<vmem>>, vector<1x1x128xf32>
    %120 = vector.shape_cast %119 : vector<1x1x128xf32> to vector<1x128xf32>
    %cst_47 = arith.constant dense<0.000000e+00> : vector<32xf32>
    %121 = vector.multi_reduction <add>, %93, %cst_47 [1] : vector<32x32xf32> to vector<32xf32>
    %122 = vector.shape_cast %121 : vector<32xf32> to vector<32x1xf32>
    %cst_48 = arith.constant 3.200000e+01 : f32
    %123 = vector.broadcast %cst_48 : f32 to vector<32x1xf32>
    %124 = arith.divf %122, %123 : vector<32x1xf32>
    %125 = vector.broadcast %124 : vector<32x1xf32> to vector<32x32xf32>
    %126 = arith.subf %93, %125 : vector<32x32xf32>
    %127 = arith.mulf %126, %126 : vector<32x32xf32>
    %cst_49 = arith.constant dense<0.000000e+00> : vector<32xf32>
    %128 = vector.multi_reduction <add>, %127, %cst_49 [1] : vector<32x32xf32> to vector<32xf32>
    %129 = vector.shape_cast %128 : vector<32xf32> to vector<32x1xf32>
    %cst_50 = arith.constant 3.200000e+01 : f32
    %130 = vector.broadcast %cst_50 : f32 to vector<32x1xf32>
    %131 = arith.divf %129, %130 : vector<32x1xf32>
    %132 = vector.broadcast %124 : vector<32x1xf32> to vector<32x32xf32>
    %133 = arith.subf %93, %132 : vector<32x32xf32>
    %cst_51 = arith.constant 9.99999974E-6 : f32
    %134 = vector.broadcast %cst_51 : f32 to vector<32x1xf32>
    %135 = arith.addf %131, %134 : vector<32x1xf32>
    %136 = math.rsqrt %135 : vector<32x1xf32>
    %137 = vector.broadcast %136 : vector<32x1xf32> to vector<32x32xf32>
    %138 = arith.mulf %133, %137 : vector<32x32xf32>
    %139 = vector.broadcast %108 : vector<1x32xf32> to vector<32x32xf32>
    %140 = arith.mulf %138, %139 : vector<32x32xf32>
    %141 = vector.broadcast %110 : vector<1x32xf32> to vector<32x32xf32>
    %142 = arith.addf %140, %141 : vector<32x32xf32>
    %143 = arith.truncf %142 : vector<32x32xf32> to vector<32x32xbf16>
    %cst_52 = arith.constant 0.000000e+00 : f32
    %144 = vector.broadcast %cst_52 : f32 to vector<32x32xf32>
    %c0_53 = arith.constant 0 : index
    %c0_54 = arith.constant 0 : index
    %c0_55 = arith.constant 0 : index
    %c0_56 = arith.constant 0 : index
    %c0_57 = arith.constant 0 : index
    %145 = vector.load %arg9[%c0_53, %c0_54, %c0_55, %c0_56, %c0_57] : memref<2x2x3x32x16xbf16, #tpu.memory_space<vmem>>, vector<1x1x1x32x16xbf16>
    %146 = vector.shape_cast %145 : vector<1x1x1x32x16xbf16> to vector<32x16xbf16>
    %c0_58 = arith.constant 0 : index
    %c0_59 = arith.constant 0 : index
    %c1_60 = arith.constant 1 : index
    %c0_61 = arith.constant 0 : index
    %c0_62 = arith.constant 0 : index
    %147 = vector.load %arg9[%c0_58, %c0_59, %c1_60, %c0_61, %c0_62] : memref<2x2x3x32x16xbf16, #tpu.memory_space<vmem>>, vector<1x1x1x32x16xbf16>
    %148 = vector.shape_cast %147 : vector<1x1x1x32x16xbf16> to vector<32x16xbf16>
    %c0_63 = arith.constant 0 : index
    %c0_64 = arith.constant 0 : index
    %c2_65 = arith.constant 2 : index
    %c0_66 = arith.constant 0 : index
    %c0_67 = arith.constant 0 : index
    %149 = vector.load %arg9[%c0_63, %c0_64, %c2_65, %c0_66, %c0_67] : memref<2x2x3x32x16xbf16, #tpu.memory_space<vmem>>, vector<1x1x1x32x16xbf16>
    %150 = vector.shape_cast %149 : vector<1x1x1x32x16xbf16> to vector<32x16xbf16>
    %c0_68 = arith.constant 0 : index
    %c0_69 = arith.constant 0 : index
    %c0_70 = arith.constant 0 : index
    %151 = vector.load %arg10[%c0_68, %c0_69, %c0_70] : memref<2x6x16xf32, #tpu.memory_space<vmem>>, vector<1x1x16xf32>
    %152 = vector.shape_cast %151 : vector<1x1x16xf32> to vector<1x16xf32>
    %c0_71 = arith.constant 0 : index
    %c1_72 = arith.constant 1 : index
    %c0_73 = arith.constant 0 : index
    %153 = vector.load %arg10[%c0_71, %c1_72, %c0_73] : memref<2x6x16xf32, #tpu.memory_space<vmem>>, vector<1x1x16xf32>
    %154 = vector.shape_cast %153 : vector<1x1x16xf32> to vector<1x16xf32>
    %c0_74 = arith.constant 0 : index
    %c2_75 = arith.constant 2 : index
    %c0_76 = arith.constant 0 : index
    %155 = vector.load %arg10[%c0_74, %c2_75, %c0_76] : memref<2x6x16xf32, #tpu.memory_space<vmem>>, vector<1x1x16xf32>
    %156 = vector.shape_cast %155 : vector<1x1x16xf32> to vector<1x16xf32>
    %cst_77 = arith.constant dense<0.000000e+00> : vector<32x16xf32>
    %157 = tpu.matmul %143, %146, %cst_77 {dimension_numbers = #tpu.dot_dimension_numbers<[1], [0], [0], [1], [0, 0, 1, 1], [], []>} : vector<32x32xbf16>, vector<32x16xbf16>, vector<32x16xf32> -> vector<32x16xf32>
    %158 = vector.broadcast %152 : vector<1x16xf32> to vector<32x16xf32>
    %159 = arith.addf %157, %158 : vector<32x16xf32>
    %160 = vector.shape_cast %159 : vector<32x16xf32> to vector<2x16x16xf32>
    %cst_78 = arith.constant dense<0.000000e+00> : vector<32x16xf32>
    %161 = tpu.matmul %143, %148, %cst_78 {dimension_numbers = #tpu.dot_dimension_numbers<[1], [0], [0], [1], [0, 0, 1, 1], [], []>} : vector<32x32xbf16>, vector<32x16xbf16>, vector<32x16xf32> -> vector<32x16xf32>
    %162 = vector.broadcast %154 : vector<1x16xf32> to vector<32x16xf32>
    %163 = arith.addf %161, %162 : vector<32x16xf32>
    %164 = vector.shape_cast %163 : vector<32x16xf32> to vector<2x16x16xf32>
    %cst_79 = arith.constant dense<0.000000e+00> : vector<32x16xf32>
    %165 = tpu.matmul %143, %150, %cst_79 {dimension_numbers = #tpu.dot_dimension_numbers<[1], [0], [0], [1], [0, 0, 1, 1], [], []>} : vector<32x32xbf16>, vector<32x16xbf16>, vector<32x16xf32> -> vector<32x16xf32>
    %166 = vector.broadcast %156 : vector<1x16xf32> to vector<32x16xf32>
    %167 = arith.addf %165, %166 : vector<32x16xf32>
    %168 = vector.shape_cast %167 : vector<32x16xf32> to vector<2x16x16xf32>
    %169 = arith.truncf %160 : vector<2x16x16xf32> to vector<2x16x16xbf16>
    %170 = arith.truncf %164 : vector<2x16x16xf32> to vector<2x16x16xbf16>
    "tpu.trace_start"() <{level = 10 : i32, message = "bqd,bkd->bqk"}> : () -> ()
    %cst_80 = arith.constant dense<0.000000e+00> : vector<2x16x16xf32>
    %171 = tpu.matmul %169, %170, %cst_80 {dimension_numbers = #tpu.dot_dimension_numbers<[2], [2], [1], [1], [0, 0, 0, 1, 1, 1], [0], [0]>} : vector<2x16x16xbf16>, vector<2x16x16xbf16>, vector<2x16x16xf32> -> vector<2x16x16xf32>
    "tpu.trace_stop"() : () -> ()
    %cst_81 = arith.constant 2.500000e-01 : f32
    %172 = vector.broadcast %cst_81 : f32 to vector<2x16x16xf32>
    %173 = arith.mulf %171, %172 : vector<2x16x16xf32>
    %174 = vector.broadcast %100 : vector<1x16x16xf32> to vector<2x16x16xf32>
    %175 = arith.addf %173, %174 : vector<2x16x16xf32>
    %176 = vector.broadcast %106 : vector<2x1x16xf32> to vector<2x16x16xf32>
    %177 = arith.addf %175, %176 : vector<2x16x16xf32>
    %cst_82 = arith.constant dense<0xFF800000> : vector<2x16xf32>
    %178 = vector.multi_reduction <maximumf>, %177, %cst_82 [2] : vector<2x16x16xf32> to vector<2x16xf32>
    %179 = vector.shape_cast %178 : vector<2x16xf32> to vector<2x16x1xf32>
    %180 = vector.broadcast %179 : vector<2x16x1xf32> to vector<2x16x16xf32>
    %181 = arith.subf %177, %180 : vector<2x16x16xf32>
    %182 = math.exp %181 : vector<2x16x16xf32>
    %cst_83 = arith.constant dense<0.000000e+00> : vector<2x16xf32>
    %183 = vector.multi_reduction <add>, %182, %cst_83 [2] : vector<2x16x16xf32> to vector<2x16xf32>
    %184 = vector.shape_cast %183 : vector<2x16xf32> to vector<2x16x1xf32>
    %185 = tpu.reciprocal %184 {approx = true} : vector<2x16x1xf32> -> vector<2x16x1xf32>
    %186 = vector.broadcast %185 : vector<2x16x1xf32> to vector<2x16x16xf32>
    %187 = arith.mulf %182, %186 : vector<2x16x16xf32>
    %188 = arith.truncf %187 : vector<2x16x16xf32> to vector<2x16x16xbf16>
    %189 = arith.truncf %168 : vector<2x16x16xf32> to vector<2x16x16xbf16>
    "tpu.trace_start"() <{level = 10 : i32, message = "bqk,bkd->bqd"}> : () -> ()
    %cst_84 = arith.constant dense<0.000000e+00> : vector<2x16x16xf32>
    %190 = tpu.matmul %188, %189, %cst_84 {dimension_numbers = #tpu.dot_dimension_numbers<[2], [1], [1], [2], [0, 0, 0, 1, 1, 2], [0], [0]>} : vector<2x16x16xbf16>, vector<2x16x16xbf16>, vector<2x16x16xf32> -> vector<2x16x16xf32>
    "tpu.trace_stop"() : () -> ()
    %c0_85 = arith.constant 0 : index
    %c0_86 = arith.constant 0 : index
    %c0_87 = arith.constant 0 : index
    %191 = vector.load %arg11[%c0_85, %c0_86, %c0_87] : memref<2x192x128xbf16, #tpu.memory_space<vmem>>, vector<1x16x32xbf16>
    %192 = vector.shape_cast %191 : vector<1x16x32xbf16> to vector<16x32xbf16>
    %193 = vector.shape_cast %190 : vector<2x16x16xf32> to vector<32x16xf32>
    %194 = arith.truncf %193 : vector<32x16xf32> to vector<32x16xbf16>
    %cst_88 = arith.constant dense<0.000000e+00> : vector<32x32xf32>
    %195 = tpu.matmul %194, %192, %cst_88 {dimension_numbers = #tpu.dot_dimension_numbers<[1], [0], [0], [1], [0, 0, 1, 1], [], []>} : vector<32x16xbf16>, vector<16x32xbf16>, vector<32x32xf32> -> vector<32x32xf32>
    %196 = arith.addf %144, %195 : vector<32x32xf32>
    %c0_89 = arith.constant 0 : index
    %c1_90 = arith.constant 1 : index
    %c0_91 = arith.constant 0 : index
    %c0_92 = arith.constant 0 : index
    %c0_93 = arith.constant 0 : index
    %197 = vector.load %arg9[%c0_89, %c1_90, %c0_91, %c0_92, %c0_93] : memref<2x2x3x32x16xbf16, #tpu.memory_space<vmem>>, vector<1x1x1x32x16xbf16>
    %198 = vector.shape_cast %197 : vector<1x1x1x32x16xbf16> to vector<32x16xbf16>
    %c0_94 = arith.constant 0 : index
    %c1_95 = arith.constant 1 : index
    %c1_96 = arith.constant 1 : index
    %c0_97 = arith.constant 0 : index
    %c0_98 = arith.constant 0 : index
    %199 = vector.load %arg9[%c0_94, %c1_95, %c1_96, %c0_97, %c0_98] : memref<2x2x3x32x16xbf16, #tpu.memory_space<vmem>>, vector<1x1x1x32x16xbf16>
    %200 = vector.shape_cast %199 : vector<1x1x1x32x16xbf16> to vector<32x16xbf16>
    %c0_99 = arith.constant 0 : index
    %c1_100 = arith.constant 1 : index
    %c2_101 = arith.constant 2 : index
    %c0_102 = arith.constant 0 : index
    %c0_103 = arith.constant 0 : index
    %201 = vector.load %arg9[%c0_99, %c1_100, %c2_101, %c0_102, %c0_103] : memref<2x2x3x32x16xbf16, #tpu.memory_space<vmem>>, vector<1x1x1x32x16xbf16>
    %202 = vector.shape_cast %201 : vector<1x1x1x32x16xbf16> to vector<32x16xbf16>
    %c0_104 = arith.constant 0 : index
    %c3_105 = arith.constant 3 : index
    %c0_106 = arith.constant 0 : index
    %203 = vector.load %arg10[%c0_104, %c3_105, %c0_106] : memref<2x6x16xf32, #tpu.memory_space<vmem>>, vector<1x1x16xf32>
    %204 = vector.shape_cast %203 : vector<1x1x16xf32> to vector<1x16xf32>
    %c0_107 = arith.constant 0 : index
    %c4_108 = arith.constant 4 : index
    %c0_109 = arith.constant 0 : index
    %205 = vector.load %arg10[%c0_107, %c4_108, %c0_109] : memref<2x6x16xf32, #tpu.memory_space<vmem>>, vector<1x1x16xf32>
    %206 = vector.shape_cast %205 : vector<1x1x16xf32> to vector<1x16xf32>
    %c0_110 = arith.constant 0 : index
    %c5_111 = arith.constant 5 : index
    %c0_112 = arith.constant 0 : index
    %207 = vector.load %arg10[%c0_110, %c5_111, %c0_112] : memref<2x6x16xf32, #tpu.memory_space<vmem>>, vector<1x1x16xf32>
    %208 = vector.shape_cast %207 : vector<1x1x16xf32> to vector<1x16xf32>
    %cst_113 = arith.constant dense<0.000000e+00> : vector<32x16xf32>
    %209 = tpu.matmul %143, %198, %cst_113 {dimension_numbers = #tpu.dot_dimension_numbers<[1], [0], [0], [1], [0, 0, 1, 1], [], []>} : vector<32x32xbf16>, vector<32x16xbf16>, vector<32x16xf32> -> vector<32x16xf32>
    %210 = vector.broadcast %204 : vector<1x16xf32> to vector<32x16xf32>
    %211 = arith.addf %209, %210 : vector<32x16xf32>
    %212 = vector.shape_cast %211 : vector<32x16xf32> to vector<2x16x16xf32>
    %cst_114 = arith.constant dense<0.000000e+00> : vector<32x16xf32>
    %213 = tpu.matmul %143, %200, %cst_114 {dimension_numbers = #tpu.dot_dimension_numbers<[1], [0], [0], [1], [0, 0, 1, 1], [], []>} : vector<32x32xbf16>, vector<32x16xbf16>, vector<32x16xf32> -> vector<32x16xf32>
    %214 = vector.broadcast %206 : vector<1x16xf32> to vector<32x16xf32>
    %215 = arith.addf %213, %214 : vector<32x16xf32>
    %216 = vector.shape_cast %215 : vector<32x16xf32> to vector<2x16x16xf32>
    %cst_115 = arith.constant dense<0.000000e+00> : vector<32x16xf32>
    %217 = tpu.matmul %143, %202, %cst_115 {dimension_numbers = #tpu.dot_dimension_numbers<[1], [0], [0], [1], [0, 0, 1, 1], [], []>} : vector<32x32xbf16>, vector<32x16xbf16>, vector<32x16xf32> -> vector<32x16xf32>
    %218 = vector.broadcast %208 : vector<1x16xf32> to vector<32x16xf32>
    %219 = arith.addf %217, %218 : vector<32x16xf32>
    %220 = vector.shape_cast %219 : vector<32x16xf32> to vector<2x16x16xf32>
    %221 = arith.truncf %212 : vector<2x16x16xf32> to vector<2x16x16xbf16>
    %222 = arith.truncf %216 : vector<2x16x16xf32> to vector<2x16x16xbf16>
    "tpu.trace_start"() <{level = 10 : i32, message = "bqd,bkd->bqk"}> : () -> ()
    %cst_116 = arith.constant dense<0.000000e+00> : vector<2x16x16xf32>
    %223 = tpu.matmul %221, %222, %cst_116 {dimension_numbers = #tpu.dot_dimension_numbers<[2], [2], [1], [1], [0, 0, 0, 1, 1, 1], [0], [0]>} : vector<2x16x16xbf16>, vector<2x16x16xbf16>, vector<2x16x16xf32> -> vector<2x16x16xf32>
    "tpu.trace_stop"() : () -> ()
    %cst_117 = arith.constant 2.500000e-01 : f32
    %224 = vector.broadcast %cst_117 : f32 to vector<2x16x16xf32>
    %225 = arith.mulf %223, %224 : vector<2x16x16xf32>
    %226 = vector.broadcast %100 : vector<1x16x16xf32> to vector<2x16x16xf32>
    %227 = arith.addf %225, %226 : vector<2x16x16xf32>
    %228 = vector.broadcast %106 : vector<2x1x16xf32> to vector<2x16x16xf32>
    %229 = arith.addf %227, %228 : vector<2x16x16xf32>
    %cst_118 = arith.constant dense<0xFF800000> : vector<2x16xf32>
    %230 = vector.multi_reduction <maximumf>, %229, %cst_118 [2] : vector<2x16x16xf32> to vector<2x16xf32>
    %231 = vector.shape_cast %230 : vector<2x16xf32> to vector<2x16x1xf32>
    %232 = vector.broadcast %231 : vector<2x16x1xf32> to vector<2x16x16xf32>
    %233 = arith.subf %229, %232 : vector<2x16x16xf32>
    %234 = math.exp %233 : vector<2x16x16xf32>
    %cst_119 = arith.constant dense<0.000000e+00> : vector<2x16xf32>
    %235 = vector.multi_reduction <add>, %234, %cst_119 [2] : vector<2x16x16xf32> to vector<2x16xf32>
    %236 = vector.shape_cast %235 : vector<2x16xf32> to vector<2x16x1xf32>
    %237 = tpu.reciprocal %236 {approx = true} : vector<2x16x1xf32> -> vector<2x16x1xf32>
    %238 = vector.broadcast %237 : vector<2x16x1xf32> to vector<2x16x16xf32>
    %239 = arith.mulf %234, %238 : vector<2x16x16xf32>
    %240 = arith.truncf %239 : vector<2x16x16xf32> to vector<2x16x16xbf16>
    %241 = arith.truncf %220 : vector<2x16x16xf32> to vector<2x16x16xbf16>
    "tpu.trace_start"() <{level = 10 : i32, message = "bqk,bkd->bqd"}> : () -> ()
    %cst_120 = arith.constant dense<0.000000e+00> : vector<2x16x16xf32>
    %242 = tpu.matmul %240, %241, %cst_120 {dimension_numbers = #tpu.dot_dimension_numbers<[2], [1], [1], [2], [0, 0, 0, 1, 1, 2], [0], [0]>} : vector<2x16x16xbf16>, vector<2x16x16xbf16>, vector<2x16x16xf32> -> vector<2x16x16xf32>
    "tpu.trace_stop"() : () -> ()
    %c0_121 = arith.constant 0 : index
    %c16 = arith.constant 16 : index
    %c0_122 = arith.constant 0 : index
    %243 = vector.load %arg11[%c0_121, %c16, %c0_122] : memref<2x192x128xbf16, #tpu.memory_space<vmem>>, vector<1x16x32xbf16>
    %244 = vector.shape_cast %243 : vector<1x16x32xbf16> to vector<16x32xbf16>
    %245 = vector.shape_cast %242 : vector<2x16x16xf32> to vector<32x16xf32>
    %246 = arith.truncf %245 : vector<32x16xf32> to vector<32x16xbf16>
    %cst_123 = arith.constant dense<0.000000e+00> : vector<32x32xf32>
    %247 = tpu.matmul %246, %244, %cst_123 {dimension_numbers = #tpu.dot_dimension_numbers<[1], [0], [0], [1], [0, 0, 1, 1], [], []>} : vector<32x16xbf16>, vector<16x32xbf16>, vector<32x32xf32> -> vector<32x32xf32>
    %248 = arith.addf %196, %247 : vector<32x32xf32>
    %249 = arith.addf %93, %248 : vector<32x32xf32>
    %250 = vector.broadcast %116 : vector<1x32xf32> to vector<32x32xf32>
    %251 = arith.addf %249, %250 : vector<32x32xf32>
    %cst_124 = arith.constant dense<0.000000e+00> : vector<32xf32>
    %252 = vector.multi_reduction <add>, %251, %cst_124 [1] : vector<32x32xf32> to vector<32xf32>
    %253 = vector.shape_cast %252 : vector<32xf32> to vector<32x1xf32>
    %cst_125 = arith.constant 3.200000e+01 : f32
    %254 = vector.broadcast %cst_125 : f32 to vector<32x1xf32>
    %255 = arith.divf %253, %254 : vector<32x1xf32>
    %256 = vector.broadcast %255 : vector<32x1xf32> to vector<32x32xf32>
    %257 = arith.subf %251, %256 : vector<32x32xf32>
    %258 = arith.mulf %257, %257 : vector<32x32xf32>
    %cst_126 = arith.constant dense<0.000000e+00> : vector<32xf32>
    %259 = vector.multi_reduction <add>, %258, %cst_126 [1] : vector<32x32xf32> to vector<32xf32>
    %260 = vector.shape_cast %259 : vector<32xf32> to vector<32x1xf32>
    %cst_127 = arith.constant 3.200000e+01 : f32
    %261 = vector.broadcast %cst_127 : f32 to vector<32x1xf32>
    %262 = arith.divf %260, %261 : vector<32x1xf32>
    %263 = vector.broadcast %255 : vector<32x1xf32> to vector<32x32xf32>
    %264 = arith.subf %251, %263 : vector<32x32xf32>
    %cst_128 = arith.constant 9.99999974E-6 : f32
    %265 = vector.broadcast %cst_128 : f32 to vector<32x1xf32>
    %266 = arith.addf %262, %265 : vector<32x1xf32>
    %267 = math.rsqrt %266 : vector<32x1xf32>
    %268 = vector.broadcast %267 : vector<32x1xf32> to vector<32x32xf32>
    %269 = arith.mulf %264, %268 : vector<32x32xf32>
    %270 = vector.broadcast %112 : vector<1x32xf32> to vector<32x32xf32>
    %271 = arith.mulf %269, %270 : vector<32x32xf32>
    %272 = vector.broadcast %114 : vector<1x32xf32> to vector<32x32xf32>
    %273 = arith.addf %271, %272 : vector<32x32xf32>
    %c0_129 = arith.constant 0 : index
    %c32 = arith.constant 32 : index
    %c0_130 = arith.constant 0 : index
    %274 = vector.load %arg11[%c0_129, %c32, %c0_130] : memref<2x192x128xbf16, #tpu.memory_space<vmem>>, vector<1x32x128xbf16>
    %275 = vector.shape_cast %274 : vector<1x32x128xbf16> to vector<32x128xbf16>
    %c0_131 = arith.constant 0 : index
    %c64 = arith.constant 64 : index
    %c0_132 = arith.constant 0 : index
    %276 = vector.load %arg11[%c0_131, %c64, %c0_132] : memref<2x192x128xbf16, #tpu.memory_space<vmem>>, vector<1x128x32xbf16>
    %277 = vector.shape_cast %276 : vector<1x128x32xbf16> to vector<128x32xbf16>
    %278 = arith.truncf %273 : vector<32x32xf32> to vector<32x32xbf16>
    %cst_133 = arith.constant dense<0.000000e+00> : vector<32x128xf32>
    %279 = tpu.matmul %278, %275, %cst_133 {dimension_numbers = #tpu.dot_dimension_numbers<[1], [0], [0], [1], [0, 0, 1, 1], [], []>} : vector<32x32xbf16>, vector<32x128xbf16>, vector<32x128xf32> -> vector<32x128xf32>
    %280 = vector.broadcast %120 : vector<1x128xf32> to vector<32x128xf32>
    %281 = arith.addf %279, %280 : vector<32x128xf32>
    %cst_134 = arith.constant 5.000000e-01 : f32
    %282 = vector.broadcast %cst_134 : f32 to vector<32x128xf32>
    %283 = arith.mulf %282, %281 : vector<32x128xf32>
    %cst_135 = arith.constant 4.471500e-02 : f32
    %284 = vector.broadcast %cst_135 : f32 to vector<32x128xf32>
    %285 = arith.mulf %284, %281 : vector<32x128xf32>
    %286 = arith.mulf %285, %281 : vector<32x128xf32>
    %287 = arith.mulf %286, %281 : vector<32x128xf32>
    %288 = arith.addf %281, %287 : vector<32x128xf32>
    %cst_136 = arith.constant 0.797884583 : f32
    %289 = vector.broadcast %cst_136 : f32 to vector<32x128xf32>
    %290 = arith.mulf %289, %288 : vector<32x128xf32>
    %291 = math.tanh %290 : vector<32x128xf32>
    %cst_137 = arith.constant 1.000000e+00 : f32
    %292 = vector.broadcast %cst_137 : f32 to vector<32x128xf32>
    %293 = arith.addf %292, %291 : vector<32x128xf32>
    %294 = arith.mulf %283, %293 : vector<32x128xf32>
    %295 = arith.truncf %294 : vector<32x128xf32> to vector<32x128xbf16>
    %cst_138 = arith.constant dense<0.000000e+00> : vector<32x32xf32>
    %296 = tpu.matmul %295, %277, %cst_138 {dimension_numbers = #tpu.dot_dimension_numbers<[1], [0], [0], [1], [0, 0, 1, 1], [], []>} : vector<32x128xbf16>, vector<128x32xbf16>, vector<32x32xf32> -> vector<32x32xf32>
    %297 = vector.broadcast %118 : vector<1x32xf32> to vector<32x32xf32>
    %298 = arith.addf %296, %297 : vector<32x32xf32>
    %299 = arith.addf %251, %298 : vector<32x32xf32>
    %c1_139 = arith.constant 1 : index
    %c0_140 = arith.constant 0 : index
    %c0_141 = arith.constant 0 : index
    %300 = vector.load %arg8[%c1_139, %c0_140, %c0_141] : memref<3x8x128xf32, #tpu.memory_space<vmem>>, vector<1x1x32xf32>
    %301 = vector.shape_cast %300 : vector<1x1x32xf32> to vector<1x32xf32>
    %c1_142 = arith.constant 1 : index
    %c1_143 = arith.constant 1 : index
    %c0_144 = arith.constant 0 : index
    %302 = vector.load %arg8[%c1_142, %c1_143, %c0_144] : memref<3x8x128xf32, #tpu.memory_space<vmem>>, vector<1x1x32xf32>
    %303 = vector.shape_cast %302 : vector<1x1x32xf32> to vector<1x32xf32>
    %c1_145 = arith.constant 1 : index
    %c2_146 = arith.constant 2 : index
    %c0_147 = arith.constant 0 : index
    %304 = vector.load %arg8[%c1_145, %c2_146, %c0_147] : memref<3x8x128xf32, #tpu.memory_space<vmem>>, vector<1x1x32xf32>
    %305 = vector.shape_cast %304 : vector<1x1x32xf32> to vector<1x32xf32>
    %c1_148 = arith.constant 1 : index
    %c3_149 = arith.constant 3 : index
    %c0_150 = arith.constant 0 : index
    %306 = vector.load %arg8[%c1_148, %c3_149, %c0_150] : memref<3x8x128xf32, #tpu.memory_space<vmem>>, vector<1x1x32xf32>
    %307 = vector.shape_cast %306 : vector<1x1x32xf32> to vector<1x32xf32>
    %c1_151 = arith.constant 1 : index
    %c4_152 = arith.constant 4 : index
    %c0_153 = arith.constant 0 : index
    %308 = vector.load %arg8[%c1_151, %c4_152, %c0_153] : memref<3x8x128xf32, #tpu.memory_space<vmem>>, vector<1x1x32xf32>
    %309 = vector.shape_cast %308 : vector<1x1x32xf32> to vector<1x32xf32>
    %c1_154 = arith.constant 1 : index
    %c5_155 = arith.constant 5 : index
    %c0_156 = arith.constant 0 : index
    %310 = vector.load %arg8[%c1_154, %c5_155, %c0_156] : memref<3x8x128xf32, #tpu.memory_space<vmem>>, vector<1x1x32xf32>
    %311 = vector.shape_cast %310 : vector<1x1x32xf32> to vector<1x32xf32>
    %c1_157 = arith.constant 1 : index
    %c6_158 = arith.constant 6 : index
    %c0_159 = arith.constant 0 : index
    %312 = vector.load %arg8[%c1_157, %c6_158, %c0_159] : memref<3x8x128xf32, #tpu.memory_space<vmem>>, vector<1x1x128xf32>
    %313 = vector.shape_cast %312 : vector<1x1x128xf32> to vector<1x128xf32>
    %cst_160 = arith.constant dense<0.000000e+00> : vector<32xf32>
    %314 = vector.multi_reduction <add>, %299, %cst_160 [1] : vector<32x32xf32> to vector<32xf32>
    %315 = vector.shape_cast %314 : vector<32xf32> to vector<32x1xf32>
    %cst_161 = arith.constant 3.200000e+01 : f32
    %316 = vector.broadcast %cst_161 : f32 to vector<32x1xf32>
    %317 = arith.divf %315, %316 : vector<32x1xf32>
    %318 = vector.broadcast %317 : vector<32x1xf32> to vector<32x32xf32>
    %319 = arith.subf %299, %318 : vector<32x32xf32>
    %320 = arith.mulf %319, %319 : vector<32x32xf32>
    %cst_162 = arith.constant dense<0.000000e+00> : vector<32xf32>
    %321 = vector.multi_reduction <add>, %320, %cst_162 [1] : vector<32x32xf32> to vector<32xf32>
    %322 = vector.shape_cast %321 : vector<32xf32> to vector<32x1xf32>
    %cst_163 = arith.constant 3.200000e+01 : f32
    %323 = vector.broadcast %cst_163 : f32 to vector<32x1xf32>
    %324 = arith.divf %322, %323 : vector<32x1xf32>
    %325 = vector.broadcast %317 : vector<32x1xf32> to vector<32x32xf32>
    %326 = arith.subf %299, %325 : vector<32x32xf32>
    %cst_164 = arith.constant 9.99999974E-6 : f32
    %327 = vector.broadcast %cst_164 : f32 to vector<32x1xf32>
    %328 = arith.addf %324, %327 : vector<32x1xf32>
    %329 = math.rsqrt %328 : vector<32x1xf32>
    %330 = vector.broadcast %329 : vector<32x1xf32> to vector<32x32xf32>
    %331 = arith.mulf %326, %330 : vector<32x32xf32>
    %332 = vector.broadcast %301 : vector<1x32xf32> to vector<32x32xf32>
    %333 = arith.mulf %331, %332 : vector<32x32xf32>
    %334 = vector.broadcast %303 : vector<1x32xf32> to vector<32x32xf32>
    %335 = arith.addf %333, %334 : vector<32x32xf32>
    %336 = arith.truncf %335 : vector<32x32xf32> to vector<32x32xbf16>
    %cst_165 = arith.constant 0.000000e+00 : f32
    %337 = vector.broadcast %cst_165 : f32 to vector<32x32xf32>
    %c1_166 = arith.constant 1 : index
    %c0_167 = arith.constant 0 : index
    %c0_168 = arith.constant 0 : index
    %c0_169 = arith.constant 0 : index
    %c0_170 = arith.constant 0 : index
    %338 = vector.load %arg9[%c1_166, %c0_167, %c0_168, %c0_169, %c0_170] : memref<2x2x3x32x16xbf16, #tpu.memory_space<vmem>>, vector<1x1x1x32x16xbf16>
    %339 = vector.shape_cast %338 : vector<1x1x1x32x16xbf16> to vector<32x16xbf16>
    %c1_171 = arith.constant 1 : index
    %c0_172 = arith.constant 0 : index
    %c1_173 = arith.constant 1 : index
    %c0_174 = arith.constant 0 : index
    %c0_175 = arith.constant 0 : index
    %340 = vector.load %arg9[%c1_171, %c0_172, %c1_173, %c0_174, %c0_175] : memref<2x2x3x32x16xbf16, #tpu.memory_space<vmem>>, vector<1x1x1x32x16xbf16>
    %341 = vector.shape_cast %340 : vector<1x1x1x32x16xbf16> to vector<32x16xbf16>
    %c1_176 = arith.constant 1 : index
    %c0_177 = arith.constant 0 : index
    %c2_178 = arith.constant 2 : index
    %c0_179 = arith.constant 0 : index
    %c0_180 = arith.constant 0 : index
    %342 = vector.load %arg9[%c1_176, %c0_177, %c2_178, %c0_179, %c0_180] : memref<2x2x3x32x16xbf16, #tpu.memory_space<vmem>>, vector<1x1x1x32x16xbf16>
    %343 = vector.shape_cast %342 : vector<1x1x1x32x16xbf16> to vector<32x16xbf16>
    %c1_181 = arith.constant 1 : index
    %c0_182 = arith.constant 0 : index
    %c0_183 = arith.constant 0 : index
    %344 = vector.load %arg10[%c1_181, %c0_182, %c0_183] : memref<2x6x16xf32, #tpu.memory_space<vmem>>, vector<1x1x16xf32>
    %345 = vector.shape_cast %344 : vector<1x1x16xf32> to vector<1x16xf32>
    %c1_184 = arith.constant 1 : index
    %c1_185 = arith.constant 1 : index
    %c0_186 = arith.constant 0 : index
    %346 = vector.load %arg10[%c1_184, %c1_185, %c0_186] : memref<2x6x16xf32, #tpu.memory_space<vmem>>, vector<1x1x16xf32>
    %347 = vector.shape_cast %346 : vector<1x1x16xf32> to vector<1x16xf32>
    %c1_187 = arith.constant 1 : index
    %c2_188 = arith.constant 2 : index
    %c0_189 = arith.constant 0 : index
    %348 = vector.load %arg10[%c1_187, %c2_188, %c0_189] : memref<2x6x16xf32, #tpu.memory_space<vmem>>, vector<1x1x16xf32>
    %349 = vector.shape_cast %348 : vector<1x1x16xf32> to vector<1x16xf32>
    %cst_190 = arith.constant dense<0.000000e+00> : vector<32x16xf32>
    %350 = tpu.matmul %336, %339, %cst_190 {dimension_numbers = #tpu.dot_dimension_numbers<[1], [0], [0], [1], [0, 0, 1, 1], [], []>} : vector<32x32xbf16>, vector<32x16xbf16>, vector<32x16xf32> -> vector<32x16xf32>
    %351 = vector.broadcast %345 : vector<1x16xf32> to vector<32x16xf32>
    %352 = arith.addf %350, %351 : vector<32x16xf32>
    %353 = vector.shape_cast %352 : vector<32x16xf32> to vector<2x16x16xf32>
    %cst_191 = arith.constant dense<0.000000e+00> : vector<32x16xf32>
    %354 = tpu.matmul %336, %341, %cst_191 {dimension_numbers = #tpu.dot_dimension_numbers<[1], [0], [0], [1], [0, 0, 1, 1], [], []>} : vector<32x32xbf16>, vector<32x16xbf16>, vector<32x16xf32> -> vector<32x16xf32>
    %355 = vector.broadcast %347 : vector<1x16xf32> to vector<32x16xf32>
    %356 = arith.addf %354, %355 : vector<32x16xf32>
    %357 = vector.shape_cast %356 : vector<32x16xf32> to vector<2x16x16xf32>
    %cst_192 = arith.constant dense<0.000000e+00> : vector<32x16xf32>
    %358 = tpu.matmul %336, %343, %cst_192 {dimension_numbers = #tpu.dot_dimension_numbers<[1], [0], [0], [1], [0, 0, 1, 1], [], []>} : vector<32x32xbf16>, vector<32x16xbf16>, vector<32x16xf32> -> vector<32x16xf32>
    %359 = vector.broadcast %349 : vector<1x16xf32> to vector<32x16xf32>
    %360 = arith.addf %358, %359 : vector<32x16xf32>
    %361 = vector.shape_cast %360 : vector<32x16xf32> to vector<2x16x16xf32>
    %362 = arith.truncf %353 : vector<2x16x16xf32> to vector<2x16x16xbf16>
    %363 = arith.truncf %357 : vector<2x16x16xf32> to vector<2x16x16xbf16>
    "tpu.trace_start"() <{level = 10 : i32, message = "bqd,bkd->bqk"}> : () -> ()
    %cst_193 = arith.constant dense<0.000000e+00> : vector<2x16x16xf32>
    %364 = tpu.matmul %362, %363, %cst_193 {dimension_numbers = #tpu.dot_dimension_numbers<[2], [2], [1], [1], [0, 0, 0, 1, 1, 1], [0], [0]>} : vector<2x16x16xbf16>, vector<2x16x16xbf16>, vector<2x16x16xf32> -> vector<2x16x16xf32>
    "tpu.trace_stop"() : () -> ()
    %cst_194 = arith.constant 2.500000e-01 : f32
    %365 = vector.broadcast %cst_194 : f32 to vector<2x16x16xf32>
    %366 = arith.mulf %364, %365 : vector<2x16x16xf32>
    %367 = vector.broadcast %100 : vector<1x16x16xf32> to vector<2x16x16xf32>
    %368 = arith.addf %366, %367 : vector<2x16x16xf32>
    %369 = vector.broadcast %106 : vector<2x1x16xf32> to vector<2x16x16xf32>
    %370 = arith.addf %368, %369 : vector<2x16x16xf32>
    %cst_195 = arith.constant dense<0xFF800000> : vector<2x16xf32>
    %371 = vector.multi_reduction <maximumf>, %370, %cst_195 [2] : vector<2x16x16xf32> to vector<2x16xf32>
    %372 = vector.shape_cast %371 : vector<2x16xf32> to vector<2x16x1xf32>
    %373 = vector.broadcast %372 : vector<2x16x1xf32> to vector<2x16x16xf32>
    %374 = arith.subf %370, %373 : vector<2x16x16xf32>
    %375 = math.exp %374 : vector<2x16x16xf32>
    %cst_196 = arith.constant dense<0.000000e+00> : vector<2x16xf32>
    %376 = vector.multi_reduction <add>, %375, %cst_196 [2] : vector<2x16x16xf32> to vector<2x16xf32>
    %377 = vector.shape_cast %376 : vector<2x16xf32> to vector<2x16x1xf32>
    %378 = tpu.reciprocal %377 {approx = true} : vector<2x16x1xf32> -> vector<2x16x1xf32>
    %379 = vector.broadcast %378 : vector<2x16x1xf32> to vector<2x16x16xf32>
    %380 = arith.mulf %375, %379 : vector<2x16x16xf32>
    %381 = arith.truncf %380 : vector<2x16x16xf32> to vector<2x16x16xbf16>
    %382 = arith.truncf %361 : vector<2x16x16xf32> to vector<2x16x16xbf16>
    "tpu.trace_start"() <{level = 10 : i32, message = "bqk,bkd->bqd"}> : () -> ()
    %cst_197 = arith.constant dense<0.000000e+00> : vector<2x16x16xf32>
    %383 = tpu.matmul %381, %382, %cst_197 {dimension_numbers = #tpu.dot_dimension_numbers<[2], [1], [1], [2], [0, 0, 0, 1, 1, 2], [0], [0]>} : vector<2x16x16xbf16>, vector<2x16x16xbf16>, vector<2x16x16xf32> -> vector<2x16x16xf32>
    "tpu.trace_stop"() : () -> ()
    %c1_198 = arith.constant 1 : index
    %c0_199 = arith.constant 0 : index
    %c0_200 = arith.constant 0 : index
    %384 = vector.load %arg11[%c1_198, %c0_199, %c0_200] : memref<2x192x128xbf16, #tpu.memory_space<vmem>>, vector<1x16x32xbf16>
    %385 = vector.shape_cast %384 : vector<1x16x32xbf16> to vector<16x32xbf16>
    %386 = vector.shape_cast %383 : vector<2x16x16xf32> to vector<32x16xf32>
    %387 = arith.truncf %386 : vector<32x16xf32> to vector<32x16xbf16>
    %cst_201 = arith.constant dense<0.000000e+00> : vector<32x32xf32>
    %388 = tpu.matmul %387, %385, %cst_201 {dimension_numbers = #tpu.dot_dimension_numbers<[1], [0], [0], [1], [0, 0, 1, 1], [], []>} : vector<32x16xbf16>, vector<16x32xbf16>, vector<32x32xf32> -> vector<32x32xf32>
    %389 = arith.addf %337, %388 : vector<32x32xf32>
    %c1_202 = arith.constant 1 : index
    %c1_203 = arith.constant 1 : index
    %c0_204 = arith.constant 0 : index
    %c0_205 = arith.constant 0 : index
    %c0_206 = arith.constant 0 : index
    %390 = vector.load %arg9[%c1_202, %c1_203, %c0_204, %c0_205, %c0_206] : memref<2x2x3x32x16xbf16, #tpu.memory_space<vmem>>, vector<1x1x1x32x16xbf16>
    %391 = vector.shape_cast %390 : vector<1x1x1x32x16xbf16> to vector<32x16xbf16>
    %c1_207 = arith.constant 1 : index
    %c1_208 = arith.constant 1 : index
    %c1_209 = arith.constant 1 : index
    %c0_210 = arith.constant 0 : index
    %c0_211 = arith.constant 0 : index
    %392 = vector.load %arg9[%c1_207, %c1_208, %c1_209, %c0_210, %c0_211] : memref<2x2x3x32x16xbf16, #tpu.memory_space<vmem>>, vector<1x1x1x32x16xbf16>
    %393 = vector.shape_cast %392 : vector<1x1x1x32x16xbf16> to vector<32x16xbf16>
    %c1_212 = arith.constant 1 : index
    %c1_213 = arith.constant 1 : index
    %c2_214 = arith.constant 2 : index
    %c0_215 = arith.constant 0 : index
    %c0_216 = arith.constant 0 : index
    %394 = vector.load %arg9[%c1_212, %c1_213, %c2_214, %c0_215, %c0_216] : memref<2x2x3x32x16xbf16, #tpu.memory_space<vmem>>, vector<1x1x1x32x16xbf16>
    %395 = vector.shape_cast %394 : vector<1x1x1x32x16xbf16> to vector<32x16xbf16>
    %c1_217 = arith.constant 1 : index
    %c3_218 = arith.constant 3 : index
    %c0_219 = arith.constant 0 : index
    %396 = vector.load %arg10[%c1_217, %c3_218, %c0_219] : memref<2x6x16xf32, #tpu.memory_space<vmem>>, vector<1x1x16xf32>
    %397 = vector.shape_cast %396 : vector<1x1x16xf32> to vector<1x16xf32>
    %c1_220 = arith.constant 1 : index
    %c4_221 = arith.constant 4 : index
    %c0_222 = arith.constant 0 : index
    %398 = vector.load %arg10[%c1_220, %c4_221, %c0_222] : memref<2x6x16xf32, #tpu.memory_space<vmem>>, vector<1x1x16xf32>
    %399 = vector.shape_cast %398 : vector<1x1x16xf32> to vector<1x16xf32>
    %c1_223 = arith.constant 1 : index
    %c5_224 = arith.constant 5 : index
    %c0_225 = arith.constant 0 : index
    %400 = vector.load %arg10[%c1_223, %c5_224, %c0_225] : memref<2x6x16xf32, #tpu.memory_space<vmem>>, vector<1x1x16xf32>
    %401 = vector.shape_cast %400 : vector<1x1x16xf32> to vector<1x16xf32>
    %cst_226 = arith.constant dense<0.000000e+00> : vector<32x16xf32>
    %402 = tpu.matmul %336, %391, %cst_226 {dimension_numbers = #tpu.dot_dimension_numbers<[1], [0], [0], [1], [0, 0, 1, 1], [], []>} : vector<32x32xbf16>, vector<32x16xbf16>, vector<32x16xf32> -> vector<32x16xf32>
    %403 = vector.broadcast %397 : vector<1x16xf32> to vector<32x16xf32>
    %404 = arith.addf %402, %403 : vector<32x16xf32>
    %405 = vector.shape_cast %404 : vector<32x16xf32> to vector<2x16x16xf32>
    %cst_227 = arith.constant dense<0.000000e+00> : vector<32x16xf32>
    %406 = tpu.matmul %336, %393, %cst_227 {dimension_numbers = #tpu.dot_dimension_numbers<[1], [0], [0], [1], [0, 0, 1, 1], [], []>} : vector<32x32xbf16>, vector<32x16xbf16>, vector<32x16xf32> -> vector<32x16xf32>
    %407 = vector.broadcast %399 : vector<1x16xf32> to vector<32x16xf32>
    %408 = arith.addf %406, %407 : vector<32x16xf32>
    %409 = vector.shape_cast %408 : vector<32x16xf32> to vector<2x16x16xf32>
    %cst_228 = arith.constant dense<0.000000e+00> : vector<32x16xf32>
    %410 = tpu.matmul %336, %395, %cst_228 {dimension_numbers = #tpu.dot_dimension_numbers<[1], [0], [0], [1], [0, 0, 1, 1], [], []>} : vector<32x32xbf16>, vector<32x16xbf16>, vector<32x16xf32> -> vector<32x16xf32>
    %411 = vector.broadcast %401 : vector<1x16xf32> to vector<32x16xf32>
    %412 = arith.addf %410, %411 : vector<32x16xf32>
    %413 = vector.shape_cast %412 : vector<32x16xf32> to vector<2x16x16xf32>
    %414 = arith.truncf %405 : vector<2x16x16xf32> to vector<2x16x16xbf16>
    %415 = arith.truncf %409 : vector<2x16x16xf32> to vector<2x16x16xbf16>
    "tpu.trace_start"() <{level = 10 : i32, message = "bqd,bkd->bqk"}> : () -> ()
    %cst_229 = arith.constant dense<0.000000e+00> : vector<2x16x16xf32>
    %416 = tpu.matmul %414, %415, %cst_229 {dimension_numbers = #tpu.dot_dimension_numbers<[2], [2], [1], [1], [0, 0, 0, 1, 1, 1], [0], [0]>} : vector<2x16x16xbf16>, vector<2x16x16xbf16>, vector<2x16x16xf32> -> vector<2x16x16xf32>
    "tpu.trace_stop"() : () -> ()
    %cst_230 = arith.constant 2.500000e-01 : f32
    %417 = vector.broadcast %cst_230 : f32 to vector<2x16x16xf32>
    %418 = arith.mulf %416, %417 : vector<2x16x16xf32>
    %419 = vector.broadcast %100 : vector<1x16x16xf32> to vector<2x16x16xf32>
    %420 = arith.addf %418, %419 : vector<2x16x16xf32>
    %421 = vector.broadcast %106 : vector<2x1x16xf32> to vector<2x16x16xf32>
    %422 = arith.addf %420, %421 : vector<2x16x16xf32>
    %cst_231 = arith.constant dense<0xFF800000> : vector<2x16xf32>
    %423 = vector.multi_reduction <maximumf>, %422, %cst_231 [2] : vector<2x16x16xf32> to vector<2x16xf32>
    %424 = vector.shape_cast %423 : vector<2x16xf32> to vector<2x16x1xf32>
    %425 = vector.broadcast %424 : vector<2x16x1xf32> to vector<2x16x16xf32>
    %426 = arith.subf %422, %425 : vector<2x16x16xf32>
    %427 = math.exp %426 : vector<2x16x16xf32>
    %cst_232 = arith.constant dense<0.000000e+00> : vector<2x16xf32>
    %428 = vector.multi_reduction <add>, %427, %cst_232 [2] : vector<2x16x16xf32> to vector<2x16xf32>
    %429 = vector.shape_cast %428 : vector<2x16xf32> to vector<2x16x1xf32>
    %430 = tpu.reciprocal %429 {approx = true} : vector<2x16x1xf32> -> vector<2x16x1xf32>
    %431 = vector.broadcast %430 : vector<2x16x1xf32> to vector<2x16x16xf32>
    %432 = arith.mulf %427, %431 : vector<2x16x16xf32>
    %433 = arith.truncf %432 : vector<2x16x16xf32> to vector<2x16x16xbf16>
    %434 = arith.truncf %413 : vector<2x16x16xf32> to vector<2x16x16xbf16>
    "tpu.trace_start"() <{level = 10 : i32, message = "bqk,bkd->bqd"}> : () -> ()
    %cst_233 = arith.constant dense<0.000000e+00> : vector<2x16x16xf32>
    %435 = tpu.matmul %433, %434, %cst_233 {dimension_numbers = #tpu.dot_dimension_numbers<[2], [1], [1], [2], [0, 0, 0, 1, 1, 2], [0], [0]>} : vector<2x16x16xbf16>, vector<2x16x16xbf16>, vector<2x16x16xf32> -> vector<2x16x16xf32>
    "tpu.trace_stop"() : () -> ()
    %c1_234 = arith.constant 1 : index
    %c16_235 = arith.constant 16 : index
    %c0_236 = arith.constant 0 : index
    %436 = vector.load %arg11[%c1_234, %c16_235, %c0_236] : memref<2x192x128xbf16, #tpu.memory_space<vmem>>, vector<1x16x32xbf16>
    %437 = vector.shape_cast %436 : vector<1x16x32xbf16> to vector<16x32xbf16>
    %438 = vector.shape_cast %435 : vector<2x16x16xf32> to vector<32x16xf32>
    %439 = arith.truncf %438 : vector<32x16xf32> to vector<32x16xbf16>
    %cst_237 = arith.constant dense<0.000000e+00> : vector<32x32xf32>
    %440 = tpu.matmul %439, %437, %cst_237 {dimension_numbers = #tpu.dot_dimension_numbers<[1], [0], [0], [1], [0, 0, 1, 1], [], []>} : vector<32x16xbf16>, vector<16x32xbf16>, vector<32x32xf32> -> vector<32x32xf32>
    %441 = arith.addf %389, %440 : vector<32x32xf32>
    %442 = arith.addf %299, %441 : vector<32x32xf32>
    %443 = vector.broadcast %309 : vector<1x32xf32> to vector<32x32xf32>
    %444 = arith.addf %442, %443 : vector<32x32xf32>
    %cst_238 = arith.constant dense<0.000000e+00> : vector<32xf32>
    %445 = vector.multi_reduction <add>, %444, %cst_238 [1] : vector<32x32xf32> to vector<32xf32>
    %446 = vector.shape_cast %445 : vector<32xf32> to vector<32x1xf32>
    %cst_239 = arith.constant 3.200000e+01 : f32
    %447 = vector.broadcast %cst_239 : f32 to vector<32x1xf32>
    %448 = arith.divf %446, %447 : vector<32x1xf32>
    %449 = vector.broadcast %448 : vector<32x1xf32> to vector<32x32xf32>
    %450 = arith.subf %444, %449 : vector<32x32xf32>
    %451 = arith.mulf %450, %450 : vector<32x32xf32>
    %cst_240 = arith.constant dense<0.000000e+00> : vector<32xf32>
    %452 = vector.multi_reduction <add>, %451, %cst_240 [1] : vector<32x32xf32> to vector<32xf32>
    %453 = vector.shape_cast %452 : vector<32xf32> to vector<32x1xf32>
    %cst_241 = arith.constant 3.200000e+01 : f32
    %454 = vector.broadcast %cst_241 : f32 to vector<32x1xf32>
    %455 = arith.divf %453, %454 : vector<32x1xf32>
    %456 = vector.broadcast %448 : vector<32x1xf32> to vector<32x32xf32>
    %457 = arith.subf %444, %456 : vector<32x32xf32>
    %cst_242 = arith.constant 9.99999974E-6 : f32
    %458 = vector.broadcast %cst_242 : f32 to vector<32x1xf32>
    %459 = arith.addf %455, %458 : vector<32x1xf32>
    %460 = math.rsqrt %459 : vector<32x1xf32>
    %461 = vector.broadcast %460 : vector<32x1xf32> to vector<32x32xf32>
    %462 = arith.mulf %457, %461 : vector<32x32xf32>
    %463 = vector.broadcast %305 : vector<1x32xf32> to vector<32x32xf32>
    %464 = arith.mulf %462, %463 : vector<32x32xf32>
    %465 = vector.broadcast %307 : vector<1x32xf32> to vector<32x32xf32>
    %466 = arith.addf %464, %465 : vector<32x32xf32>
    %c1_243 = arith.constant 1 : index
    %c32_244 = arith.constant 32 : index
    %c0_245 = arith.constant 0 : index
    %467 = vector.load %arg11[%c1_243, %c32_244, %c0_245] : memref<2x192x128xbf16, #tpu.memory_space<vmem>>, vector<1x32x128xbf16>
    %468 = vector.shape_cast %467 : vector<1x32x128xbf16> to vector<32x128xbf16>
    %c1_246 = arith.constant 1 : index
    %c64_247 = arith.constant 64 : index
    %c0_248 = arith.constant 0 : index
    %469 = vector.load %arg11[%c1_246, %c64_247, %c0_248] : memref<2x192x128xbf16, #tpu.memory_space<vmem>>, vector<1x128x32xbf16>
    %470 = vector.shape_cast %469 : vector<1x128x32xbf16> to vector<128x32xbf16>
    %471 = arith.truncf %466 : vector<32x32xf32> to vector<32x32xbf16>
    %cst_249 = arith.constant dense<0.000000e+00> : vector<32x128xf32>
    %472 = tpu.matmul %471, %468, %cst_249 {dimension_numbers = #tpu.dot_dimension_numbers<[1], [0], [0], [1], [0, 0, 1, 1], [], []>} : vector<32x32xbf16>, vector<32x128xbf16>, vector<32x128xf32> -> vector<32x128xf32>
    %473 = vector.broadcast %313 : vector<1x128xf32> to vector<32x128xf32>
    %474 = arith.addf %472, %473 : vector<32x128xf32>
    %cst_250 = arith.constant 5.000000e-01 : f32
    %475 = vector.broadcast %cst_250 : f32 to vector<32x128xf32>
    %476 = arith.mulf %475, %474 : vector<32x128xf32>
    %cst_251 = arith.constant 4.471500e-02 : f32
    %477 = vector.broadcast %cst_251 : f32 to vector<32x128xf32>
    %478 = arith.mulf %477, %474 : vector<32x128xf32>
    %479 = arith.mulf %478, %474 : vector<32x128xf32>
    %480 = arith.mulf %479, %474 : vector<32x128xf32>
    %481 = arith.addf %474, %480 : vector<32x128xf32>
    %cst_252 = arith.constant 0.797884583 : f32
    %482 = vector.broadcast %cst_252 : f32 to vector<32x128xf32>
    %483 = arith.mulf %482, %481 : vector<32x128xf32>
    %484 = math.tanh %483 : vector<32x128xf32>
    %cst_253 = arith.constant 1.000000e+00 : f32
    %485 = vector.broadcast %cst_253 : f32 to vector<32x128xf32>
    %486 = arith.addf %485, %484 : vector<32x128xf32>
    %487 = arith.mulf %476, %486 : vector<32x128xf32>
    %488 = arith.truncf %487 : vector<32x128xf32> to vector<32x128xbf16>
    %cst_254 = arith.constant dense<0.000000e+00> : vector<32x32xf32>
    %489 = tpu.matmul %488, %470, %cst_254 {dimension_numbers = #tpu.dot_dimension_numbers<[1], [0], [0], [1], [0, 0, 1, 1], [], []>} : vector<32x128xbf16>, vector<128x32xbf16>, vector<32x32xf32> -> vector<32x32xf32>
    %490 = vector.broadcast %311 : vector<1x32xf32> to vector<32x32xf32>
    %491 = arith.addf %489, %490 : vector<32x32xf32>
    %492 = arith.addf %444, %491 : vector<32x32xf32>
    %c2_255 = arith.constant 2 : index
    %c0_256 = arith.constant 0 : index
    %c0_257 = arith.constant 0 : index
    %493 = vector.load %arg8[%c2_255, %c0_256, %c0_257] : memref<3x8x128xf32, #tpu.memory_space<vmem>>, vector<1x1x32xf32>
    %494 = vector.shape_cast %493 : vector<1x1x32xf32> to vector<1x32xf32>
    %c2_258 = arith.constant 2 : index
    %c1_259 = arith.constant 1 : index
    %c0_260 = arith.constant 0 : index
    %495 = vector.load %arg8[%c2_258, %c1_259, %c0_260] : memref<3x8x128xf32, #tpu.memory_space<vmem>>, vector<1x1x32xf32>
    %496 = vector.shape_cast %495 : vector<1x1x32xf32> to vector<1x32xf32>
    %cst_261 = arith.constant dense<0.000000e+00> : vector<32xf32>
    %497 = vector.multi_reduction <add>, %492, %cst_261 [1] : vector<32x32xf32> to vector<32xf32>
    %498 = vector.shape_cast %497 : vector<32xf32> to vector<32x1xf32>
    %cst_262 = arith.constant 3.200000e+01 : f32
    %499 = vector.broadcast %cst_262 : f32 to vector<32x1xf32>
    %500 = arith.divf %498, %499 : vector<32x1xf32>
    %501 = vector.broadcast %500 : vector<32x1xf32> to vector<32x32xf32>
    %502 = arith.subf %492, %501 : vector<32x32xf32>
    %503 = arith.mulf %502, %502 : vector<32x32xf32>
    %cst_263 = arith.constant dense<0.000000e+00> : vector<32xf32>
    %504 = vector.multi_reduction <add>, %503, %cst_263 [1] : vector<32x32xf32> to vector<32xf32>
    %505 = vector.shape_cast %504 : vector<32xf32> to vector<32x1xf32>
    %cst_264 = arith.constant 3.200000e+01 : f32
    %506 = vector.broadcast %cst_264 : f32 to vector<32x1xf32>
    %507 = arith.divf %505, %506 : vector<32x1xf32>
    %508 = vector.broadcast %500 : vector<32x1xf32> to vector<32x32xf32>
    %509 = arith.subf %492, %508 : vector<32x32xf32>
    %cst_265 = arith.constant 9.99999974E-6 : f32
    %510 = vector.broadcast %cst_265 : f32 to vector<32x1xf32>
    %511 = arith.addf %507, %510 : vector<32x1xf32>
    %512 = math.rsqrt %511 : vector<32x1xf32>
    %513 = vector.broadcast %512 : vector<32x1xf32> to vector<32x32xf32>
    %514 = arith.mulf %509, %513 : vector<32x32xf32>
    %515 = vector.broadcast %494 : vector<1x32xf32> to vector<32x32xf32>
    %516 = arith.mulf %514, %515 : vector<32x32xf32>
    %517 = vector.broadcast %496 : vector<1x32xf32> to vector<32x32xf32>
    %518 = arith.addf %516, %517 : vector<32x32xf32>
    %519 = arith.truncf %518 : vector<32x32xf32> to vector<32x32xbf16>
    %c0_266 = arith.constant 0 : index
    %c0_267 = arith.constant 0 : index
    %520 = vector.load %arg5[%c0_266, %c0_267] : memref<32x128xbf16, #tpu.memory_space<vmem>>, vector<32x128xbf16>
    %cst_268 = arith.constant dense<0.000000e+00> : vector<32x128xf32>
    %521 = tpu.matmul %519, %520, %cst_268 {dimension_numbers = #tpu.dot_dimension_numbers<[1], [0], [0], [1], [0, 0, 1, 1], [], []>} : vector<32x32xbf16>, vector<32x128xbf16>, vector<32x128xf32> -> vector<32x128xf32>
    %c0_269 = arith.constant 0 : index
    %c0_270 = arith.constant 0 : index
    %522 = vector.load %arg12[%c0_269, %c0_270] : memref<32x128xf32, #tpu.memory_space<vmem>>, vector<32x128xf32>
    tpu.vector_store %arg12[%c0_269, %c0_270], %521 {strides = array<i32>} : memref<32x128xf32, #tpu.memory_space<vmem>>, vector<32x128xf32>,
    return
  }
}

</mosaic_0001>

<bundles_post_ra>
// kernel: _forward.1
= control target key start
LH: loop header
LB: loop body
LE: loop exit
PB: predicated region body
PF: predicated region fallthrough
CT: control target
= control target key end

     0   :  { %v5176_v2 = vmov 0   ;;  %v5177_v3 = vmov 0.0   ;;  %vm151_vm0 = vcmask 130048   ;;  %vm5178_vm1 = vmmov 0   ;;  %s6164_s0 = inlined_call_operand.vmem [shape: s32[16,1], index: 0, kind: input, shape index: {}]   ;;  %s6165_s1 = inlined_call_operand.vmem [shape: f32[2,16], index: 1, kind: input, shape index: {}]   ;;  %s6166_s2 = inlined_call_operand.vmem [shape: f32[2,16], index: 2, kind: input, shape index: {}]   ;;  %s6167_s3 = inlined_call_operand.vmem [shape: f32[32,32], index: 3, kind: input, shape index: {}]   ;;  %s6168_s4 = inlined_call_operand.vmem [shape: bf16[64,32], index: 4, kind: input, shape index: {}]   ;;  %s6169_s5 = inlined_call_operand.vmem [shape: bf16[32,128], index: 5, kind: input, shape index: {}]   ;;  %s6170_s6 = inlined_call_operand.vmem [shape: bf16[16,128], index: 6, kind: input, shape index: {}]   ;;  %s6171_s7 = inlined_call_operand.vmem [shape: bf16[1024,32], index: 7, kind: input, shape index: {}]   ;;  %s6172_s8 = inlined_call_operand.vmem [shape: f32[3,8,128], index: 8, kind: input, shape index: {}]   ;;  %s6173_s9 = inlined_call_operand.vmem [shape: bf16[2,2,3,32,16], index: 9, kind: input, shape index: {}]   ;;  %s6174_s10 = inlined_call_operand.vmem [shape: f32[2,6,16], index: 10, kind: input, shape index: {}]   ;;  %s6175_s11 = inlined_call_operand.vmem [shape: bf16[2,192,128], index: 11, kind: input, shape index: {}]   ;;  %s6176_s12 = inlined_call_operand.hbm [shape: f32[32,128], index: 12, kind: output, shape index: {}]  }
   0x1   :  { %v43_v0 = vld [vmem:[%s6164_s0] sm:$0xff]  ;;  %4910 = vset.pattern.permute.xlu0 %v5176_v2  ;;  %4608 = vmatprep.subr.bf16.mxu1 %v5177_v3  ;;  %v44_v6 = vld [vmem:[%s6164_s0 + $0x8] sm:$0xff]  ;;  %v4914_v9 = vld [vmem:[%s6168_s4 + $0x10] sm:$0xff]  }
   0x2   :  { %v4911_v1 = vld [vmem:[%s6170_s6] sm:$0xff]   ;;  %48 = vperm.xlu0 %4910, %v43_v0   ;;  %4610 = vmatprep.mubr.msk.bf16.mxu1 %vm5178_vm1, %v5177_v3  ;;  %v4913_v8 = vld [vmem:[%s6168_s4 + $0x8] sm:$0xff]   ;;  %v4915_v13 = vld [vmem:[%s6168_s4 + $0x18] sm:$0xff]  }
   0x3   :  { %v137_v4 = vld [vmem:[%s6165_s1] sm:$0x3]  ;;  %4609 = vmatpush3.bf16.msra.mxu1 %v4911_v1  ;;  %4596 = vmatprep.subr.bf16.mxu0 %v5177_v3  ;;  %v4920_v12 = vld [vmem:[%s6171_s7 + $0x48] sm:$0xff]   ;;  %v4924_v16 = vld [vmem:[%s6171_s7 + $0x50] sm:$0xff]  }
   0x4   :  { %v138_v5 = vpack.c.bf16 %v137_v4, %v137_v4  ;;  %v4912_v7 = vld [vmem:[%s6168_s4] sm:$0xff]   ;;  %4604 = vmatprep.mubr.msk.bf16.mxu0 %vm5178_vm1, %v5177_v3  ;;  %v4922_v14 = vld [vmem:[%s6171_s7 + $0x8] sm:$0xff]   ;;  %v4926_v17 = vld [vmem:[%s6171_s7 + $0x10] sm:$0xff]  }
   0x5   :  { %4597 = vmatpush3.bf16.msra.mxu0 %v4912_v7  ;;  %v4916_v10 = vld [vmem:[%s6171_s7 + $0x40] sm:$0xff]   ;;  %v4928_v18 = vld [vmem:[%s6171_s7 + $0x58] sm:$0xff]  }
   0x6   :  { %4611 = vmatmul.mubr.msk.bf16.vlgmr.msra.gmra.mrb[0].mxu1 %vm151_vm0, %v138_v5  ;;  %51 = vperm.xlu0 %4910, %v44_v6   ;;  %v4918_v11 = vld [vmem:[%s6171_s7] sm:$0xff]   ;;  %v4930_v19 = vld [vmem:[%s6171_s7 + $0x18] sm:$0xff]  }
   0x7   :  { %4598 = vmatprep.subr.bf16.mxu0 %v5177_v3  ;;  %4384 = vmatprep.subr.bf16.mxu1 %v4916_v10  ;;  %v4917_v15 = vld [vmem:[%s6171_s7 + $0xc0] sm:$0xff]  }
   0x8   :  { %4385 = vmatpush3.bf16.msra.mxu1 %v4918_v11  ;;  %v4932_v20 = vld [vmem:[%s6171_s7 + $0x60] sm:$0xff]  }
   0x9   :  { %4599 = vmatpush3.bf16.msra.mxu0 %v4913_v8  ;;  %4386 = vmatprep.subr.bf16.mxu1 %v4920_v12  ;;  %v4934_v21 = vld [vmem:[%s6171_s7 + $0x20] sm:$0xff]  }
   0xa   :  { %4600 = vmatprep.subr.bf16.mxu0 %v5177_v3 }
   0xc   :  { %4387 = vmatpush3.bf16.msra.mxu1 %v4922_v14 }
   0xd   :  { %4601 = vmatpush3.bf16.msra.mxu0 %v4914_v9  ;;  %4388 = vmatprep.subr.bf16.mxu1 %v4924_v16 }
   0xe   :  { %4602 = vmatprep.subr.bf16.mxu0 %v5177_v3 }
  0x10   :  { %4389 = vmatpush3.bf16.msra.mxu1 %v4926_v17 }
  0x11   :  { %4603 = vmatpush3.bf16.msra.mxu0 %v4915_v13  ;;  %4390 = vmatprep.subr.bf16.mxu1 %v4928_v18 }
  0x12   :  { %4406 = vmatprep.subr.bf16.mxu0 %v4917_v15 }
  0x14   :  { %4391 = vmatpush3.bf16.msra.mxu1 %v4930_v19 }
  0x15   :  { %4392 = vmatprep.subr.bf16.mxu1 %v4932_v20 }
  0x16   :  { %17 = vsyncpa [#allocation3], 0  ;;  %v4936_v22 = vld [vmem:[%s6171_s7 + $0x68] sm:$0xff]   ;;  %v4940_v24 = vld [vmem:[%s6171_s7 + $0x70] sm:$0xff]   ;;  %v45_v29 = vlaneseq  ;;  %vm90_vm4 = vcmask 523264   ;;  %s5181_s22 = smov [#allocation2]  }
  0x17   :  { %v4938_v23 = vld [vmem:[%s6171_s7 + $0x28] sm:$0xff]   ;;  %v4942_v25 = vld [vmem:[%s6171_s7 + $0x30] sm:$0xff]   ;;  %v4944_v26 = vld [vmem:[%s6171_s7 + $0x78] sm:$0xff]   ;;  %s4053_s23 = sshll.u32 %s5181_s22, 4  ;;  %s4054_s23 = int_to_ptr.vmem [resolvable:$true] %s4053_s23 }
  0x18   :  { %4393 = vmatpush3.bf16.msra.mxu1 %v4934_v21  ;;  %v4946_v27 = vld [vmem:[%s6171_s7 + $0x38] sm:$0xff]   ;;  %v4948_v28 = vld [vmem:[%s6171_s7 + $0x140] sm:$0xff]   ;;  %v5337_v30 = vand.u32 127, %v45_v29  ;;  %v4921_v37 = vld [vmem:[%s6171_s7 + $0xc8] sm:$0xff]   ;;  %v5394_v58 = vshrl.u32 %v45_v29, 7  ;;  %p5157_p1 = scmp.lt.s32.totalorder %s4054_s23, %s4054_s23 }
  0x19   :  { %4394 = vmatprep.subr.bf16.mxu1 %v4936_v22  ;;  %v4919_v35 = vld [vmem:[%s6171_s7 + $0x80] sm:$0xff]   ;;  %v4923_v38 = vld [vmem:[%s6171_s7 + $0x88] sm:$0xff]   ;;  %v4925_v39 = vld [vmem:[%s6171_s7 + $0xd0] sm:$0xff]  }
  0x1a   :  { %v4927_v40 = vld [vmem:[%s6171_s7 + $0x90] sm:$0xff]   ;;  %v4929_v41 = vld [vmem:[%s6171_s7 + $0xd8] sm:$0xff]   ;;  %v4933_v43 = vld [vmem:[%s6171_s7 + $0xe0] sm:$0xff]   ;;  %v5397_v59 = vadd.s32 8, %v5394_v58  ;;  %v5400_v60 = vsub.s32 0, %v5394_v58  ;;  %v202_v61 = vsub.s32 1, %v5394_v58 }
  0x1b   :  { %v4931_v42 = vld [vmem:[%s6171_s7 + $0x98] sm:$0xff]   ;;  %v4935_v44 = vld [vmem:[%s6171_s7 + $0xa0] sm:$0xff]   ;;  %v4937_v45 = vld [vmem:[%s6171_s7 + $0xe8] sm:$0xff]   ;;  %vm215_vm5 = vcmp.eq.s32.totalorder %v5394_v58, 1  ;;  %vm231_vm7 = vcmp.eq.s32.totalorder %v5394_v58, 3  ;;  %vm207_vm9 = vcmp.eq.s32.totalorder %v5394_v58, 0 }
  0x1c   :  { %4395 = vmatpush3.bf16.msra.mxu1 %v4938_v23  ;;  %v4939_v46 = vld [vmem:[%s6171_s7 + $0xa8] sm:$0xff]   ;;  %v4941_v47 = vld [vmem:[%s6171_s7 + $0xf0] sm:$0xff]   ;;  %v4945_v49 = vld [vmem:[%s6171_s7 + $0xf8] sm:$0xff]   ;;  %vm218_vm6 = vcmp.eq.s32.totalorder %v5397_v59, 9  ;;  %vm234_vm8 = vcmp.eq.s32.totalorder %v5397_v59, 11  ;;  %vm210_vm10 = vcmp.eq.s32.totalorder %v5397_v59, 8 }
  0x1d   :  { %4396 = vmatprep.subr.bf16.mxu1 %v4940_v24  ;;  %v4943_v48 = vld [vmem:[%s6171_s7 + $0xb0] sm:$0xff]   ;;  %v4947_v50 = vld [vmem:[%s6171_s7 + $0xb8] sm:$0xff]   ;;  %v4949_v51 = vld [vmem:[%s6171_s7 + $0x1c0] sm:$0xff]   ;;  %vm223_vm12 = vcmp.eq.s32.totalorder %v5394_v58, 2  ;;  %vm226_vm13 = vcmp.eq.s32.totalorder %v5397_v59, 10  ;;  %vm247_vm15 = vcmp.eq.s32.totalorder %v5394_v58, 5 }
  0x1e   :  { %v4070_v52 = vld [vmem:[%s6172_s8 + $0x12] ss:$0 sm:$0xff]  ;;  %vm5409_vm11 = vmpackc.low %vm218_vm6, %vm215_vm5  ;;  %vm266_vm5 = vcmp.eq.s32.totalorder %v5397_v59, 15  ;;  %v4950_v4 = vld [vmem:[%s6171_s7 + $0x100] sm:$0xff]  }
  0x1f   :  { %vm4143_vm14 = vmpackc.low %vm234_vm8, %vm231_vm7  ;;  %v4951_v5 = vld [vmem:[%s6171_s7 + $0x180] sm:$0xff]   ;;  %v4952_v6 = vld [vmem:[%s6171_s7 + $0x148] sm:$0xff]  }
  0x20   :  { %4397 = vmatpush3.bf16.msra.mxu1 %v4942_v25  ;;  %vm4146_vm6 = vmpackc.low %vm226_vm13, %vm223_vm12  ;;  %v4953_v7 = vld [vmem:[%s6171_s7 + $0x1c8] sm:$0xff]   ;;  %v4956_v10 = vld [vmem:[%s6171_s7 + $0x150] sm:$0xff]   ;;  %vm258_vm12 = vcmp.eq.s32.totalorder %v5397_v59, 14 }
  0x21   :  { %4398 = vmatprep.subr.bf16.mxu1 %v4944_v26  ;;  %v4954_v8 = vld [vmem:[%s6171_s7 + $0x108] sm:$0xff]   ;;  %v4957_v11 = vld [vmem:[%s6171_s7 + $0x1d0] sm:$0xff]   ;;  %v4960_v14 = vld [vmem:[%s6171_s7 + $0x158] sm:$0xff]  }
  0x22   :  { %v4955_v9 = vld [vmem:[%s6171_s7 + $0x188] sm:$0xff]   ;;  %v4958_v12 = vld [vmem:[%s6171_s7 + $0x110] sm:$0xff]   ;;  %v4961_v15 = vld [vmem:[%s6171_s7 + $0x1d8] sm:$0xff]  }
  0x23   :  { %v4959_v13 = vld [vmem:[%s6171_s7 + $0x190] sm:$0xff]   ;;  %v4962_v16 = vld [vmem:[%s6171_s7 + $0x118] sm:$0xff]   ;;  %v4964_v18 = vld [vmem:[%s6171_s7 + $0x160] sm:$0xff]  }
  0x24   :  { %4399 = vmatpush3.bf16.msra.mxu1 %v4946_v27  ;;  %v4963_v17 = vld [vmem:[%s6171_s7 + $0x198] sm:$0xff]   ;;  %v4965_v19 = vld [vmem:[%s6171_s7 + $0x1e0] sm:$0xff]   ;;  %v4968_v22 = vld [vmem:[%s6171_s7 + $0x168] sm:$0xff]  }
  0x25   :  { %4428 = vmatprep.subr.bf16.mxu1 %v4948_v28  ;;  %v4966_v20 = vld [vmem:[%s6171_s7 + $0x120] sm:$0xff]   ;;  %v4969_v23 = vld [vmem:[%s6171_s7 + $0x1e8] sm:$0xff]   ;;  %v4972_v26 = vld [vmem:[%s6171_s7 + $0x170] sm:$0xff]  }
  0x26   :  { %v4967_v21 = vld [vmem:[%s6171_s7 + $0x1a0] sm:$0xff]   ;;  %v4970_v24 = vld [vmem:[%s6171_s7 + $0x128] sm:$0xff]   ;;  %v4973_v27 = vld [vmem:[%s6171_s7 + $0x1f0] sm:$0xff]  }
  0x27   :  { %v4971_v25 = vld [vmem:[%s6171_s7 + $0x1a8] sm:$0xff]   ;;  %v4974_v28 = vld [vmem:[%s6171_s7 + $0x130] sm:$0xff]  }
  0x28   :  { %v4975_v29 = vld [vmem:[%s6171_s7 + $0x1b0] sm:$0xff]  }
  0x81   :  { %v49_v31 = vpop.permute.xlu0 %48 }
  0x82   :  { %vm53_vm2 = vcmp.eq.s32.totalorder %v5337_v30, %v49_v31  ;;  %v4976_v31 = vld [vmem:[%s6171_s7 + $0x178] sm:$0xff]  }
  0x83   :  { %v55_v32 = vsel %vm53_vm2, 1.0, %v5177_v3  ;;  %vm250_vm2 = vcmp.eq.s32.totalorder %v5397_v59, 13 }
  0x84   :  { %vm4149_vm7 = vmpackc.low %vm250_vm2, %vm247_vm15  ;;  %vm1000_vm15 = vcmask 261120   ;;  %vm963_vm2 = vcmp.le.s32.totalorder %v5337_v30, %v5394_v58 }
  0x85   :  { %v52_v33 = vpop.permute.xlu0 %51 }
  0x86   :  { %vm54_vm3 = vcmp.eq.s32.totalorder %v5337_v30, %v52_v33  ;;  %v4978_v33 = vld [vmem:[%s6171_s7 + $0x138] sm:$0xff]  }
  0x87   :  { %v56_v34 = vsel %vm54_vm3, 1.0, %v5177_v3  ;;  %vm4140_vm3 = vmpackc.low %vm210_vm10, %vm207_vm9  ;;  %vm239_vm9 = vcmp.eq.s32.totalorder %v5394_v58, 4  ;;  %vm242_vm10 = vcmp.eq.s32.totalorder %v5397_v59, 12 }
  0x88   :  { %v57_v36 = vpack.c.bf16 %v56_v34, %v55_v32  ;;  %v4977_v32 = vld [vmem:[%s6171_s7 + $0x1f8] sm:$0xff]   ;;  %vm4152_vm13 = vmpackc.low %vm242_vm10, %vm239_vm9 }
  0x89   :  { %v4979_v34 = vld [vmem:[%s6171_s7 + $0x1b8] sm:$0xff]  }
  0x8a   :  { %4605 = vmatmul.mubr.msk.bf16.vlgmr.msra.gmra.mrb[0].mxu0 %vm90_vm4, %v57_v36  ;;  %vm263_vm4 = vcmp.eq.s32.totalorder %v5394_v58, 7 }
  0x8b   :  { %4407 = vmatpush3.bf16.msra.mxu0 %v4919_v35  ;;  %vm4155_vm8 = vmpackc.low %vm266_vm5, %vm263_vm4  ;;  %v956_v35 = vld [vmem:[%s6167_s3 + $0x8] sm:$0xff] }
  0x8c   :  { %4408 = vmatprep.subr.bf16.mxu0 %v4921_v37 }
  0x8f   :  { %4409 = vmatpush3.bf16.msra.mxu0 %v4923_v38 }
  0x90   :  { %4410 = vmatprep.subr.bf16.mxu0 %v4925_v39 }
  0x93   :  { %4411 = vmatpush3.bf16.msra.mxu0 %v4927_v40 }
  0x94   :  { %4412 = vmatprep.subr.bf16.mxu0 %v4929_v41 }
  0x97   :  { %4413 = vmatpush3.bf16.msra.mxu0 %v4931_v42 }
  0x98   :  { %4414 = vmatprep.subr.bf16.mxu0 %v4933_v43 }
  0x9b   :  { %4415 = vmatpush3.bf16.msra.mxu0 %v4935_v44 }
  0x9c   :  { %4416 = vmatprep.subr.bf16.mxu0 %v4937_v45 }
  0x9f   :  { %4417 = vmatpush3.bf16.msra.mxu0 %v4939_v46 }
  0xa0   :  { %4418 = vmatprep.subr.bf16.mxu0 %v4941_v47 }
  0xa3   :  { %4419 = vmatpush3.bf16.msra.mxu0 %v4943_v48 }
  0xa4   :  { %4420 = vmatprep.subr.bf16.mxu0 %v4945_v49 }
  0xa7   :  { %4421 = vmatpush3.bf16.msra.mxu0 %v4947_v50 }
  0xa8   :  { %4450 = vmatprep.subr.bf16.mxu0 %v4949_v51 }
  0xd9   :  { %v189_v53 = vpop.f32.mrb[0].mxu1 }
  0xda   :  { %v190_v54 = vadd.f32 %v4070_v52, %v189_v53  ;;  %v4612_v55 = vpop.f32.mrb[1].mxu1 }
  0xdb   :  { %v192_v56 = vpop.f32.mrb[2].mxu1 }
  0xdc   :  { %5030 = vtanh.f32 %v190_v54  ;;  %v4613_v57 = vpop.f32.mrb[3].mxu1 }
  0xe6   :  { %v5031_v62 = vpop.eup %5030 }
  0xe7   :  { %v199_v0 = vrot.slane %v5031_v62, %v5400_v60  ;;  %v203_v1 = vrot.slane %v5031_v62, %v202_v61 }
  0xe9   :  { %v5420_v2 = vpack.c.bf16 %v203_v1, %v199_v0 }
  0xeb   :  { %4139 = vmatprep.mubr.msk.bf16.mxu1 %vm5409_vm11, %v5420_v2  ;;  %4145 = vmatprep.mubr.msk.bf16.mxu0 %vm4143_vm14, %v5420_v2  ;;  %vm255_vm11 = vcmp.eq.s32.totalorder %v5394_v58, 6 }
  0xec   :  { %4142 = vmatmul.mubr.msk.bf16.vlgmr.msra.gmra.mrb[4].mxu1 %vm4140_vm3, %v5420_v2  ;;  %4148 = vmatmul.mubr.msk.bf16.vlgmr.msra.gmra.mrb[4].mxu0 %vm4146_vm6, %v5420_v2  ;;  %vm4158_vm14 = vmpackc.low %vm258_vm12, %vm255_vm11  ;;  %vm964_vm3 = vcmp.le.s32.totalorder %v5337_v30, %v5397_v59 }
  0xed   :  { %4429 = vmatpush3.bf16.msra.mxu1 %v4950_v4  ;;  %4451 = vmatpush3.bf16.msra.mxu0 %v4951_v5 }
  0xee   :  { %4151 = vmatprep.mubr.msk.bf16.mxu1 %vm4149_vm7, %v5420_v2  ;;  %4157 = vmatprep.mubr.msk.bf16.mxu0 %vm4155_vm8, %v5420_v2 }
  0xef   :  { %4430 = vmatprep.subr.bf16.mxu1 %v4952_v6  ;;  %4452 = vmatprep.subr.bf16.mxu0 %v4953_v7 }
  0xf1   :  { %4431 = vmatpush3.bf16.msra.mxu1 %v4954_v8  ;;  %4453 = vmatpush3.bf16.msra.mxu0 %v4955_v9  ;;  %v955_v9 = vld [vmem:[%s6167_s3] sm:$0xff] }
  0xf2   :  { %4432 = vmatprep.subr.bf16.mxu1 %v4956_v10  ;;  %4454 = vmatprep.subr.bf16.mxu0 %v4957_v11 }
  0xf5   :  { %4433 = vmatpush3.bf16.msra.mxu1 %v4958_v12  ;;  %4455 = vmatpush3.bf16.msra.mxu0 %v4959_v13  ;;  %v958_v12 = vld [vmem:[%s6167_s3 + $0x18] sm:$0xff]  ;;  %v957_v13 = vld [vmem:[%s6167_s3 + $0x10] sm:$0xff] }
  0xf6   :  { %4434 = vmatprep.subr.bf16.mxu1 %v4960_v14  ;;  %4456 = vmatprep.subr.bf16.mxu0 %v4961_v15 }
  0xf9   :  { %4435 = vmatpush3.bf16.msra.mxu1 %v4962_v16  ;;  %4457 = vmatpush3.bf16.msra.mxu0 %v4963_v17 }
  0xfa   :  { %4436 = vmatprep.subr.bf16.mxu1 %v4964_v18  ;;  %4458 = vmatprep.subr.bf16.mxu0 %v4965_v19 }
  0xfd   :  { %4437 = vmatpush3.bf16.msra.mxu1 %v4966_v20  ;;  %4459 = vmatpush3.bf16.msra.mxu0 %v4967_v21 }
  0xfe   :  { %4438 = vmatprep.subr.bf16.mxu1 %v4968_v22  ;;  %4460 = vmatprep.subr.bf16.mxu0 %v4969_v23 }
 0x101   :  { %4439 = vmatpush3.bf16.msra.mxu1 %v4970_v24  ;;  %4461 = vmatpush3.bf16.msra.mxu0 %v4971_v25 }
 0x102   :  { %4440 = vmatprep.subr.bf16.mxu1 %v4972_v26  ;;  %4462 = vmatprep.subr.bf16.mxu0 %v4973_v27 }
 0x105   :  { %4441 = vmatpush3.bf16.msra.mxu1 %v4974_v28  ;;  %4463 = vmatpush3.bf16.msra.mxu0 %v4975_v29 }
 0x106   :  { %4442 = vmatprep.subr.bf16.mxu1 %v4976_v31  ;;  %4464 = vmatprep.subr.bf16.mxu0 %v4977_v32 }
 0x109   :  { %4443 = vmatpush3.bf16.msra.mxu1 %v4978_v33  ;;  %4465 = vmatpush3.bf16.msra.mxu0 %v4979_v34 }
 0x10a   :  { %4644 = vmatprep.subr.bf16.mxu0 %v5177_v3 }
 0x10c   :  { %4154 = vmatmul.mubr.msk.bf16.vlgmr.msra.gmra.mrb[8].mxu1 %vm4152_vm13, %v5420_v2  ;;  %4160 = vmatmul.mubr.msk.bf16.vlgmr.msra.gmra.mrb[8].mxu0 %vm4158_vm14, %v5420_v2 }
 0x10d   :  { %4646 = vmatprep.mubr.msk.bf16.mxu0 %vm5178_vm1, %v5177_v3 }
 0x15d   :  { %v128_v36 = vpop.f32.mrb[0].mxu0 }
 0x15e   :  { %v5532_v37 = vadd.f32 %v956_v35, %v128_v36  ;;  %v4606_v38 = vpop.f32.mrb[1].mxu0 }
 0x15f   :  { %v131_v39 = vpop.f32.mrb[2].mxu0 }
 0x160   :  { %v1004_v40 = vsel %vm1000_vm15, %v5532_v37, 0.0  ;;  %v4607_v41 = vpop.f32.mrb[3].mxu0  ;;  %v5547_v16 = vadd.f32 %v958_v12, %v131_v39 }
 0x161   :  { %1005 = vadd.xlane.f32.xlu1 %v1004_v40 }
 0x162   :  { %v1010_v20 = vsel %vm1000_vm15, %v5547_v16, 0.0 }
 0x1bf   :  { %v4400_v42 = vpop.f32.mrb[4].mxu1  ;;  %v4422_v43 = vpop.f32.mrb[4].mxu0 }
 0x1c0   :  { %v4401_v44 = vpop.f32.mrb[5].mxu1  ;;  %v4423_v45 = vpop.f32.mrb[5].mxu0 }
 0x1c1   :  { %v4402_v46 = vadd.f32 %v4401_v44, %v4400_v42  ;;  %v4424_v47 = vadd.f32 %v4423_v45, %v4422_v43  ;;  %v4403_v48 = vpop.f32.mrb[6].mxu1  ;;  %v4425_v49 = vpop.f32.mrb[6].mxu0  ;;  %v4980_v43 = vld [vmem:[%s6173_s9] sm:$0xff]   ;;  %v4981_v44 = vld [vmem:[%s6173_s9 + $0x8] sm:$0xff]   ;;  %v4982_v45 = vld [vmem:[%s6173_s9 + $0x10] sm:$0xff]  }
 0x1c2   :  { %v4404_v50 = vpop.f32.mrb[7].mxu1  ;;  %v4426_v51 = vpop.f32.mrb[7].mxu0  ;;  %4614 = vmatprep.subr.bf16.mxu1 %v4980_v43 }
 0x1c3   :  { %v867_v52 = vadd.f32 %v4424_v47, %v4402_v46  ;;  %v4405_v53 = vadd.f32 %v4404_v50, %v4403_v48  ;;  %v4427_v54 = vadd.f32 %v4426_v51, %v4425_v49  ;;  %4615 = vmatpush3.bf16.msra.mxu1 %v4980_v43 }
 0x1c4   :  { %4616 = vmatprep.subr.bf16.mxu1 %v4981_v44 }
 0x1c5   :  { %v870_v55 = vadd.f32 %v4427_v54, %v4405_v53 }
 0x1c7   :  { %4617 = vmatpush3.bf16.msra.mxu1 %v4981_v44 }
 0x1c8   :  { %4622 = vmatprep.subr.bf16.mxu1 %v4982_v45 }
 0x1df   :  { %v4444_v56 = vpop.f32.mrb[8].mxu1  ;;  %v4466_v57 = vpop.f32.mrb[8].mxu0 }
 0x1e0   :  { %v4445_v61 = vpop.f32.mrb[9].mxu1  ;;  %v4467_v62 = vpop.f32.mrb[9].mxu0 }
 0x1e1   :  { %v4446_v63 = vadd.f32 %v4445_v61, %v4444_v56  ;;  %v4468_v0 = vadd.f32 %v4467_v62, %v4466_v57  ;;  %v4447_v1 = vpop.f32.mrb[10].mxu1  ;;  %v4469_v2 = vpop.f32.mrb[10].mxu0 }
 0x1e2   :  { %v4448_v4 = vpop.f32.mrb[11].mxu1  ;;  %v4470_v5 = vpop.f32.mrb[11].mxu0 }
 0x1e3   :  { %v908_v6 = vadd.f32 %v4446_v63, %v867_v52  ;;  %v4449_v7 = vadd.f32 %v4448_v4, %v4447_v1  ;;  %v4471_v8 = vadd.f32 %v4470_v5, %v4469_v2  ;;  %v4162_v63 = vld [vmem:[%s6172_s8] ss:$0 sm:$0xff]  ;;  %v4163_v4 = vld [vmem:[%s6172_s8 + $0x1] ss:$0 sm:$0xff] }
 0x1e5   :  { %v949_v10 = vadd.f32 %v4468_v0, %v908_v6  ;;  %v911_v11 = vadd.f32 %v4449_v7, %v870_v55 }
 0x1e7   :  { %v5545_v14 = vadd.f32 %v955_v9, %v949_v10  ;;  %v952_v15 = vadd.f32 %v4471_v8, %v911_v11 }
 0x1e9   :  { %v5549_v17 = vadd.f32 %v957_v13, %v952_v15  ;;  %v1001_v18 = vsel %vm1000_vm15, %v5545_v14, 0.0 }
 0x1ea   :  { %1002 = vadd.xlane.f32.xlu1 %v1001_v18 }
 0x1eb   :  { %v1007_v19 = vsel %vm1000_vm15, %v5549_v17, 0.0 }
 0x1ec   :  { %1008 = vadd.xlane.f32.xlu0 %v1007_v19 }
 0x1ee   :  { %1011 = vadd.xlane.f32.xlu1 %v1010_v20  ;;  %v1006_v21 = vpop.xlane.xlu1 %1005 }
 0x1ef   :  { %v1015_v22 = vmul.f32 0.03125, %v1006_v21  ;;  %v4983_v21 = vld [vmem:[%s6173_s9 + $0x18] sm:$0xff]  }
 0x1f1   :  { %v1019_v23 = vsub.f32 %v5532_v37, %v1015_v22  ;;  %v4984_v22 = vld [vmem:[%s6173_s9 + $0x20] sm:$0xff]  }
 0x1f3   :  { %v1023_v24 = vmul.f32 %v1019_v23, %v1019_v23 }
 0x1f5   :  { %v1029_v25 = vsel %vm1000_vm15, %v1023_v24, 0.0 }
 0x1f6   :  { %1030 = vadd.xlane.f32.xlu1 %v1029_v25  ;;  %v4172_v25 = vld [vmem:[%s6174_s10] ss:$0 sm:$0xff] }
 0x277   :  { %v1003_v26 = vpop.xlane.xlu1 %1002 }
 0x278   :  { %v1014_v27 = vmul.f32 0.03125, %v1003_v26 }
 0x279   :  { %v1009_v28 = vpop.xlane.xlu0 %1008 }
 0x27a   :  { %v1018_v29 = vsub.f32 %v5545_v14, %v1014_v27  ;;  %v1016_v31 = vmul.f32 0.03125, %v1009_v28 }
 0x27b   :  { %v1012_v32 = vpop.xlane.xlu1 %1011 }
 0x27c   :  { %v1020_v33 = vsub.f32 %v5549_v17, %v1016_v31  ;;  %v1017_v34 = vmul.f32 0.03125, %v1012_v32  ;;  %v1022_v35 = vmul.f32 %v1018_v29, %v1018_v29 }
 0x27e   :  { %v1021_v36 = vsub.f32 %v5547_v16, %v1017_v34  ;;  %v1026_v38 = vsel %vm1000_vm15, %v1022_v35, 0.0  ;;  %v1024_v39 = vmul.f32 %v1020_v33, %v1020_v33 }
 0x27f   :  { %1027 = vadd.xlane.f32.xlu1 %v1026_v38  ;;  %v4177_v38 = vld [vmem:[%s6174_s10 + $0x1] ss:$0 sm:$0xff] }
 0x280   :  { %v1032_v40 = vsel %vm1000_vm15, %v1024_v39, 0.0  ;;  %v1025_v41 = vmul.f32 %v1021_v36, %v1021_v36 }
 0x282   :  { %v1035_v42 = vsel %vm1000_vm15, %v1025_v41, 0.0 }
 0x283   :  { %1033 = vadd.xlane.f32.xlu1 %v1032_v40  ;;  %v1031_v46 = vpop.xlane.xlu1 %1030 }
 0x284   :  { %v1039_v47 = vmul.f32 0.03125, %v1031_v46 }
 0x286   :  { %v1043_v48 = vadd.f32 1e-05, %v1039_v47 }
 0x287   :  { %1036 = vadd.xlane.f32.xlu1 %v1035_v42 }
 0x288   :  { %5032 = vrsqrt.f32 %v1043_v48 }
 0x292   :  { %v5033_v56 = vpop.eup %5032 }
 0x293   :  { %v1051_v62 = vmul.f32 %v5033_v56, %v1019_v23  ;;  %v4985_v23 = vld [vmem:[%s6173_s9 + $0x28] sm:$0xff]  }
 0x295   :  { %v1059_v1 = vmul.f32 %v4162_v63, %v1051_v62 }
 0x297   :  { %v1067_v7 = vadd.f32 %v4163_v4, %v1059_v1 }
 0x30c   :  { %v1028_v49 = vpop.xlane.xlu1 %1027 }
 0x30d   :  { %v1038_v50 = vmul.f32 0.03125, %v1028_v49 }
 0x30f   :  { %v1042_v51 = vadd.f32 1e-05, %v1038_v50  ;;  %v4182_v50 = vld [vmem:[%s6174_s10 + $0x2] ss:$0 sm:$0xff] }
 0x310   :  { %v1034_v52 = vpop.xlane.xlu1 %1033 }
 0x311   :  { %5034 = vrsqrt.f32 %v1042_v51  ;;  %v1040_v53 = vmul.f32 0.03125, %v1034_v52 }
 0x313   :  { %v1044_v54 = vadd.f32 1e-05, %v1040_v53 }
 0x314   :  { %v1037_v55 = vpop.xlane.xlu1 %1036 }
 0x315   :  { %5036 = vrsqrt.f32 %v1044_v54  ;;  %v1041_v57 = vmul.f32 0.03125, %v1037_v55 }
 0x317   :  { %v1045_v61 = vadd.f32 1e-05, %v1041_v57 }
 0x319   :  { %5038 = vrsqrt.f32 %v1045_v61 }
 0x31b   :  { %v5035_v0 = vpop.eup %5034 }
 0x31c   :  { %v1050_v2 = vmul.f32 %v5035_v0, %v1018_v29  ;;  %v5179_v0 = vmov 1966171168  }
 0x31d   :  { %v972_v1 = vunpack.c.l.s4 %v5179_v0 }
 0x31e   :  { %v1058_v5 = vmul.f32 %v4162_v63, %v1050_v2  ;;  %v967_v2 = vld [vmem:[%s6166_s2] sm:$0x3] }
 0x31f   :  { %v5037_v6 = vpop.eup %5036 }
 0x320   :  { %v1066_v8 = vadd.f32 %v4163_v4, %v1058_v5  ;;  %v1052_v9 = vmul.f32 %v5037_v6, %v1020_v33  ;;  %v973_v5 = vunpack.c.0.s8 %v972_v1 }
 0x322   :  { %v5580_v10 = vpack.c.bf16 %v1067_v7, %v1066_v8  ;;  %v1060_v12 = vmul.f32 %v4162_v63, %v1052_v9  ;;  %v976_v7 = vsub.s32 %v973_v5, %v5394_v58  ;;  %v4987_v5 = vld [vmem:[%s6173_s9 + $0x30] sm:$0xff]  }
 0x323   :  { %v5039_v11 = vpop.eup %5038 }
 0x324   :  { %v1053_v13 = vmul.f32 %v5039_v11, %v1021_v36  ;;  %4618 = vmatprep.mubr.msk.bf16.mxu1 %vm1000_vm15, %v5580_v10  ;;  %v1068_v18 = vadd.f32 %v4163_v4, %v1060_v12  ;;  %v5180_v12 = vmov -1e+09  }
 0x326   :  { %v1061_v15 = vmul.f32 %v4162_v63, %v1053_v13  ;;  %v5635_v13 = vsel %vm963_vm2, 0.0, %v5180_v12 }
 0x328   :  { %v1069_v19 = vadd.f32 %v4163_v4, %v1061_v15  ;;  %v4161_v4 = vadd.f32 -1.0, %v967_v2 }
 0x32a   :  { %v5584_v20 = vpack.c.bf16 %v1069_v19, %v1068_v18  ;;  %v969_v6 = vmul.f32 1e+09, %v4161_v4  ;;  %v4986_v4 = vld [vmem:[%s6173_s9 + $0x40] sm:$0xff]  }
 0x32c   :  { %4619 = vmatmul.mubr.msk.bf16.vlgmr.msra.gmra.mrb[12].mxu1 %vm1000_vm15, %v5584_v20  ;;  %v977_v8 = vrot.slane %v969_v6, %v976_v7 }
 0x32d   :  { %4623 = vmatpush3.bf16.msra.mxu1 %v4982_v45  ;;  %4626 = vmatprep.mubr.msk.bf16.mxu1 %vm1000_vm15, %v5580_v10 }
 0x32e   :  { %4624 = vmatprep.subr.bf16.mxu1 %v4983_v21  ;;  %v978_v9 = vcombine.high %v977_v8, %v977_v8 }
 0x330   :  { %v992_v11 = vrot.slane %v978_v9, %v976_v7 }
 0x331   :  { %4625 = vmatpush3.bf16.msra.mxu1 %v4983_v21 }
 0x332   :  { %4630 = vmatprep.subr.bf16.mxu1 %v4984_v22  ;;  %v5638_v18 = vrot.slane %v992_v11, %v5400_v60 }
 0x334   :  { %4627 = vmatmul.mubr.msk.bf16.vlgmr.msra.gmra.mrb[16].mxu1 %vm1000_vm15, %v5584_v20 }
 0x335   :  { %4631 = vmatpush3.bf16.msra.mxu1 %v4984_v22  ;;  %4634 = vmatprep.mubr.msk.bf16.mxu1 %vm1000_vm15, %v5580_v10 }
 0x336   :  { %4632 = vmatprep.subr.bf16.mxu1 %v4985_v23 }
 0x339   :  { %4633 = vmatpush3.bf16.msra.mxu1 %v4985_v23  ;;  %v5640_v23 = vsel %vm964_vm3, 0.0, %v5180_v12 }
 0x33a   :  { %4638 = vmatprep.subr.bf16.mxu1 %v5177_v3 }
 0x33c   :  { %4635 = vmatmul.mubr.msk.bf16.vlgmr.msra.gmra.mrb[20].mxu1 %vm1000_vm15, %v5584_v20 }
 0x33d   :  { %4640 = vmatprep.mubr.msk.bf16.mxu1 %vm5178_vm1, %v5177_v3 }
 0x3ff   :  { %v4620_v24 = vpop.f32.mrb[12].mxu1 }
 0x400   :  { %v1145_v26 = vpop.f32.mrb[13].mxu1  ;;  %v1154_v28 = vadd.f32 %v4620_v24, %v4172_v25  ;;  %v985_v24 = vrot.slane %v977_v8, %v976_v7 }
 0x401   :  { %v4621_v27 = vpop.f32.mrb[14].mxu1  ;;  %v1146_v32 = vadd.f32 %v4172_v25, %v1145_v26 }
 0x402   :  { %v1157_v29 = vadd.f32 %v4621_v27, %v4172_v25  ;;  %v1148_v31 = vpop.f32.mrb[15].mxu1 }
 0x403   :  { %v1149_v33 = vadd.f32 %v4172_v25, %v1148_v31 }
 0x404   :  { %v1291_v34 = vpack.c.bf16 %v1157_v29, %v1154_v28 }
 0x405   :  { %v1290_v35 = vpack.c.bf16 %v1149_v33, %v1146_v32 }
 0x407   :  { %v4628_v36 = vpop.f32.mrb[16].mxu1 }
 0x408   :  { %v1210_v39 = vpop.f32.mrb[17].mxu1  ;;  %v1219_v41 = vadd.f32 %v4628_v36, %v4177_v38 }
 0x409   :  { %v4629_v40 = vpop.f32.mrb[18].mxu1  ;;  %v1211_v44 = vadd.f32 %v4177_v38, %v1210_v39 }
 0x40a   :  { %v1222_v42 = vadd.f32 %v4629_v40, %v4177_v38  ;;  %v1213_v43 = vpop.f32.mrb[19].mxu1 }
 0x40b   :  { %v1214_v45 = vadd.f32 %v4177_v38, %v1213_v43 }
 0x40c   :  { %v1293_v46 = vpack.c.bf16 %v1222_v42, %v1219_v41 }
 0x40d   :  { %v1292_v47 = vpack.c.bf16 %v1214_v45, %v1211_v44 }
 0x40e   :  { %v1345_v48 = vsel %vm151_vm0, %v1293_v46, 0 }
 0x40f   :  { %v4636_v49 = vpop.f32.mrb[20].mxu1  ;;  %4645 = vmatpush3.bf16.xpose.msra.mxu0 %v1345_v48  ;;  %v1298_v51 = vsel %vm151_vm0, %v1292_v47, 0 }
 0x410   :  { %v1275_v52 = vpop.f32.mrb[21].mxu1  ;;  %4639 = vmatpush3.bf16.xpose.msra.mxu1 %v1298_v51  ;;  %4656 = vmatprep.subr.bf16.mxu0 %v5177_v3  ;;  %v1284_v54 = vadd.f32 %v4636_v49, %v4182_v50 }
 0x411   :  { %v4637_v53 = vpop.f32.mrb[22].mxu1  ;;  %4650 = vmatprep.subr.bf16.mxu1 %v5177_v3  ;;  %v1276_v57 = vadd.f32 %v4182_v50, %v1275_v52 }
 0x412   :  { %v1287_v55 = vadd.f32 %v4637_v53, %v4182_v50  ;;  %v1278_v56 = vpop.f32.mrb[23].mxu1 }
 0x413   :  { %v1279_v61 = vadd.f32 %v4182_v50, %v1278_v56 }
 0x414   :  { %v1457_v62 = vpack.c.bf16 %v1287_v55, %v1284_v54 }
 0x415   :  { %v1456_v63 = vpack.c.bf16 %v1279_v61, %v1276_v57 }
 0x416   :  { %4647 = vmatmul.mubr.msk.bf16.vlgmr.msra.gmra.mrb[12].mxu0 %vm151_vm0, %v1291_v34  ;;  %v5646_v34 = vrot.slane %v985_v24, %v5400_v60 }
 0x417   :  { %4641 = vmatmul.mubr.msk.bf16.vlgmr.msra.gmra.mrb[24].mxu1 %vm151_vm0, %v1290_v35  ;;  %4657 = vmatpush3.bf16.msra.mxu0 %v1457_v62 }
 0x418   :  { %4651 = vmatpush3.bf16.msra.mxu1 %v1456_v63  ;;  %4658 = vmatprep.mubr.msk.bf16.mxu0 %vm5178_vm1, %v5177_v3 }
 0x419   :  { %4652 = vmatprep.mubr.msk.bf16.mxu1 %vm5178_vm1, %v5177_v3  ;;  %4670 = vmatprep.subr.bf16.mxu0 %v4986_v4 }
 0x41a   :  { %4662 = vmatprep.subr.bf16.mxu1 %v4987_v5 }
 0x4e9   :  { %v1381_v15 = vpop.f32.mrb[12].mxu0 }
 0x4ea   :  { %v1390_v19 = vmul.f32 0.25, %v1381_v15  ;;  %v1334_v21 = vpop.f32.mrb[24].mxu1  ;;  %v4648_v22 = vpop.f32.mrb[13].mxu0 }
 0x4eb   :  { %v4642_v25 = vpop.f32.mrb[25].mxu1  ;;  %v1384_v26 = vpop.f32.mrb[14].mxu0  ;;  %v1388_v27 = vmul.f32 0.25, %v1334_v21  ;;  %v4988_v22 = vld [vmem:[%s6173_s9 + $0x48] sm:$0xff]  }
 0x4ec   :  { %v1394_v58 = vadd.f32 %v1390_v19, %v5635_v13  ;;  %v1391_v28 = vmul.f32 0.25, %v1384_v26  ;;  %v1337_v30 = vpop.f32.mrb[26].mxu1  ;;  %v4649_v59 = vpop.f32.mrb[15].mxu0 }
 0x4ed   :  { %v1389_v29 = vmul.f32 0.25, %v1337_v30  ;;  %v4643_v31 = vpop.f32.mrb[27].mxu1  ;;  %v1392_v36 = vadd.f32 %v1388_v27, %v5635_v13  ;;  %v4990_v30 = vld [vmem:[%s6173_s9 + $0x50] sm:$0xff]   ;;  %v4991_v59 = vld [vmem:[%s6173_s9 + $0x58] sm:$0xff]  }
 0x4ee   :  { %v1395_v32 = vadd.f32 %v1391_v28, %v5640_v23  ;;  %v1408_v33 = vadd.f32 %v5638_v18, %v1394_v58  ;;  %v4989_v28 = vld [vmem:[%s6173_s9 + $0x38] sm:$0xff]  }
 0x4ef   :  { %v1393_v35 = vadd.f32 %v1389_v29, %v5640_v23  ;;  %v1406_v43 = vadd.f32 %v5646_v34, %v1392_v36 }
 0x4f0   :  { %v1416_v38 = vsel %vm151_vm0, %v1408_v33, -inf  ;;  %v1409_v39 = vadd.f32 %v5638_v18, %v1395_v32 }
 0x4f1   :  { %1417 = vmax.xlane.f32.xlu1 %v1416_v38  ;;  %v1407_v40 = vadd.f32 %v5646_v34, %v1393_v35  ;;  %v1410_v60 = vsel %vm151_vm0, %v1406_v43, -inf }
 0x4f2   :  { %v1419_v42 = vsel %vm151_vm0, %v1409_v39, -inf }
 0x4f3   :  { %v1413_v41 = vsel %vm151_vm0, %v1407_v40, -inf }
 0x4f4   :  { %1414 = vmax.xlane.f32.xlu0 %v1413_v41  ;;  %v4208_v41 = vld [vmem:[%s6174_s10 + $0x4] ss:$0 sm:$0xff] }
 0x4f5   :  { %1420 = vmax.xlane.f32.xlu1 %v1419_v42 }
 0x4f9   :  { %1411 = vmax.xlane.f32.xlu1 %v1410_v60 }
 0x57e   :  { %v1418_v44 = vpop.xlane.xlu1 %1417 }
 0x57f   :  { %v1424_v45 = vsub.f32 %v1408_v33, %v1418_v44 }
 0x581   :  { %v1430_v46 = vmul.f32 1.442695, %v1424_v45  ;;  %v1415_v47 = vpop.xlane.xlu0 %1414 }
 0x582   :  { %v1423_v48 = vsub.f32 %v1407_v40, %v1415_v47  ;;  %v1421_v49 = vpop.xlane.xlu1 %1420 }
 0x583   :  { %5040 = vpow2.f32 %v1430_v46  ;;  %v1425_v50 = vsub.f32 %v1409_v39, %v1421_v49 }
 0x584   :  { %v1428_v51 = vmul.f32 1.442695, %v1423_v48 }
 0x585   :  { %v1432_v52 = vmul.f32 1.442695, %v1425_v50  ;;  %v4203_v50 = vld [vmem:[%s6174_s10 + $0x3] ss:$0 sm:$0xff] }
 0x586   :  { %v1412_v53 = vpop.xlane.xlu1 %1411 }
 0x587   :  { %5042 = vpow2.f32 %v1432_v52  ;;  %v1422_v54 = vsub.f32 %v1406_v43, %v1412_v53 }
 0x588   :  { %5044 = vpow2.f32 %v1428_v51 }
 0x589   :  { %v1426_v55 = vmul.f32 1.442695, %v1422_v54 }
 0x58b   :  { %5046 = vpow2.f32 %v1426_v55 }
 0x58d   :  { %v5041_v56 = vpop.eup %5040 }
 0x58e   :  { %v1440_v57 = vsel %vm151_vm0, %v5041_v56, 0.0 }
 0x58f   :  { %1441 = vadd.xlane.f32.xlu1 %v1440_v57 }
 0x591   :  { %v5043_v61 = vpop.eup %5042 }
 0x592   :  { %v1443_v62 = vsel %vm151_vm0, %v5043_v61, 0.0  ;;  %v5045_v63 = vpop.eup %5044 }
 0x593   :  { %1444 = vadd.xlane.f32.xlu0 %v1443_v62  ;;  %v1437_v2 = vsel %vm151_vm0, %v5045_v63, 0.0 }
 0x595   :  { %v5047_v0 = vpop.eup %5046 }
 0x596   :  { %v1434_v1 = vsel %vm151_vm0, %v5047_v0, 0.0 }
 0x597   :  { %1435 = vadd.xlane.f32.xlu1 %v1434_v1  ;;  %1438 = vadd.xlane.f32.xlu0 %v1437_v2 }
 0x61c   :  { %v1442_v6 = vpop.xlane.xlu1 %1441 }
 0x61d   :  { %5048 = vrcp.f32 %v1442_v6 }
 0x620   :  { %v1445_v7 = vpop.xlane.xlu0 %1444 }
 0x621   :  { %5050 = vrcp.f32 %v1445_v7 }
 0x624   :  { %v1436_v8 = vpop.xlane.xlu1 %1435  ;;  %v1439_v9 = vpop.xlane.xlu0 %1438 }
 0x625   :  { %5052 = vrcp.f32 %v1436_v8 }
 0x626   :  { %5054 = vrcp.f32 %v1439_v9 }
 0x627   :  { %v5049_v11 = vpop.eup %5048 }
 0x628   :  { %v1452_v15 = vmul.f32 %v5049_v11, %v5041_v56 }
 0x62b   :  { %v5051_v12 = vpop.eup %5050 }
 0x62c   :  { %v1453_v19 = vmul.f32 %v5051_v12, %v5043_v61 }
 0x62e   :  { %v1455_v21 = vpack.c.bf16 %v1453_v19, %v1452_v15 }
 0x62f   :  { %v5053_v24 = vpop.eup %5052 }
 0x630   :  { %v5055_v25 = vpop.eup %5054  ;;  %v1450_v26 = vmul.f32 %v5053_v24, %v5047_v0  ;;  %4659 = vmatmul.mubr.msk.bf16.vlgmr.msra.gmra.mrb[16].mxu0 %vm151_vm0, %v1455_v21 }
 0x631   :  { %v1451_v58 = vmul.f32 %v5055_v25, %v5045_v63  ;;  %4671 = vmatpush3.bf16.msra.mxu0 %v4986_v4  ;;  %4674 = vmatprep.mubr.msk.bf16.mxu0 %vm1000_vm15, %v5580_v10  ;;  %v4213_v4 = vld [vmem:[%s6174_s10 + $0x5] ss:$0 sm:$0xff] }
 0x632   :  { %4672 = vmatprep.subr.bf16.mxu0 %v4988_v22 }
 0x633   :  { %v1454_v27 = vpack.c.bf16 %v1451_v58, %v1450_v26 }
 0x635   :  { %4653 = vmatmul.mubr.msk.bf16.vlgmr.msra.gmra.mrb[28].mxu1 %vm151_vm0, %v1454_v27  ;;  %4673 = vmatpush3.bf16.msra.mxu0 %v4988_v22 }
 0x636   :  { %4663 = vmatpush3.bf16.msra.mxu1 %v4987_v5  ;;  %4666 = vmatprep.mubr.msk.bf16.mxu1 %vm1000_vm15, %v5580_v10 }
 0x637   :  { %4664 = vmatprep.subr.bf16.mxu1 %v4989_v28  ;;  %4686 = vmatprep.subr.bf16.mxu0 %v5177_v3 }
 0x638   :  { %4675 = vmatmul.mubr.msk.bf16.vlgmr.msra.gmra.mrb[20].mxu0 %vm1000_vm15, %v5584_v20 }
 0x639   :  { %4688 = vmatprep.mubr.msk.bf16.mxu0 %vm5178_vm1, %v5177_v3 }
 0x63a   :  { %4665 = vmatpush3.bf16.msra.mxu1 %v4989_v28 }
 0x63b   :  { %4678 = vmatprep.subr.bf16.mxu1 %v4990_v30 }
 0x63d   :  { %4667 = vmatmul.mubr.msk.bf16.vlgmr.msra.gmra.mrb[32].mxu1 %vm1000_vm15, %v5584_v20 }
 0x63e   :  { %4679 = vmatpush3.bf16.msra.mxu1 %v4990_v30  ;;  %4682 = vmatprep.mubr.msk.bf16.mxu1 %vm1000_vm15, %v5580_v10 }
 0x63f   :  { %4680 = vmatprep.subr.bf16.mxu1 %v4991_v59 }
 0x642   :  { %4681 = vmatpush3.bf16.msra.mxu1 %v4991_v59 }
 0x643   :  { %4692 = vmatprep.subr.bf16.mxu1 %v5177_v3 }
 0x645   :  { %4683 = vmatmul.mubr.msk.bf16.vlgmr.msra.gmra.mrb[36].mxu1 %vm1000_vm15, %v5584_v20 }
 0x646   :  { %4694 = vmatprep.mubr.msk.bf16.mxu1 %vm5178_vm1, %v5177_v3 }
 0x703   :  { %v5699_v29 = vpop.f32.mrb[16].mxu0 }
 0x704   :  { %v4660_v31 = vpop.f32.mrb[17].mxu0 }
 0x705   :  { %v5701_v32 = vpop.f32.mrb[18].mxu0 }
 0x706   :  { %v1549_v33 = vpack.c.bf16 %v5701_v32, %v5699_v29  ;;  %v4661_v35 = vpop.f32.mrb[19].mxu0 }
 0x708   :  { %v5705_v10 = vpop.f32.mrb[28].mxu1 }
 0x709   :  { %v4654_v36 = vpop.f32.mrb[29].mxu1 }
 0x70a   :  { %v5707_v38 = vpop.f32.mrb[30].mxu1 }
 0x70b   :  { %v1548_v20 = vpack.c.bf16 %v5707_v38, %v5705_v10  ;;  %v4655_v39 = vpop.f32.mrb[31].mxu1  ;;  %v4676_v40 = vpop.f32.mrb[20].mxu0 }
 0x70c   :  { %v1683_v42 = vpop.f32.mrb[21].mxu0  ;;  %v1692_v60 = vadd.f32 %v4676_v40, %v4208_v41 }
 0x70d   :  { %v4677_v43 = vpop.f32.mrb[22].mxu0  ;;  %v1684_v46 = vadd.f32 %v4208_v41, %v1683_v42 }
 0x70e   :  { %v1695_v44 = vadd.f32 %v4677_v43, %v4208_v41  ;;  %v1686_v45 = vpop.f32.mrb[23].mxu0 }
 0x70f   :  { %v1687_v47 = vadd.f32 %v4208_v41, %v1686_v45 }
 0x710   :  { %v1766_v48 = vpack.c.bf16 %v1695_v44, %v1692_v60  ;;  %v4668_v49 = vpop.f32.mrb[32].mxu1 }
 0x711   :  { %v1765_v51 = vpack.c.bf16 %v1687_v47, %v1684_v46  ;;  %v1618_v52 = vpop.f32.mrb[33].mxu1  ;;  %v1627_v55 = vadd.f32 %v4668_v49, %v4203_v50 }
 0x712   :  { %v4669_v53 = vpop.f32.mrb[34].mxu1  ;;  %v1818_v54 = vsel %vm151_vm0, %v1766_v48, 0  ;;  %v1619_v62 = vadd.f32 %v4203_v50, %v1618_v52 }
 0x713   :  { %v1630_v56 = vadd.f32 %v4669_v53, %v4203_v50  ;;  %v1621_v57 = vpop.f32.mrb[35].mxu1  ;;  %4693 = vmatpush3.bf16.xpose.msra.mxu1 %v1818_v54  ;;  %v1771_v61 = vsel %vm151_vm0, %v1765_v51, 0 }
 0x714   :  { %v1622_v63 = vadd.f32 %v4203_v50, %v1621_v57  ;;  %4687 = vmatpush3.bf16.xpose.msra.mxu0 %v1771_v61  ;;  %4704 = vmatprep.subr.bf16.mxu1 %v5177_v3 }
 0x715   :  { %v1764_v0 = vpack.c.bf16 %v1630_v56, %v1627_v55  ;;  %4698 = vmatprep.subr.bf16.mxu0 %v5177_v3 }
 0x716   :  { %v1763_v1 = vpack.c.bf16 %v1622_v63, %v1619_v62 }
 0x718   :  { %v4684_v2 = vpop.f32.mrb[36].mxu1 }
 0x719   :  { %v1748_v5 = vpop.f32.mrb[37].mxu1  ;;  %v1757_v7 = vadd.f32 %v4684_v2, %v4213_v4 }
 0x71a   :  { %v4685_v6 = vpop.f32.mrb[38].mxu1  ;;  %4695 = vmatmul.mubr.msk.bf16.vlgmr.msra.gmra.mrb[40].mxu1 %vm151_vm0, %v1764_v0  ;;  %v1749_v11 = vadd.f32 %v4213_v4, %v1748_v5 }
 0x71b   :  { %v1760_v8 = vadd.f32 %v4685_v6, %v4213_v4  ;;  %v1751_v9 = vpop.f32.mrb[39].mxu1  ;;  %4689 = vmatmul.mubr.msk.bf16.vlgmr.msra.gmra.mrb[24].mxu0 %vm151_vm0, %v1763_v1  ;;  %4706 = vmatprep.mubr.msk.bf16.mxu1 %vm5178_vm1, %v5177_v3 }
 0x71c   :  { %v1752_v12 = vadd.f32 %v4213_v4, %v1751_v9  ;;  %4700 = vmatprep.mubr.msk.bf16.mxu0 %vm5178_vm1, %v5177_v3 }
 0x71d   :  { %v1920_v15 = vpack.c.bf16 %v1760_v8, %v1757_v7 }
 0x71e   :  { %v1919_v19 = vpack.c.bf16 %v1752_v12, %v1749_v11 }
 0x71f   :  { %4705 = vmatpush3.bf16.msra.mxu1 %v1920_v15 }
 0x720   :  { %4699 = vmatpush3.bf16.msra.mxu0 %v1919_v19 }
 0x7ed   :  { %v1854_v21 = vpop.f32.mrb[40].mxu1 }
 0x7ee   :  { %v1863_v22 = vmul.f32 0.25, %v1854_v21  ;;  %v1807_v24 = vpop.f32.mrb[24].mxu0  ;;  %v4696_v25 = vpop.f32.mrb[41].mxu1 }
 0x7ef   :  { %v1861_v26 = vmul.f32 0.25, %v1807_v24  ;;  %v4690_v58 = vpop.f32.mrb[25].mxu0  ;;  %v1857_v27 = vpop.f32.mrb[42].mxu1 }
 0x7f0   :  { %v1864_v28 = vmul.f32 0.25, %v1857_v27  ;;  %v1810_v30 = vpop.f32.mrb[26].mxu0  ;;  %v4697_v59 = vpop.f32.mrb[43].mxu1  ;;  %v1867_v31 = vadd.f32 %v1863_v22, %v5635_v13 }
 0x7f1   :  { %v1865_v35 = vadd.f32 %v1861_v26, %v5635_v13  ;;  %v1862_v36 = vmul.f32 0.25, %v1810_v30  ;;  %v4691_v39 = vpop.f32.mrb[27].mxu0  ;;  %v4992_v59 = vld [vmem:[%s6175_s11 + $0x8] sm:$0xff]  }
 0x7f2   :  { %v1868_v40 = vadd.f32 %v1864_v28, %v5640_v23  ;;  %v1871_v44 = vadd.f32 %v1867_v31, %v5638_v18  ;;  %4710 = vmatprep.subr.bf16.mxu0 %v4992_v59  ;;  %v4993_v31 = vld [vmem:[%s6175_s11] sm:$0xff]  }
 0x7f3   :  { %v1866_v41 = vadd.f32 %v1862_v36, %v5640_v23  ;;  %v1869_v42 = vadd.f32 %v1865_v35, %v5646_v34 }
 0x7f4   :  { %v1872_v46 = vadd.f32 %v1868_v40, %v5638_v18  ;;  %v1879_v47 = vsel %vm151_vm0, %v1871_v44, -inf }
 0x7f5   :  { %v1873_v43 = vsel %vm151_vm0, %v1869_v42, -inf  ;;  %v1870_v60 = vadd.f32 %v1866_v41, %v5646_v34 }
 0x7f6   :  { %1874 = vmax.xlane.f32.xlu1 %v1873_v43  ;;  %v1882_v48 = vsel %vm151_vm0, %v1872_v46, -inf }
 0x7f7   :  { %v1876_v45 = vsel %vm151_vm0, %v1870_v60, -inf }
 0x7f8   :  { %1877 = vmax.xlane.f32.xlu0 %v1876_v45 }
 0x7fa   :  { %1880 = vmax.xlane.f32.xlu1 %v1879_v47  ;;  %v4228_v47 = vld [vmem:[%s6172_s8 + $0x4] ss:$0 sm:$0xff] }
 0x7fc   :  { %1883 = vmax.xlane.f32.xlu0 %v1882_v48 }
 0x883   :  { %v1875_v49 = vpop.xlane.xlu1 %1874 }
 0x884   :  { %v1885_v50 = vsub.f32 %v1869_v42, %v1875_v49 }
 0x885   :  { %v1878_v51 = vpop.xlane.xlu0 %1877 }
 0x886   :  { %v1889_v52 = vmul.f32 1.442695, %v1885_v50  ;;  %v1886_v53 = vsub.f32 %v1870_v60, %v1878_v51 }
 0x887   :  { %v1881_v54 = vpop.xlane.xlu1 %1880 }
 0x888   :  { %5056 = vpow2.f32 %v1889_v52  ;;  %v1891_v55 = vmul.f32 1.442695, %v1886_v53  ;;  %v1887_v56 = vsub.f32 %v1871_v44, %v1881_v54 }
 0x889   :  { %v1884_v57 = vpop.xlane.xlu0 %1883 }
 0x88a   :  { %5058 = vpow2.f32 %v1891_v55  ;;  %v1893_v61 = vmul.f32 1.442695, %v1887_v56  ;;  %v1888_v62 = vsub.f32 %v1872_v46, %v1884_v57 }
 0x88c   :  { %5060 = vpow2.f32 %v1893_v61  ;;  %v1895_v63 = vmul.f32 1.442695, %v1888_v62 }
 0x88e   :  { %5062 = vpow2.f32 %v1895_v63 }
 0x892   :  { %v5057_v0 = vpop.eup %5056 }
 0x893   :  { %v1897_v1 = vsel %vm151_vm0, %v5057_v0, 0.0 }
 0x894   :  { %v5059_v2 = vpop.eup %5058  ;;  %1898 = vadd.xlane.f32.xlu1 %v1897_v1 }
 0x895   :  { %v1900_v4 = vsel %vm151_vm0, %v5059_v2, 0.0 }
 0x896   :  { %v5061_v5 = vpop.eup %5060  ;;  %1901 = vadd.xlane.f32.xlu0 %v1900_v4 }
 0x897   :  { %v1903_v6 = vsel %vm151_vm0, %v5061_v5, 0.0 }
 0x898   :  { %v5063_v7 = vpop.eup %5062  ;;  %1904 = vadd.xlane.f32.xlu1 %v1903_v6 }
 0x899   :  { %v1906_v8 = vsel %vm151_vm0, %v5063_v7, 0.0 }
 0x89a   :  { %1907 = vadd.xlane.f32.xlu0 %v1906_v8 }
 0x921   :  { %v1899_v9 = vpop.xlane.xlu1 %1898 }
 0x922   :  { %5064 = vrcp.f32 %v1899_v9 }
 0x923   :  { %v1902_v11 = vpop.xlane.xlu0 %1901 }
 0x924   :  { %5066 = vrcp.f32 %v1902_v11 }
 0x925   :  { %v1905_v12 = vpop.xlane.xlu1 %1904 }
 0x926   :  { %5068 = vrcp.f32 %v1905_v12 }
 0x927   :  { %v1908_v15 = vpop.xlane.xlu0 %1907 }
 0x928   :  { %5070 = vrcp.f32 %v1908_v15 }
 0x92c   :  { %v5065_v19 = vpop.eup %5064 }
 0x92d   :  { %v1913_v22 = vmul.f32 %v5065_v19, %v5057_v0  ;;  %v4994_v19 = vld [vmem:[%s6175_s11 + $0x10] sm:$0xff]  }
 0x92e   :  { %v5067_v21 = vpop.eup %5066  ;;  %4722 = vmatprep.subr.bf16.mxu1 %v4994_v19 }
 0x92f   :  { %v1914_v24 = vmul.f32 %v5067_v21, %v5059_v2  ;;  %v4995_v21 = vld [vmem:[%s6175_s11 + $0x18] sm:$0xff]  }
 0x930   :  { %v5069_v25 = vpop.eup %5068 }
 0x931   :  { %v1917_v26 = vpack.c.bf16 %v1914_v24, %v1913_v22  ;;  %v1915_v27 = vmul.f32 %v5069_v25, %v5061_v5 }
 0x932   :  { %v5071_v58 = vpop.eup %5070 }
 0x933   :  { %v1916_v28 = vmul.f32 %v5071_v58, %v5063_v7  ;;  %4701 = vmatmul.mubr.msk.bf16.vlgmr.msra.gmra.mrb[28].mxu0 %vm151_vm0, %v1917_v26 }
 0x934   :  { %4711 = vmatpush3.bf16.msra.mxu0 %v4992_v59 }
 0x935   :  { %v1918_v30 = vpack.c.bf16 %v1916_v28, %v1915_v27  ;;  %4716 = vmatprep.subr.bf16.mxu0 %v4993_v31 }
 0x937   :  { %4707 = vmatmul.mubr.msk.bf16.vlgmr.msra.gmra.mrb[44].mxu1 %vm151_vm0, %v1918_v30 }
 0x938   :  { %4723 = vmatpush3.bf16.msra.mxu1 %v4994_v19 }
 0x939   :  { %4724 = vmatprep.subr.bf16.mxu1 %v4995_v21 }
 0x93c   :  { %4725 = vmatpush3.bf16.msra.mxu1 %v4995_v21 }
 0xa06   :  { %v1958_v35 = vpop.f32.mrb[28].mxu0 }
 0xa07   :  { %v4702_v36 = vpop.f32.mrb[29].mxu0 }
 0xa08   :  { %v1961_v39 = vpop.f32.mrb[30].mxu0 }
 0xa09   :  { %v2011_v40 = vpack.c.bf16 %v1961_v39, %v1958_v35  ;;  %v4703_v41 = vpop.f32.mrb[31].mxu0 }
 0xa0a   :  { %v2002_v42 = vpop.f32.mrb[44].mxu1 }
 0xa0b   :  { %v4708_v43 = vpop.f32.mrb[45].mxu1  ;;  %4712 = vmatprep.mubr.msk.bf16.mxu0 %vm151_vm0, %v2011_v40  ;;  %v4229_v40 = vld [vmem:[%s6172_s8 + $0x2] ss:$0 sm:$0xff] }
 0xa0c   :  { %v2005_v60 = vpop.f32.mrb[46].mxu1 }
 0xa0d   :  { %v2012_v44 = vpack.c.bf16 %v2005_v60, %v2002_v42  ;;  %v4709_v45 = vpop.f32.mrb[47].mxu1 }
 0xa0e   :  { %v4230_v45 = vld [vmem:[%s6172_s8 + $0x3] ss:$0 sm:$0xff] }
 0xa0f   :  { %4713 = vmatmul.mubr.msk.bf16.vlgmr.msra.gmra.mrb[32].mxu0 %vm151_vm0, %v2012_v44 }
 0xa10   :  { %4717 = vmatpush3.bf16.msra.mxu0 %v4993_v31  ;;  %4718 = vmatprep.mubr.msk.bf16.mxu0 %vm151_vm0, %v1548_v20 }
 0xa1b   :  { %4719 = vmatmul.mubr.msk.bf16.vlgmr.msra.gmra.mrb[32].mxu0 %vm151_vm0, %v1549_v33 }
 0xaee   :  { %v4720_v46 = vpop.f32.mrb[32].mxu0 }
 0xaef   :  { %v2120_v48 = vpop.f32.mrb[33].mxu0  ;;  %v2137_v49 = vadd.f32 %v4720_v46, %v5549_v17 }
 0xaf0   :  { %v2135_v50 = vadd.f32 %v2120_v48, %v5545_v14  ;;  %v4721_v51 = vpop.f32.mrb[34].mxu0 }
 0xaf1   :  { %v2123_v52 = vpop.f32.mrb[35].mxu0  ;;  %v2138_v38 = vadd.f32 %v4721_v51, %v5547_v16  ;;  %v5773_v32 = vadd.f32 %v4228_v47, %v2137_v49 }
 0xaf2   :  { %v5769_v10 = vadd.f32 %v4228_v47, %v2135_v50  ;;  %v2136_v29 = vadd.f32 %v2123_v52, %v5532_v37 }
 0xaf3   :  { %v5779_v53 = vadd.f32 %v4228_v47, %v2138_v38  ;;  %v2153_v17 = vsel %vm1000_vm15, %v5773_v32, 0.0 }
 0xaf4   :  { %v5775_v33 = vadd.f32 %v4228_v47, %v2136_v29  ;;  %v2147_v20 = vsel %vm1000_vm15, %v5769_v10, 0.0 }
 0xaf5   :  { %2148 = vadd.xlane.f32.xlu1 %v2147_v20  ;;  %v2156_v37 = vsel %vm1000_vm15, %v5779_v53, 0.0 }
 0xaf6   :  { %v2150_v14 = vsel %vm1000_vm15, %v5775_v33, 0.0 }
 0xaf7   :  { %2151 = vadd.xlane.f32.xlu0 %v2150_v14 }
 0xaf9   :  { %2154 = vadd.xlane.f32.xlu1 %v2153_v17 }
 0xafb   :  { %2157 = vadd.xlane.f32.xlu0 %v2156_v37  ;;  %v4996_v37 = vld [vmem:[%s6175_s11 + $0x20] sm:$0xff]  }
 0xafc   :  { %4730 = vmatprep.subr.bf16.mxu1 %v4996_v37 }
 0xb82   :  { %v2149_v16 = vpop.xlane.xlu1 %2148 }
 0xb83   :  { %v2159_v54 = vmul.f32 0.03125, %v2149_v16  ;;  %v4997_v16 = vld [vmem:[%s6175_s11 + $0x28] sm:$0xff]  }
 0xb84   :  { %v2152_v55 = vpop.xlane.xlu0 %2151 }
 0xb85   :  { %v2163_v56 = vsub.f32 %v5769_v10, %v2159_v54  ;;  %v2160_v57 = vmul.f32 0.03125, %v2152_v55  ;;  %v4998_v54 = vld [vmem:[%s6175_s11 + $0x30] sm:$0xff]   ;;  %v4999_v55 = vld [vmem:[%s6175_s11 + $0x38] sm:$0xff]  }
 0xb86   :  { %v2155_v61 = vpop.xlane.xlu1 %2154 }
 0xb87   :  { %v2164_v62 = vsub.f32 %v5775_v33, %v2160_v57  ;;  %v2161_v63 = vmul.f32 0.03125, %v2155_v61  ;;  %v2167_v0 = vmul.f32 %v2163_v56, %v2163_v56  ;;  %v5001_v57 = vld [vmem:[%s6175_s11 + $0x48] sm:$0xff]   ;;  %v5002_v61 = vld [vmem:[%s6175_s11 + $0x50] sm:$0xff]  }
 0xb88   :  { %v2158_v1 = vpop.xlane.xlu0 %2157 }
 0xb89   :  { %v2165_v2 = vsub.f32 %v5773_v32, %v2161_v63  ;;  %v2162_v4 = vmul.f32 0.03125, %v2158_v1  ;;  %v2171_v5 = vsel %vm1000_vm15, %v2167_v0, 0.0  ;;  %v2168_v6 = vmul.f32 %v2164_v62, %v2164_v62  ;;  %v4231_v63 = vld [vmem:[%s6172_s8 + $0x6] ss:$0 sm:$0xff] }
 0xb8a   :  { %2172 = vadd.xlane.f32.xlu1 %v2171_v5 }
 0xb8b   :  { %v2166_v7 = vsub.f32 %v5779_v53, %v2162_v4  ;;  %v2174_v8 = vsel %vm1000_vm15, %v2168_v6, 0.0  ;;  %v2169_v9 = vmul.f32 %v2165_v2, %v2165_v2 }
 0xb8c   :  { %2175 = vadd.xlane.f32.xlu0 %v2174_v8 }
 0xb8d   :  { %v2177_v11 = vsel %vm1000_vm15, %v2169_v9, 0.0  ;;  %v2170_v12 = vmul.f32 %v2166_v7, %v2166_v7 }
 0xb8e   :  { %2178 = vadd.xlane.f32.xlu1 %v2177_v11 }
 0xb8f   :  { %v2180_v15 = vsel %vm1000_vm15, %v2170_v12, 0.0 }
 0xb90   :  { %2181 = vadd.xlane.f32.xlu0 %v2180_v15 }
 0xc17   :  { %v2173_v22 = vpop.xlane.xlu1 %2172 }
 0xc18   :  { %v2183_v24 = vmul.f32 0.03125, %v2173_v22 }
 0xc19   :  { %v2176_v25 = vpop.xlane.xlu0 %2175 }
 0xc1a   :  { %v2187_v26 = vadd.f32 1e-05, %v2183_v24  ;;  %v2184_v58 = vmul.f32 0.03125, %v2176_v25 }
 0xc1b   :  { %v2179_v27 = vpop.xlane.xlu1 %2178 }
 0xc1c   :  { %5072 = vrsqrt.f32 %v2187_v26  ;;  %v2188_v28 = vadd.f32 1e-05, %v2184_v58  ;;  %v2185_v30 = vmul.f32 0.03125, %v2179_v27 }
 0xc1d   :  { %v2182_v59 = vpop.xlane.xlu0 %2181 }
 0xc1e   :  { %5074 = vrsqrt.f32 %v2188_v28  ;;  %v2189_v31 = vadd.f32 1e-05, %v2185_v30  ;;  %v2186_v35 = vmul.f32 0.03125, %v2182_v59 }
 0xc20   :  { %5076 = vrsqrt.f32 %v2189_v31  ;;  %v2190_v36 = vadd.f32 1e-05, %v2186_v35 }
 0xc22   :  { %5078 = vrsqrt.f32 %v2190_v36 }
 0xc26   :  { %v5073_v39 = vpop.eup %5072 }
 0xc27   :  { %v2195_v41 = vmul.f32 %v5073_v39, %v2163_v56  ;;  %v5000_v56 = vld [vmem:[%s6175_s11 + $0x40] sm:$0xff]  }
 0xc28   :  { %v5075_v42 = vpop.eup %5074 }
 0xc29   :  { %v2196_v43 = vmul.f32 %v5075_v42, %v2164_v62  ;;  %v2203_v60 = vmul.f32 %v4229_v40, %v2195_v41  ;;  %v5003_v62 = vld [vmem:[%s6175_s11 + $0x58] sm:$0xff]  }
 0xc2a   :  { %v5077_v44 = vpop.eup %5076 }
 0xc2b   :  { %v2197_v46 = vmul.f32 %v5077_v44, %v2165_v2  ;;  %v2204_v47 = vmul.f32 %v4229_v40, %v2196_v43  ;;  %v2211_v51 = vadd.f32 %v4230_v45, %v2203_v60 }
 0xc2c   :  { %v5079_v48 = vpop.eup %5078 }
 0xc2d   :  { %v2205_v49 = vmul.f32 %v4229_v40, %v2197_v46  ;;  %v2198_v50 = vmul.f32 %v5079_v48, %v2166_v7  ;;  %v2212_v52 = vadd.f32 %v4230_v45, %v2204_v47 }
 0xc2f   :  { %v2206_v38 = vmul.f32 %v4229_v40, %v2198_v50  ;;  %v2235_v29 = vpack.c.bf16 %v2212_v52, %v2211_v51  ;;  %v2213_v20 = vadd.f32 %v4230_v45, %v2205_v49 }
 0xc31   :  { %4726 = vmatprep.mubr.msk.bf16.mxu1 %vm1000_vm15, %v2235_v29  ;;  %v2214_v14 = vadd.f32 %v4230_v45, %v2206_v38 }
 0xc33   :  { %v2236_v17 = vpack.c.bf16 %v2214_v14, %v2213_v20 }
 0xc35   :  { %4727 = vmatmul.mubr.msk.bf16.vlgmr.msra.gmra.mrb[48].mxu1 %vm1000_vm15, %v2236_v17 }
 0xc36   :  { %4731 = vmatpush3.bf16.msra.mxu1 %v4996_v37  ;;  %v4236_v37 = vld [vmem:[%s6172_s8 + $0x5] ss:$0 sm:$0xff] }
 0xc37   :  { %4732 = vmatprep.subr.bf16.mxu1 %v4997_v16 }
 0xc3a   :  { %4733 = vmatpush3.bf16.msra.mxu1 %v4997_v16 }
 0xc3b   :  { %4734 = vmatprep.subr.bf16.mxu1 %v4998_v54 }
 0xc3e   :  { %4735 = vmatpush3.bf16.msra.mxu1 %v4998_v54 }
 0xc3f   :  { %4736 = vmatprep.subr.bf16.mxu1 %v4999_v55 }
 0xc42   :  { %4737 = vmatpush3.bf16.msra.mxu1 %v4999_v55 }
 0xc43   :  { %4738 = vmatprep.subr.bf16.mxu1 %v5000_v56 }
 0xc46   :  { %4739 = vmatpush3.bf16.msra.mxu1 %v5000_v56 }
 0xc47   :  { %4740 = vmatprep.subr.bf16.mxu1 %v5001_v57 }
 0xc4a   :  { %4741 = vmatpush3.bf16.msra.mxu1 %v5001_v57 }
 0xc4b   :  { %4742 = vmatprep.subr.bf16.mxu1 %v5002_v61 }
 0xc4e   :  { %4743 = vmatpush3.bf16.msra.mxu1 %v5002_v61 }
 0xc4f   :  { %4744 = vmatprep.subr.bf16.mxu1 %v5003_v62 }
 0xc52   :  { %4745 = vmatpush3.bf16.msra.mxu1 %v5003_v62 }
 0xc53   :  { %4780 = vmatprep.subr.bf16.mxu1 %v5177_v3 }
 0xd08   :  { %v4728_v0 = vpop.f32.mrb[48].mxu1 }
 0xd09   :  { %v2302_v1 = vadd.f32 %v4728_v0, %v4231_v63  ;;  %v2293_v2 = vpop.f32.mrb[49].mxu1 }
 0xd0a   :  { %v2294_v4 = vadd.f32 %v4231_v63, %v2293_v2  ;;  %v4729_v5 = vpop.f32.mrb[50].mxu1 }
 0xd0b   :  { %v2314_v6 = vmul.f32 0.044715, %v2302_v1  ;;  %v2305_v7 = vadd.f32 %v4729_v5, %v4231_v63  ;;  %v2296_v8 = vpop.f32.mrb[51].mxu1  ;;  %v2310_v46 = vmul.f32 0.5, %v2302_v1 }
 0xd0c   :  { %v2312_v9 = vmul.f32 0.044715, %v2294_v4  ;;  %v2297_v11 = vadd.f32 %v4231_v63, %v2296_v8  ;;  %v2308_v49 = vmul.f32 0.5, %v2294_v4 }
 0xd0d   :  { %v2318_v12 = vmul.f32 %v2314_v6, %v2302_v1  ;;  %v2315_v15 = vmul.f32 0.044715, %v2305_v7  ;;  %v2311_v47 = vmul.f32 0.5, %v2305_v7 }
 0xd0e   :  { %v2316_v19 = vmul.f32 %v2312_v9, %v2294_v4  ;;  %v2313_v21 = vmul.f32 0.044715, %v2297_v11  ;;  %v2309_v50 = vmul.f32 0.5, %v2297_v11 }
 0xd0f   :  { %v2322_v22 = vmul.f32 %v2318_v12, %v2302_v1  ;;  %v2319_v24 = vmul.f32 %v2315_v15, %v2305_v7 }
 0xd10   :  { %v2320_v25 = vmul.f32 %v2316_v19, %v2294_v4  ;;  %v2317_v26 = vmul.f32 %v2313_v21, %v2297_v11 }
 0xd11   :  { %v2326_v58 = vadd.f32 %v2322_v22, %v2302_v1  ;;  %v2323_v27 = vmul.f32 %v2319_v24, %v2305_v7 }
 0xd12   :  { %v2321_v28 = vmul.f32 %v2317_v26, %v2297_v11  ;;  %v2324_v30 = vadd.f32 %v2320_v25, %v2294_v4 }
 0xd13   :  { %v2330_v59 = vmul.f32 0.7978846, %v2326_v58  ;;  %v2327_v31 = vadd.f32 %v2323_v27, %v2305_v7 }
 0xd14   :  { %v2325_v35 = vadd.f32 %v2321_v28, %v2297_v11  ;;  %v2328_v36 = vmul.f32 0.7978846, %v2324_v30 }
 0xd15   :  { %5080 = vtanh.f32 %v2330_v59  ;;  %v2331_v39 = vmul.f32 0.7978846, %v2327_v31 }
 0xd16   :  { %v2329_v40 = vmul.f32 0.7978846, %v2325_v35  ;;  %5082 = vtanh.f32 %v2328_v36  ;;  %v5004_v35 = vld [vmem:[%s6173_s9 + $0x60] sm:$0xff]   ;;  %v5005_v36 = vld [vmem:[%s6173_s9 + $0x68] sm:$0xff]  }
 0xd17   :  { %5084 = vtanh.f32 %v2331_v39  ;;  %4750 = vmatprep.subr.bf16.mxu0 %v5004_v35  ;;  %v5006_v39 = vld [vmem:[%s6173_s9 + $0x70] sm:$0xff]  }
 0xd18   :  { %5086 = vtanh.f32 %v2329_v40  ;;  %4751 = vmatpush3.bf16.msra.mxu0 %v5004_v35 }
 0xd19   :  { %4752 = vmatprep.subr.bf16.mxu0 %v5005_v36 }
 0xd1c   :  { %4753 = vmatpush3.bf16.msra.mxu0 %v5005_v36 }
 0xd1d   :  { %4758 = vmatprep.subr.bf16.mxu0 %v5006_v39 }
 0xd1f   :  { %v5081_v41 = vpop.eup %5080 }
 0xd20   :  { %v5083_v42 = vpop.eup %5082  ;;  %v2338_v43 = vadd.f32 1.0, %v5081_v41 }
 0xd21   :  { %v5085_v60 = vpop.eup %5084  ;;  %v2336_v44 = vadd.f32 1.0, %v5083_v42 }
 0xd22   :  { %v5087_v45 = vpop.eup %5086  ;;  %v2339_v48 = vadd.f32 1.0, %v5085_v60  ;;  %v2342_v52 = vmul.f32 %v2338_v43, %v2310_v46 }
 0xd23   :  { %v2337_v51 = vadd.f32 1.0, %v5087_v45  ;;  %v2340_v29 = vmul.f32 %v2336_v44, %v2308_v49 }
 0xd24   :  { %v2343_v38 = vmul.f32 %v2339_v48, %v2311_v47 }
 0xd25   :  { %v2341_v20 = vmul.f32 %v2337_v51, %v2309_v50 }
 0xd26   :  { %v2345_v14 = vpack.c.bf16 %v2343_v38, %v2342_v52  ;;  %v4252_v52 = vld [vmem:[%s6172_s8 + $0x8] ss:$0 sm:$0xff] }
 0xd27   :  { %v2344_v17 = vpack.c.bf16 %v2341_v20, %v2340_v29 }
 0xd29   :  { %4746 = vmatprep.mubr.bf16.mxu1 %v2344_v17 }
 0xd2a   :  { %4747 = vmatmul.mubr.bf16.vlgmr.msra.gmra.mrb[52].mxu1 %v2345_v14 }
 0xd2b   :  { %4782 = vmatprep.mubr.msk.bf16.mxu1 %vm5178_vm1, %v5177_v3 }
 0xdfd   :  { %v4748_v16 = vpop.f32.mrb[52].mxu1 }
 0xdfe   :  { %v2432_v54 = vpop.f32.mrb[53].mxu1  ;;  %v2441_v55 = vadd.f32 %v4748_v16, %v4236_v37 }
 0xdff   :  { %v2433_v56 = vadd.f32 %v4236_v37, %v2432_v54  ;;  %v4749_v57 = vpop.f32.mrb[54].mxu1 }
 0xe00   :  { %v2435_v61 = vpop.f32.mrb[55].mxu1  ;;  %v2444_v63 = vadd.f32 %v4749_v57, %v4236_v37  ;;  %v5846_v1 = vadd.f32 %v2441_v55, %v5773_v32 }
 0xe01   :  { %v5843_v62 = vadd.f32 %v2433_v56, %v5769_v10  ;;  %v2436_v0 = vadd.f32 %v4236_v37, %v2435_v61  ;;  %v4253_v37 = vld [vmem:[%s6172_s8 + $0x9] ss:$0 sm:$0xff] }
 0xe02   :  { %v5854_v5 = vadd.f32 %v2444_v63, %v5779_v53  ;;  %v2465_v10 = vsel %vm1000_vm15, %v5846_v1, 0.0 }
 0xe03   :  { %v5849_v2 = vadd.f32 %v2436_v0, %v5775_v33  ;;  %v2459_v4 = vsel %vm1000_vm15, %v5843_v62, 0.0 }
 0xe04   :  { %2460 = vadd.xlane.f32.xlu1 %v2459_v4  ;;  %v2468_v32 = vsel %vm1000_vm15, %v5854_v5, 0.0 }
 0xe05   :  { %v2462_v6 = vsel %vm1000_vm15, %v5849_v2, 0.0 }
 0xe06   :  { %2463 = vadd.xlane.f32.xlu0 %v2462_v6 }
 0xe08   :  { %2466 = vadd.xlane.f32.xlu1 %v2465_v10 }
 0xe0a   :  { %2469 = vadd.xlane.f32.xlu0 %v2468_v32 }
 0xe91   :  { %v2461_v33 = vpop.xlane.xlu1 %2460 }
 0xe92   :  { %v2471_v7 = vmul.f32 0.03125, %v2461_v33  ;;  %v5007_v33 = vld [vmem:[%s6173_s9 + $0x78] sm:$0xff]  }
 0xe93   :  { %v2464_v8 = vpop.xlane.xlu0 %2463 }
 0xe94   :  { %v2475_v9 = vsub.f32 %v5843_v62, %v2471_v7  ;;  %v2472_v11 = vmul.f32 0.03125, %v2464_v8  ;;  %v5008_v7 = vld [vmem:[%s6173_s9 + $0x80] sm:$0xff]   ;;  %v5009_v8 = vld [vmem:[%s6173_s9 + $0x88] sm:$0xff]  }
 0xe95   :  { %v2467_v53 = vpop.xlane.xlu1 %2466 }
 0xe96   :  { %v2476_v12 = vsub.f32 %v5849_v2, %v2472_v11  ;;  %v2473_v15 = vmul.f32 0.03125, %v2467_v53  ;;  %v2479_v19 = vmul.f32 %v2475_v9, %v2475_v9  ;;  %v4269_v11 = vld [vmem:[%s6174_s10 + $0x8] ss:$0 sm:$0xff] }
 0xe97   :  { %v2470_v21 = vpop.xlane.xlu0 %2469 }
 0xe98   :  { %v2477_v22 = vsub.f32 %v5846_v1, %v2473_v15  ;;  %v2474_v24 = vmul.f32 0.03125, %v2470_v21  ;;  %v2483_v25 = vsel %vm1000_vm15, %v2479_v19, 0.0  ;;  %v2480_v26 = vmul.f32 %v2476_v12, %v2476_v12 }
 0xe99   :  { %2484 = vadd.xlane.f32.xlu1 %v2483_v25 }
 0xe9a   :  { %v2478_v58 = vsub.f32 %v5854_v5, %v2474_v24  ;;  %v2486_v27 = vsel %vm1000_vm15, %v2480_v26, 0.0  ;;  %v2481_v28 = vmul.f32 %v2477_v22, %v2477_v22 }
 0xe9b   :  { %2487 = vadd.xlane.f32.xlu0 %v2486_v27  ;;  %v4274_v27 = vld [vmem:[%s6174_s10 + $0x9] ss:$0 sm:$0xff] }
 0xe9c   :  { %v2489_v30 = vsel %vm1000_vm15, %v2481_v28, 0.0  ;;  %v2482_v59 = vmul.f32 %v2478_v58, %v2478_v58 }
 0xe9d   :  { %2490 = vadd.xlane.f32.xlu1 %v2489_v30 }
 0xe9e   :  { %v2492_v31 = vsel %vm1000_vm15, %v2482_v59, 0.0 }
 0xe9f   :  { %2493 = vadd.xlane.f32.xlu0 %v2492_v31 }
 0xf26   :  { %v2485_v40 = vpop.xlane.xlu1 %2484 }
 0xf27   :  { %v2495_v41 = vmul.f32 0.03125, %v2485_v40 }
 0xf28   :  { %v2488_v42 = vpop.xlane.xlu0 %2487 }
 0xf29   :  { %v2499_v43 = vadd.f32 1e-05, %v2495_v41  ;;  %v2496_v60 = vmul.f32 0.03125, %v2488_v42 }
 0xf2a   :  { %v2491_v44 = vpop.xlane.xlu1 %2490 }
 0xf2b   :  { %5088 = vrsqrt.f32 %v2499_v43  ;;  %v2500_v45 = vadd.f32 1e-05, %v2496_v60  ;;  %v2497_v46 = vmul.f32 0.03125, %v2491_v44  ;;  %v4279_v60 = vld [vmem:[%s6174_s10 + $0xa] ss:$0 sm:$0xff] }
 0xf2c   :  { %v2494_v47 = vpop.xlane.xlu0 %2493 }
 0xf2d   :  { %5090 = vrsqrt.f32 %v2500_v45  ;;  %v2501_v48 = vadd.f32 1e-05, %v2497_v46  ;;  %v2498_v49 = vmul.f32 0.03125, %v2494_v47 }
 0xf2f   :  { %5092 = vrsqrt.f32 %v2501_v48  ;;  %v2502_v50 = vadd.f32 1e-05, %v2498_v49 }
 0xf31   :  { %5094 = vrsqrt.f32 %v2502_v50 }
 0xf35   :  { %v5089_v51 = vpop.eup %5088 }
 0xf36   :  { %v2507_v38 = vmul.f32 %v5089_v51, %v2475_v9 }
 0xf37   :  { %v5091_v29 = vpop.eup %5090 }
 0xf38   :  { %v2515_v20 = vmul.f32 %v4252_v52, %v2507_v38  ;;  %v2508_v14 = vmul.f32 %v5091_v29, %v2476_v12 }
 0xf39   :  { %v5093_v17 = vpop.eup %5092 }
 0xf3a   :  { %v2516_v16 = vmul.f32 %v4252_v52, %v2508_v14  ;;  %v2509_v54 = vmul.f32 %v5093_v17, %v2477_v22  ;;  %v2523_v56 = vadd.f32 %v4253_v37, %v2515_v20 }
 0xf3b   :  { %v5095_v55 = vpop.eup %5094 }
 0xf3c   :  { %v2524_v57 = vadd.f32 %v4253_v37, %v2516_v16  ;;  %v2517_v61 = vmul.f32 %v4252_v52, %v2509_v54  ;;  %v2510_v63 = vmul.f32 %v5095_v55, %v2478_v58 }
 0xf3e   :  { %v2518_v0 = vmul.f32 %v4252_v52, %v2510_v63  ;;  %v5885_v4 = vpack.c.bf16 %v2524_v57, %v2523_v56  ;;  %v2525_v6 = vadd.f32 %v4253_v37, %v2517_v61 }
 0xf40   :  { %v2526_v10 = vadd.f32 %v4253_v37, %v2518_v0  ;;  %4754 = vmatprep.mubr.msk.bf16.mxu0 %vm1000_vm15, %v5885_v4 }
 0xf42   :  { %v5889_v32 = vpack.c.bf16 %v2526_v10, %v2525_v6 }
 0xf44   :  { %4755 = vmatmul.mubr.msk.bf16.vlgmr.msra.gmra.mrb[36].mxu0 %vm1000_vm15, %v5889_v32 }
 0xf45   :  { %4759 = vmatpush3.bf16.msra.mxu0 %v5006_v39  ;;  %4762 = vmatprep.mubr.msk.bf16.mxu0 %vm1000_vm15, %v5885_v4 }
 0xf46   :  { %4760 = vmatprep.subr.bf16.mxu0 %v5007_v33 }
 0xf49   :  { %4761 = vmatpush3.bf16.msra.mxu0 %v5007_v33 }
 0xf4a   :  { %4766 = vmatprep.subr.bf16.mxu0 %v5008_v7 }
 0xf4c   :  { %4763 = vmatmul.mubr.msk.bf16.vlgmr.msra.gmra.mrb[40].mxu0 %vm1000_vm15, %v5889_v32 }
 0xf4d   :  { %4767 = vmatpush3.bf16.msra.mxu0 %v5008_v7  ;;  %4770 = vmatprep.mubr.msk.bf16.mxu0 %vm1000_vm15, %v5885_v4 }
 0xf4e   :  { %4768 = vmatprep.subr.bf16.mxu0 %v5009_v8 }
 0xf51   :  { %4769 = vmatpush3.bf16.msra.mxu0 %v5009_v8 }
 0xf52   :  { %4774 = vmatprep.subr.bf16.mxu0 %v5177_v3 }
 0xf54   :  { %4771 = vmatmul.mubr.msk.bf16.vlgmr.msra.gmra.mrb[44].mxu0 %vm1000_vm15, %v5889_v32 }
 0xf55   :  { %4776 = vmatprep.mubr.msk.bf16.mxu0 %vm5178_vm1, %v5177_v3 }
0x1017   :  { %v4756_v9 = vpop.f32.mrb[36].mxu0 }
0x1018   :  { %v2604_v53 = vpop.f32.mrb[37].mxu0  ;;  %v2613_v15 = vadd.f32 %v4756_v9, %v4269_v11 }
0x1019   :  { %v4757_v12 = vpop.f32.mrb[38].mxu0  ;;  %v2605_v22 = vadd.f32 %v4269_v11, %v2604_v53 }
0x101a   :  { %v2616_v19 = vadd.f32 %v4757_v12, %v4269_v11  ;;  %v2607_v21 = vpop.f32.mrb[39].mxu0 }
0x101b   :  { %v2608_v24 = vadd.f32 %v4269_v11, %v2607_v21 }
0x101c   :  { %v2750_v25 = vpack.c.bf16 %v2616_v19, %v2613_v15 }
0x101d   :  { %v2749_v26 = vpack.c.bf16 %v2608_v24, %v2605_v22 }
0x101f   :  { %v4764_v58 = vpop.f32.mrb[40].mxu0 }
0x1020   :  { %v2669_v28 = vpop.f32.mrb[41].mxu0  ;;  %v2678_v59 = vadd.f32 %v4764_v58, %v4274_v27 }
0x1021   :  { %v4765_v30 = vpop.f32.mrb[42].mxu0  ;;  %v2670_v36 = vadd.f32 %v4274_v27, %v2669_v28 }
0x1022   :  { %v2681_v31 = vadd.f32 %v4765_v30, %v4274_v27  ;;  %v2672_v35 = vpop.f32.mrb[43].mxu0 }
0x1023   :  { %v2673_v39 = vadd.f32 %v4274_v27, %v2672_v35 }
0x1024   :  { %v2752_v40 = vpack.c.bf16 %v2681_v31, %v2678_v59 }
0x1025   :  { %v2751_v41 = vpack.c.bf16 %v2673_v39, %v2670_v36 }
0x1026   :  { %v2804_v42 = vsel %vm151_vm0, %v2752_v40, 0 }
0x1027   :  { %v4772_v43 = vpop.f32.mrb[44].mxu0  ;;  %4781 = vmatpush3.bf16.xpose.msra.mxu1 %v2804_v42  ;;  %v2757_v44 = vsel %vm151_vm0, %v2751_v41, 0 }
0x1028   :  { %v2734_v45 = vpop.f32.mrb[45].mxu0  ;;  %4775 = vmatpush3.bf16.xpose.msra.mxu0 %v2757_v44  ;;  %4792 = vmatprep.subr.bf16.mxu1 %v5177_v3  ;;  %v2743_v47 = vadd.f32 %v4772_v43, %v4279_v60 }
0x1029   :  { %v4773_v46 = vpop.f32.mrb[46].mxu0  ;;  %4786 = vmatprep.subr.bf16.mxu0 %v5177_v3  ;;  %v2735_v50 = vadd.f32 %v4279_v60, %v2734_v45  ;;  %v5010_v45 = vld [vmem:[%s6173_s9 + $0xa0] sm:$0xff]  }
0x102a   :  { %v2746_v48 = vadd.f32 %v4773_v46, %v4279_v60  ;;  %v2737_v49 = vpop.f32.mrb[47].mxu0  ;;  %v5011_v46 = vld [vmem:[%s6173_s9 + $0x90] sm:$0xff]  }
0x102b   :  { %v2738_v51 = vadd.f32 %v4279_v60, %v2737_v49 }
0x102c   :  { %v2906_v52 = vpack.c.bf16 %v2746_v48, %v2743_v47 }
0x102d   :  { %v2905_v38 = vpack.c.bf16 %v2738_v51, %v2735_v50 }
0x102e   :  { %4783 = vmatmul.mubr.msk.bf16.vlgmr.msra.gmra.mrb[56].mxu1 %vm151_vm0, %v2750_v25 }
0x102f   :  { %4777 = vmatmul.mubr.msk.bf16.vlgmr.msra.gmra.mrb[48].mxu0 %vm151_vm0, %v2749_v26  ;;  %4793 = vmatpush3.bf16.msra.mxu1 %v2906_v52 }
0x1030   :  { %4787 = vmatpush3.bf16.msra.mxu0 %v2905_v38  ;;  %4794 = vmatprep.mubr.msk.bf16.mxu1 %vm5178_vm1, %v5177_v3 }
0x1031   :  { %4788 = vmatprep.mubr.msk.bf16.mxu0 %vm5178_vm1, %v5177_v3  ;;  %4806 = vmatprep.subr.bf16.mxu1 %v5010_v45 }
0x1032   :  { %4798 = vmatprep.subr.bf16.mxu0 %v5011_v46 }
0x1101   :  { %v2840_v29 = vpop.f32.mrb[56].mxu1 }
0x1102   :  { %v2849_v20 = vmul.f32 0.25, %v2840_v29  ;;  %v2793_v14 = vpop.f32.mrb[48].mxu0  ;;  %v4784_v17 = vpop.f32.mrb[57].mxu1 }
0x1103   :  { %v2847_v37 = vmul.f32 0.25, %v2793_v14  ;;  %v4778_v16 = vpop.f32.mrb[49].mxu0  ;;  %v2843_v54 = vpop.f32.mrb[58].mxu1  ;;  %v5012_v17 = vld [vmem:[%s6173_s9 + $0xa8] sm:$0xff]  }
0x1104   :  { %v2853_v55 = vadd.f32 %v2849_v20, %v5635_v13  ;;  %v2850_v56 = vmul.f32 0.25, %v2843_v54  ;;  %v2796_v57 = vpop.f32.mrb[50].mxu0  ;;  %v4785_v61 = vpop.f32.mrb[59].mxu1 }
0x1105   :  { %v2851_v63 = vadd.f32 %v2847_v37, %v5635_v13  ;;  %v2848_v0 = vmul.f32 0.25, %v2796_v57  ;;  %v4779_v6 = vpop.f32.mrb[51].mxu0  ;;  %v5014_v57 = vld [vmem:[%s6173_s9 + $0xb0] sm:$0xff]   ;;  %v5015_v61 = vld [vmem:[%s6173_s9 + $0xb8] sm:$0xff]  }
0x1106   :  { %v2854_v10 = vadd.f32 %v2850_v56, %v5640_v23  ;;  %v2857_v33 = vadd.f32 %v2853_v55, %v5638_v18  ;;  %v5013_v56 = vld [vmem:[%s6173_s9 + $0x98] sm:$0xff]  }
0x1107   :  { %v2852_v7 = vadd.f32 %v2848_v0, %v5640_v23  ;;  %v2855_v11 = vadd.f32 %v2851_v63, %v5646_v34 }
0x1108   :  { %v2865_v8 = vsel %vm151_vm0, %v2857_v33, -inf  ;;  %v2858_v9 = vadd.f32 %v2854_v10, %v5638_v18 }
0x1109   :  { %2866 = vmax.xlane.f32.xlu1 %v2865_v8  ;;  %v2856_v12 = vadd.f32 %v2852_v7, %v5646_v34  ;;  %v2859_v15 = vsel %vm151_vm0, %v2855_v11, -inf }
0x110a   :  { %v2868_v53 = vsel %vm151_vm0, %v2858_v9, -inf }
0x110b   :  { %2869 = vmax.xlane.f32.xlu0 %v2868_v53  ;;  %v2862_v19 = vsel %vm151_vm0, %v2856_v12, -inf  ;;  %v4310_v53 = vld [vmem:[%s6174_s10 + $0xc] ss:$0 sm:$0xff] }
0x110d   :  { %2860 = vmax.xlane.f32.xlu1 %v2859_v15 }
0x110f   :  { %2863 = vmax.xlane.f32.xlu0 %v2862_v19 }
0x1196   :  { %v2867_v21 = vpop.xlane.xlu1 %2866 }
0x1197   :  { %v2873_v22 = vsub.f32 %v2857_v33, %v2867_v21 }
0x1198   :  { %v2870_v24 = vpop.xlane.xlu0 %2869 }
0x1199   :  { %v2879_v25 = vmul.f32 1.442695, %v2873_v22  ;;  %v2874_v26 = vsub.f32 %v2858_v9, %v2870_v24 }
0x119a   :  { %v2861_v58 = vpop.xlane.xlu1 %2860 }
0x119b   :  { %5096 = vpow2.f32 %v2879_v25  ;;  %v2881_v27 = vmul.f32 1.442695, %v2874_v26  ;;  %v2871_v28 = vsub.f32 %v2855_v11, %v2861_v58  ;;  %v4305_v25 = vld [vmem:[%s6174_s10 + $0xb] ss:$0 sm:$0xff] }
0x119c   :  { %v2864_v30 = vpop.xlane.xlu0 %2863 }
0x119d   :  { %5098 = vpow2.f32 %v2881_v27  ;;  %v2875_v59 = vmul.f32 1.442695, %v2871_v28  ;;  %v2872_v31 = vsub.f32 %v2856_v12, %v2864_v30 }
0x119f   :  { %5100 = vpow2.f32 %v2875_v59  ;;  %v2877_v35 = vmul.f32 1.442695, %v2872_v31 }
0x11a1   :  { %5102 = vpow2.f32 %v2877_v35 }
0x11a5   :  { %v5097_v36 = vpop.eup %5096 }
0x11a6   :  { %v2889_v39 = vsel %vm151_vm0, %v5097_v36, 0.0 }
0x11a7   :  { %v5099_v40 = vpop.eup %5098  ;;  %2890 = vadd.xlane.f32.xlu1 %v2889_v39 }
0x11a8   :  { %v2892_v41 = vsel %vm151_vm0, %v5099_v40, 0.0 }
0x11a9   :  { %v5101_v42 = vpop.eup %5100  ;;  %2893 = vadd.xlane.f32.xlu0 %v2892_v41 }
0x11aa   :  { %v2883_v43 = vsel %vm151_vm0, %v5101_v42, 0.0 }
0x11ab   :  { %v5103_v60 = vpop.eup %5102  ;;  %2884 = vadd.xlane.f32.xlu1 %v2883_v43 }
0x11ac   :  { %v2886_v44 = vsel %vm151_vm0, %v5103_v60, 0.0 }
0x11ad   :  { %2887 = vadd.xlane.f32.xlu0 %v2886_v44 }
0x1234   :  { %v2891_v47 = vpop.xlane.xlu1 %2890 }
0x1235   :  { %5104 = vrcp.f32 %v2891_v47 }
0x1236   :  { %v2894_v48 = vpop.xlane.xlu0 %2893 }
0x1237   :  { %5106 = vrcp.f32 %v2894_v48 }
0x1238   :  { %v2885_v49 = vpop.xlane.xlu1 %2884 }
0x1239   :  { %5108 = vrcp.f32 %v2885_v49 }
0x123a   :  { %v2888_v50 = vpop.xlane.xlu0 %2887 }
0x123b   :  { %5110 = vrcp.f32 %v2888_v50 }
0x123f   :  { %v5105_v51 = vpop.eup %5104 }
0x1240   :  { %v2901_v38 = vmul.f32 %v5105_v51, %v5097_v36 }
0x1241   :  { %v5107_v52 = vpop.eup %5106 }
0x1242   :  { %v2902_v29 = vmul.f32 %v5107_v52, %v5099_v40 }
0x1243   :  { %v5109_v20 = vpop.eup %5108 }
0x1244   :  { %v2904_v14 = vpack.c.bf16 %v2902_v29, %v2901_v38  ;;  %v2899_v16 = vmul.f32 %v5109_v20, %v5101_v42 }
0x1245   :  { %v5111_v37 = vpop.eup %5110 }
0x1246   :  { %v2900_v54 = vmul.f32 %v5111_v37, %v5103_v60  ;;  %4795 = vmatmul.mubr.msk.bf16.vlgmr.msra.gmra.mrb[60].mxu1 %vm151_vm0, %v2904_v14 }
0x1247   :  { %4807 = vmatpush3.bf16.msra.mxu1 %v5010_v45  ;;  %4810 = vmatprep.mubr.msk.bf16.mxu1 %vm1000_vm15, %v5885_v4  ;;  %v4315_v45 = vld [vmem:[%s6174_s10 + $0xd] ss:$0 sm:$0xff] }
0x1248   :  { %v2903_v55 = vpack.c.bf16 %v2900_v54, %v2899_v16  ;;  %4808 = vmatprep.subr.bf16.mxu1 %v5012_v17 }
0x124a   :  { %4789 = vmatmul.mubr.msk.bf16.vlgmr.msra.gmra.mrb[52].mxu0 %vm151_vm0, %v2903_v55 }
0x124b   :  { %4799 = vmatpush3.bf16.msra.mxu0 %v5011_v46  ;;  %4802 = vmatprep.mubr.msk.bf16.mxu0 %vm1000_vm15, %v5885_v4 }
0x124c   :  { %4809 = vmatpush3.bf16.msra.mxu1 %v5012_v17  ;;  %4800 = vmatprep.subr.bf16.mxu0 %v5013_v56 }
0x124d   :  { %4822 = vmatprep.subr.bf16.mxu1 %v5177_v3 }
0x124f   :  { %4811 = vmatmul.mubr.msk.bf16.vlgmr.msra.gmra.mrb[64].mxu1 %vm1000_vm15, %v5889_v32  ;;  %4801 = vmatpush3.bf16.msra.mxu0 %v5013_v56 }
0x1250   :  { %4814 = vmatprep.subr.bf16.mxu0 %v5014_v57  ;;  %4824 = vmatprep.mubr.msk.bf16.mxu1 %vm5178_vm1, %v5177_v3 }
0x1252   :  { %4803 = vmatmul.mubr.msk.bf16.vlgmr.msra.gmra.mrb[56].mxu0 %vm1000_vm15, %v5889_v32 }
0x1253   :  { %4815 = vmatpush3.bf16.msra.mxu0 %v5014_v57  ;;  %4818 = vmatprep.mubr.msk.bf16.mxu0 %vm1000_vm15, %v5885_v4 }
0x1254   :  { %4816 = vmatprep.subr.bf16.mxu0 %v5015_v61 }
0x1257   :  { %4817 = vmatpush3.bf16.msra.mxu0 %v5015_v61 }
0x1258   :  { %4828 = vmatprep.subr.bf16.mxu0 %v5177_v3 }
0x125a   :  { %4819 = vmatmul.mubr.msk.bf16.vlgmr.msra.gmra.mrb[60].mxu0 %vm1000_vm15, %v5889_v32 }
0x125b   :  { %4830 = vmatprep.mubr.msk.bf16.mxu0 %vm5178_vm1, %v5177_v3 }
0x1319   :  { %v5986_v63 = vpop.f32.mrb[60].mxu1 }
0x131a   :  { %v4796_v0 = vpop.f32.mrb[61].mxu1 }
0x131b   :  { %v5988_v6 = vpop.f32.mrb[62].mxu1 }
0x131c   :  { %v2999_v10 = vpack.c.bf16 %v5988_v6, %v5986_v63  ;;  %v4797_v33 = vpop.f32.mrb[63].mxu1 }
0x131d   :  { %v5992_v4 = vpop.f32.mrb[52].mxu0 }
0x131e   :  { %v4790_v7 = vpop.f32.mrb[53].mxu0 }
0x131f   :  { %v5994_v8 = vpop.f32.mrb[54].mxu0 }
0x1320   :  { %v2998_v32 = vpack.c.bf16 %v5994_v8, %v5992_v4  ;;  %v4791_v9 = vpop.f32.mrb[55].mxu0 }
0x1322   :  { %v4812_v11 = vpop.f32.mrb[64].mxu1 }
0x1323   :  { %v3133_v12 = vpop.f32.mrb[65].mxu1  ;;  %v3142_v19 = vadd.f32 %v4812_v11, %v4310_v53 }
0x1324   :  { %v4813_v15 = vpop.f32.mrb[66].mxu1  ;;  %v3134_v26 = vadd.f32 %v4310_v53, %v3133_v12 }
0x1325   :  { %v3145_v21 = vadd.f32 %v4813_v15, %v4310_v53  ;;  %v3136_v22 = vpop.f32.mrb[67].mxu1  ;;  %v4804_v24 = vpop.f32.mrb[56].mxu0 }
0x1326   :  { %v3137_v58 = vadd.f32 %v4310_v53, %v3136_v22  ;;  %v3068_v27 = vpop.f32.mrb[57].mxu0  ;;  %v3077_v31 = vadd.f32 %v4804_v24, %v4305_v25 }
0x1327   :  { %v3216_v28 = vpack.c.bf16 %v3145_v21, %v3142_v19  ;;  %v4805_v30 = vpop.f32.mrb[58].mxu0  ;;  %v3069_v39 = vadd.f32 %v4305_v25, %v3068_v27 }
0x1328   :  { %v3215_v59 = vpack.c.bf16 %v3137_v58, %v3134_v26  ;;  %v3080_v35 = vadd.f32 %v4805_v30, %v4305_v25  ;;  %v3071_v36 = vpop.f32.mrb[59].mxu0 }
0x1329   :  { %v3072_v40 = vadd.f32 %v4305_v25, %v3071_v36  ;;  %v3268_v41 = vsel %vm151_vm0, %v3216_v28, 0 }
0x132a   :  { %v3214_v42 = vpack.c.bf16 %v3080_v35, %v3077_v31  ;;  %4829 = vmatpush3.bf16.xpose.msra.mxu0 %v3268_v41  ;;  %v3221_v43 = vsel %vm151_vm0, %v3215_v59, 0 }
0x132b   :  { %v3213_v60 = vpack.c.bf16 %v3072_v40, %v3069_v39  ;;  %4823 = vmatpush3.bf16.xpose.msra.mxu1 %v3221_v43  ;;  %4840 = vmatprep.subr.bf16.mxu0 %v5177_v3 }
0x132c   :  { %4834 = vmatprep.subr.bf16.mxu1 %v5177_v3 }
0x132d   :  { %v4820_v44 = vpop.f32.mrb[60].mxu0 }
0x132e   :  { %v3198_v46 = vpop.f32.mrb[61].mxu0  ;;  %v3207_v48 = vadd.f32 %v4820_v44, %v4315_v45 }
0x132f   :  { %v4821_v47 = vpop.f32.mrb[62].mxu0  ;;  %v3199_v51 = vadd.f32 %v4315_v45, %v3198_v46 }
0x1330   :  { %v3210_v49 = vadd.f32 %v4821_v47, %v4315_v45  ;;  %v3201_v50 = vpop.f32.mrb[63].mxu0 }
0x1331   :  { %v3202_v52 = vadd.f32 %v4315_v45, %v3201_v50  ;;  %4831 = vmatmul.mubr.msk.bf16.vlgmr.msra.gmra.mrb[64].mxu0 %vm151_vm0, %v3214_v42 }
0x1332   :  { %v3370_v38 = vpack.c.bf16 %v3210_v49, %v3207_v48  ;;  %4825 = vmatmul.mubr.msk.bf16.vlgmr.msra.gmra.mrb[68].mxu1 %vm151_vm0, %v3213_v60  ;;  %4842 = vmatprep.mubr.msk.bf16.mxu0 %vm5178_vm1, %v5177_v3 }
0x1333   :  { %v3369_v29 = vpack.c.bf16 %v3202_v52, %v3199_v51  ;;  %4836 = vmatprep.mubr.msk.bf16.mxu1 %vm5178_vm1, %v5177_v3 }
0x1334   :  { %4841 = vmatpush3.bf16.msra.mxu0 %v3370_v38 }
0x1335   :  { %4835 = vmatpush3.bf16.msra.mxu1 %v3369_v29 }
0x1404   :  { %v3304_v20 = vpop.f32.mrb[64].mxu0 }
0x1405   :  { %v3313_v14 = vmul.f32 0.25, %v3304_v20  ;;  %v3257_v17 = vpop.f32.mrb[68].mxu1  ;;  %v4832_v37 = vpop.f32.mrb[65].mxu0 }
0x1406   :  { %v3311_v16 = vmul.f32 0.25, %v3257_v17  ;;  %v4826_v54 = vpop.f32.mrb[69].mxu1  ;;  %v3307_v55 = vpop.f32.mrb[66].mxu0 }
0x1407   :  { %v3314_v56 = vmul.f32 0.25, %v3307_v55  ;;  %v3260_v57 = vpop.f32.mrb[70].mxu1  ;;  %v4833_v61 = vpop.f32.mrb[67].mxu0  ;;  %v3317_v0 = vadd.f32 %v3313_v14, %v5635_v13  ;;  %v5017_v54 = vld [vmem:[%s6175_s11 + $0x60] sm:$0xff]  }
0x1408   :  { %v3315_v33 = vadd.f32 %v3311_v16, %v5635_v13  ;;  %v3312_v7 = vmul.f32 0.25, %v3260_v57  ;;  %v4827_v9 = vpop.f32.mrb[71].mxu1  ;;  %v5016_v16 = vld [vmem:[%s6175_s11 + $0x68] sm:$0xff]  }
0x1409   :  { %v3318_v3 = vadd.f32 %v3314_v56, %v5640_v23  ;;  %v3321_v19 = vadd.f32 %v3317_v0, %v5638_v18  ;;  %4846 = vmatprep.subr.bf16.mxu1 %v5016_v16 }
0x140a   :  { %v3316_v11 = vadd.f32 %v3312_v7, %v5640_v23  ;;  %v3319_v53 = vadd.f32 %v3315_v33, %v5646_v34 }
0x140b   :  { %v3322_v22 = vadd.f32 %v3318_v3, %v5638_v18  ;;  %v3329_v13 = vsel %vm151_vm0, %v3321_v19, -inf }
0x140c   :  { %v3323_v12 = vsel %vm151_vm0, %v3319_v53, -inf  ;;  %v3320_v15 = vadd.f32 %v3316_v11, %v5646_v34 }
0x140d   :  { %3324 = vmax.xlane.f32.xlu1 %v3323_v12  ;;  %v3332_v24 = vsel %vm151_vm0, %v3322_v22, -inf  ;;  %v4332_v12 = vld [vmem:[%s6172_s8 + $0xc] ss:$0 sm:$0xff] }
0x140e   :  { %v3326_v21 = vsel %vm151_vm0, %v3320_v15, -inf }
0x140f   :  { %3327 = vmax.xlane.f32.xlu0 %v3326_v21 }
0x1411   :  { %3330 = vmax.xlane.f32.xlu1 %v3329_v13 }
0x1413   :  { %3333 = vmax.xlane.f32.xlu0 %v3332_v24 }
0x149a   :  { %v3325_v23 = vpop.xlane.xlu1 %3324 }
0x149b   :  { %v3335_v25 = vsub.f32 %v3319_v53, %v3325_v23 }
0x149c   :  { %v3328_v26 = vpop.xlane.xlu0 %3327 }
0x149d   :  { %v3339_v58 = vmul.f32 1.442695, %v3335_v25  ;;  %v3336_v27 = vsub.f32 %v3320_v15, %v3328_v26 }
0x149e   :  { %v3331_v34 = vpop.xlane.xlu1 %3330 }
0x149f   :  { %5112 = vpow2.f32 %v3339_v58  ;;  %v3341_v28 = vmul.f32 1.442695, %v3336_v27  ;;  %v3337_v30 = vsub.f32 %v3321_v19, %v3331_v34 }
0x14a0   :  { %v3334_v59 = vpop.xlane.xlu0 %3333 }
0x14a1   :  { %5114 = vpow2.f32 %v3341_v28  ;;  %v3343_v31 = vmul.f32 1.442695, %v3337_v30  ;;  %v3338_v18 = vsub.f32 %v3322_v22, %v3334_v59 }
0x14a3   :  { %5116 = vpow2.f32 %v3343_v31  ;;  %v3345_v35 = vmul.f32 1.442695, %v3338_v18 }
0x14a5   :  { %5118 = vpow2.f32 %v3345_v35 }
0x14a9   :  { %v5113_v36 = vpop.eup %5112 }
0x14aa   :  { %v3347_v39 = vsel %vm151_vm0, %v5113_v36, 0.0 }
0x14ab   :  { %v5115_v40 = vpop.eup %5114  ;;  %3348 = vadd.xlane.f32.xlu1 %v3347_v39 }
0x14ac   :  { %v3350_v41 = vsel %vm151_vm0, %v5115_v40, 0.0 }
0x14ad   :  { %v5117_v42 = vpop.eup %5116  ;;  %3351 = vadd.xlane.f32.xlu0 %v3350_v41 }
0x14ae   :  { %v3353_v43 = vsel %vm151_vm0, %v5117_v42, 0.0 }
0x14af   :  { %v5119_v60 = vpop.eup %5118  ;;  %3354 = vadd.xlane.f32.xlu1 %v3353_v43 }
0x14b0   :  { %v3356_v44 = vsel %vm151_vm0, %v5119_v60, 0.0 }
0x14b1   :  { %3357 = vadd.xlane.f32.xlu0 %v3356_v44  ;;  %v5018_v44 = vld [vmem:[%s6175_s11 + $0x70] sm:$0xff]  }
0x14b2   :  { %4858 = vmatprep.subr.bf16.mxu0 %v5018_v44 }
0x1538   :  { %v3349_v45 = vpop.xlane.xlu1 %3348 }
0x1539   :  { %5120 = vrcp.f32 %v3349_v45  ;;  %v5019_v45 = vld [vmem:[%s6175_s11 + $0x78] sm:$0xff]  }
0x153a   :  { %v3352_v46 = vpop.xlane.xlu0 %3351 }
0x153b   :  { %5122 = vrcp.f32 %v3352_v46 }
0x153c   :  { %v3355_v47 = vpop.xlane.xlu1 %3354 }
0x153d   :  { %5124 = vrcp.f32 %v3355_v47 }
0x153e   :  { %v3358_v48 = vpop.xlane.xlu0 %3357 }
0x153f   :  { %5126 = vrcp.f32 %v3358_v48 }
0x1543   :  { %v5121_v49 = vpop.eup %5120 }
0x1544   :  { %v3363_v51 = vmul.f32 %v5121_v49, %v5113_v36 }
0x1545   :  { %v5123_v50 = vpop.eup %5122 }
0x1546   :  { %v3364_v52 = vmul.f32 %v5123_v50, %v5115_v40 }
0x1547   :  { %v5125_v38 = vpop.eup %5124 }
0x1548   :  { %v3367_v29 = vpack.c.bf16 %v3364_v52, %v3363_v51  ;;  %v3365_v14 = vmul.f32 %v5125_v38, %v5117_v42 }
0x1549   :  { %v5127_v20 = vpop.eup %5126 }
0x154a   :  { %v3366_v17 = vmul.f32 %v5127_v20, %v5119_v60  ;;  %4837 = vmatmul.mubr.msk.bf16.vlgmr.msra.gmra.mrb[72].mxu1 %vm151_vm0, %v3367_v29 }
0x154b   :  { %4847 = vmatpush3.bf16.msra.mxu1 %v5016_v16  ;;  %v4333_v16 = vld [vmem:[%s6172_s8 + $0xa] ss:$0 sm:$0xff] }
0x154c   :  { %v3368_v37 = vpack.c.bf16 %v3366_v17, %v3365_v14  ;;  %4852 = vmatprep.subr.bf16.mxu1 %v5017_v54 }
0x154e   :  { %4843 = vmatmul.mubr.msk.bf16.vlgmr.msra.gmra.mrb[68].mxu0 %vm151_vm0, %v3368_v37 }
0x154f   :  { %4859 = vmatpush3.bf16.msra.mxu0 %v5018_v44 }
0x1550   :  { %4860 = vmatprep.subr.bf16.mxu0 %v5019_v45 }
0x1553   :  { %4861 = vmatpush3.bf16.msra.mxu0 %v5019_v45 }
0x161d   :  { %v3408_v55 = vpop.f32.mrb[72].mxu1 }
0x161e   :  { %v4838_v56 = vpop.f32.mrb[73].mxu1 }
0x161f   :  { %v3411_v57 = vpop.f32.mrb[74].mxu1 }
0x1620   :  { %v3461_v61 = vpack.c.bf16 %v3411_v57, %v3408_v55  ;;  %v4839_v0 = vpop.f32.mrb[75].mxu1 }
0x1621   :  { %v3452_v33 = vpop.f32.mrb[68].mxu0  ;;  %v4334_v0 = vld [vmem:[%s6172_s8 + $0xb] ss:$0 sm:$0xff] }
0x1622   :  { %v4844_v7 = vpop.f32.mrb[69].mxu0  ;;  %4848 = vmatprep.mubr.msk.bf16.mxu1 %vm151_vm0, %v3461_v61 }
0x1623   :  { %v3455_v9 = vpop.f32.mrb[70].mxu0 }
0x1624   :  { %v3462_v3 = vpack.c.bf16 %v3455_v9, %v3452_v33  ;;  %v4845_v11 = vpop.f32.mrb[71].mxu0 }
0x1626   :  { %4849 = vmatmul.mubr.msk.bf16.vlgmr.msra.gmra.mrb[76].mxu1 %vm151_vm0, %v3462_v3 }
0x1627   :  { %4853 = vmatpush3.bf16.msra.mxu1 %v5017_v54  ;;  %4854 = vmatprep.mubr.msk.bf16.mxu1 %vm151_vm0, %v2998_v32 }
0x1632   :  { %4855 = vmatmul.mubr.msk.bf16.vlgmr.msra.gmra.mrb[76].mxu1 %vm151_vm0, %v2999_v10 }
0x1705   :  { %v4856_v53 = vpop.f32.mrb[76].mxu1 }
0x1706   :  { %v3570_v15 = vpop.f32.mrb[77].mxu1  ;;  %v3587_v19 = vadd.f32 %v4856_v53, %v5846_v1 }
0x1707   :  { %v3585_v21 = vadd.f32 %v3570_v15, %v5843_v62  ;;  %v4857_v22 = vpop.f32.mrb[78].mxu1 }
0x1708   :  { %v3573_v13 = vpop.f32.mrb[79].mxu1  ;;  %v3588_v8 = vadd.f32 %v4857_v22, %v5854_v5  ;;  %v6060_v6 = vadd.f32 %v4332_v12, %v3587_v19 }
0x1709   :  { %v6056_v4 = vadd.f32 %v4332_v12, %v3585_v21  ;;  %v3586_v63 = vadd.f32 %v3573_v13, %v5849_v2 }
0x170a   :  { %v6066_v24 = vadd.f32 %v4332_v12, %v3588_v8  ;;  %v3603_v1 = vsel %vm1000_vm15, %v6060_v6, 0.0  ;;  %v5020_v8 = vld [vmem:[%s6175_s11 + $0x80] sm:$0xff]  }
0x170b   :  { %v6062_v10 = vadd.f32 %v4332_v12, %v3586_v63  ;;  %v3597_v32 = vsel %vm1000_vm15, %v6056_v4, 0.0  ;;  %4866 = vmatprep.subr.bf16.mxu0 %v5020_v8  ;;  %v5021_v63 = vld [vmem:[%s6175_s11 + $0x88] sm:$0xff]  }
0x170c   :  { %3598 = vadd.xlane.f32.xlu1 %v3597_v32  ;;  %v3606_v2 = vsel %vm1000_vm15, %v6066_v24, 0.0  ;;  %v5022_v32 = vld [vmem:[%s6175_s11 + $0x90] sm:$0xff]  }
0x170d   :  { %v3600_v62 = vsel %vm1000_vm15, %v6062_v10, 0.0 }
0x170e   :  { %3601 = vadd.xlane.f32.xlu0 %v3600_v62  ;;  %v5023_v62 = vld [vmem:[%s6175_s11 + $0x98] sm:$0xff]  }
0x1710   :  { %3604 = vadd.xlane.f32.xlu1 %v3603_v1  ;;  %v5024_v1 = vld [vmem:[%s6175_s11 + $0xa0] sm:$0xff]  }
0x1712   :  { %3607 = vadd.xlane.f32.xlu0 %v3606_v2  ;;  %v5025_v2 = vld [vmem:[%s6175_s11 + $0xa8] sm:$0xff]  }
0x1799   :  { %v3599_v5 = vpop.xlane.xlu1 %3598 }
0x179a   :  { %v3609_v23 = vmul.f32 0.03125, %v3599_v5  ;;  %v5026_v5 = vld [vmem:[%s6175_s11 + $0xb0] sm:$0xff]  }
0x179b   :  { %v3602_v25 = vpop.xlane.xlu0 %3601 }
0x179c   :  { %v3613_v26 = vsub.f32 %v6056_v4, %v3609_v23  ;;  %v3610_v58 = vmul.f32 0.03125, %v3602_v25  ;;  %v5027_v23 = vld [vmem:[%s6175_s11 + $0xb8] sm:$0xff]   ;;  %v4355_v25 = vld [vmem:[%s6172_s8 + $0xe] ss:$0 sm:$0xff] }
0x179d   :  { %v3605_v27 = vpop.xlane.xlu1 %3604 }
0x179e   :  { %v3614_v34 = vsub.f32 %v6062_v10, %v3610_v58  ;;  %v3611_v28 = vmul.f32 0.03125, %v3605_v27  ;;  %v3617_v30 = vmul.f32 %v3613_v26, %v3613_v26 }
0x179f   :  { %v3608_v59 = vpop.xlane.xlu0 %3607 }
0x17a0   :  { %v3615_v31 = vsub.f32 %v6060_v6, %v3611_v28  ;;  %v3612_v18 = vmul.f32 0.03125, %v3608_v59  ;;  %v3621_v35 = vsel %vm1000_vm15, %v3617_v30, 0.0  ;;  %v3618_v36 = vmul.f32 %v3614_v34, %v3614_v34 }
0x17a1   :  { %3622 = vadd.xlane.f32.xlu1 %v3621_v35 }
0x17a2   :  { %v3616_v39 = vsub.f32 %v6066_v24, %v3612_v18  ;;  %v3624_v40 = vsel %vm1000_vm15, %v3618_v36, 0.0  ;;  %v3619_v41 = vmul.f32 %v3615_v31, %v3615_v31 }
0x17a3   :  { %3625 = vadd.xlane.f32.xlu0 %v3624_v40 }
0x17a4   :  { %v3627_v42 = vsel %vm1000_vm15, %v3619_v41, 0.0  ;;  %v3620_v43 = vmul.f32 %v3616_v39, %v3616_v39 }
0x17a5   :  { %3628 = vadd.xlane.f32.xlu1 %v3627_v42 }
0x17a6   :  { %v3630_v60 = vsel %vm1000_vm15, %v3620_v43, 0.0 }
0x17a7   :  { %3631 = vadd.xlane.f32.xlu0 %v3630_v60 }
0x182e   :  { %v3623_v46 = vpop.xlane.xlu1 %3622 }
0x182f   :  { %v3633_v47 = vmul.f32 0.03125, %v3623_v46 }
0x1830   :  { %v3626_v48 = vpop.xlane.xlu0 %3625 }
0x1831   :  { %v3637_v49 = vadd.f32 1e-05, %v3633_v47  ;;  %v3634_v50 = vmul.f32 0.03125, %v3626_v48 }
0x1832   :  { %v3629_v51 = vpop.xlane.xlu1 %3628 }
0x1833   :  { %5128 = vrsqrt.f32 %v3637_v49  ;;  %v3638_v52 = vadd.f32 1e-05, %v3634_v50  ;;  %v3635_v38 = vmul.f32 0.03125, %v3629_v51 }
0x1834   :  { %v3632_v29 = vpop.xlane.xlu0 %3631 }
0x1835   :  { %5130 = vrsqrt.f32 %v3638_v52  ;;  %v3639_v20 = vadd.f32 1e-05, %v3635_v38  ;;  %v3636_v14 = vmul.f32 0.03125, %v3632_v29 }
0x1837   :  { %5132 = vrsqrt.f32 %v3639_v20  ;;  %v3640_v17 = vadd.f32 1e-05, %v3636_v14 }
0x1839   :  { %5134 = vrsqrt.f32 %v3640_v17 }
0x183d   :  { %v5129_v37 = vpop.eup %5128 }
0x183e   :  { %v3645_v54 = vmul.f32 %v5129_v37, %v3613_v26 }
0x183f   :  { %v5131_v55 = vpop.eup %5130 }
0x1840   :  { %v3646_v56 = vmul.f32 %v5131_v55, %v3614_v34  ;;  %v3653_v57 = vmul.f32 %v4333_v16, %v3645_v54 }
0x1841   :  { %v5133_v61 = vpop.eup %5132 }
0x1842   :  { %v3647_v33 = vmul.f32 %v5133_v61, %v3615_v31  ;;  %v3654_v7 = vmul.f32 %v4333_v16, %v3646_v56  ;;  %v3661_v53 = vadd.f32 %v4334_v0, %v3653_v57 }
0x1843   :  { %v5135_v9 = vpop.eup %5134 }
0x1844   :  { %v3655_v3 = vmul.f32 %v4333_v16, %v3647_v33  ;;  %v3648_v11 = vmul.f32 %v5135_v9, %v3616_v39  ;;  %v3662_v12 = vadd.f32 %v4334_v0, %v3654_v7 }
0x1846   :  { %v3656_v15 = vmul.f32 %v4333_v16, %v3648_v11  ;;  %v3685_v19 = vpack.c.bf16 %v3662_v12, %v3661_v53  ;;  %v3663_v21 = vadd.f32 %v4334_v0, %v3655_v3 }
0x1848   :  { %4862 = vmatprep.mubr.msk.bf16.mxu0 %vm1000_vm15, %v3685_v19  ;;  %v3664_v22 = vadd.f32 %v4334_v0, %v3656_v15  ;;  %v4360_v15 = vld [vmem:[%s6172_s8 + $0xd] ss:$0 sm:$0xff] }
0x184a   :  { %v3686_v13 = vpack.c.bf16 %v3664_v22, %v3663_v21 }
0x184c   :  { %4863 = vmatmul.mubr.msk.bf16.vlgmr.msra.gmra.mrb[72].mxu0 %vm1000_vm15, %v3686_v13 }
0x184d   :  { %4867 = vmatpush3.bf16.msra.mxu0 %v5020_v8 }
0x184e   :  { %4868 = vmatprep.subr.bf16.mxu0 %v5021_v63 }
0x1851   :  { %4869 = vmatpush3.bf16.msra.mxu0 %v5021_v63 }
0x1852   :  { %4870 = vmatprep.subr.bf16.mxu0 %v5022_v32 }
0x1855   :  { %4871 = vmatpush3.bf16.msra.mxu0 %v5022_v32 }
0x1856   :  { %4872 = vmatprep.subr.bf16.mxu0 %v5023_v62 }
0x1859   :  { %4873 = vmatpush3.bf16.msra.mxu0 %v5023_v62 }
0x185a   :  { %4874 = vmatprep.subr.bf16.mxu0 %v5024_v1 }
0x185d   :  { %4875 = vmatpush3.bf16.msra.mxu0 %v5024_v1 }
0x185e   :  { %4876 = vmatprep.subr.bf16.mxu0 %v5025_v2 }
0x1861   :  { %4877 = vmatpush3.bf16.msra.mxu0 %v5025_v2 }
0x1862   :  { %4878 = vmatprep.subr.bf16.mxu0 %v5026_v5 }
0x1865   :  { %4879 = vmatpush3.bf16.msra.mxu0 %v5026_v5 }
0x1866   :  { %4880 = vmatprep.subr.bf16.mxu0 %v5027_v23 }
0x1869   :  { %4881 = vmatpush3.bf16.msra.mxu0 %v5027_v23 }
0x191f   :  { %v4864_v26 = vpop.f32.mrb[72].mxu0 }
0x1920   :  { %v3752_v58 = vadd.f32 %v4864_v26, %v4355_v25  ;;  %v3743_v27 = vpop.f32.mrb[73].mxu0 }
0x1921   :  { %v3744_v34 = vadd.f32 %v4355_v25, %v3743_v27  ;;  %v4865_v28 = vpop.f32.mrb[74].mxu0 }
0x1922   :  { %v3764_v30 = vmul.f32 0.044715, %v3752_v58  ;;  %v3755_v59 = vadd.f32 %v4865_v28, %v4355_v25  ;;  %v3746_v31 = vpop.f32.mrb[75].mxu0  ;;  %v3760_v55 = vmul.f32 0.5, %v3752_v58 }
0x1923   :  { %v3762_v18 = vmul.f32 0.044715, %v3744_v34  ;;  %v3747_v35 = vadd.f32 %v4355_v25, %v3746_v31  ;;  %v3758_v61 = vmul.f32 0.5, %v3744_v34 }
0x1924   :  { %v3768_v36 = vmul.f32 %v3764_v30, %v3752_v58  ;;  %v3765_v39 = vmul.f32 0.044715, %v3755_v59  ;;  %v3761_v56 = vmul.f32 0.5, %v3755_v59 }
0x1925   :  { %v3766_v40 = vmul.f32 %v3762_v18, %v3744_v34  ;;  %v3763_v41 = vmul.f32 0.044715, %v3747_v35  ;;  %v3759_v0 = vmul.f32 0.5, %v3747_v35 }
0x1926   :  { %v3772_v42 = vmul.f32 %v3768_v36, %v3752_v58  ;;  %v3769_v43 = vmul.f32 %v3765_v39, %v3755_v59 }
0x1927   :  { %v3770_v60 = vmul.f32 %v3766_v40, %v3744_v34  ;;  %v3767_v44 = vmul.f32 %v3763_v41, %v3747_v35 }
0x1928   :  { %v3776_v45 = vadd.f32 %v3772_v42, %v3752_v58  ;;  %v3773_v46 = vmul.f32 %v3769_v43, %v3755_v59 }
0x1929   :  { %v3771_v47 = vmul.f32 %v3767_v44, %v3747_v35  ;;  %v3774_v48 = vadd.f32 %v3770_v60, %v3744_v34 }
0x192a   :  { %v3780_v49 = vmul.f32 0.7978846, %v3776_v45  ;;  %v3777_v50 = vadd.f32 %v3773_v46, %v3755_v59  ;;  %v5028_v46 = vld [vmem:[%s6169_s5] sm:$0xff]  }
0x192b   :  { %v3775_v51 = vadd.f32 %v3771_v47, %v3747_v35  ;;  %v3778_v52 = vmul.f32 0.7978846, %v3774_v48  ;;  %4886 = vmatprep.subr.bf16.mxu1 %v5028_v46  ;;  %v5029_v47 = vld [vmem:[%s6169_s5 + $0x8] sm:$0xff]  }
0x192c   :  { %5136 = vtanh.f32 %v3780_v49  ;;  %v3781_v38 = vmul.f32 0.7978846, %v3777_v50  ;;  %4887 = vmatpush3.bf16.msra.mxu1 %v5028_v46 }
0x192d   :  { %v3779_v29 = vmul.f32 0.7978846, %v3775_v51  ;;  %5138 = vtanh.f32 %v3778_v52  ;;  %4888 = vmatprep.subr.bf16.mxu1 %v5029_v47 }
0x192e   :  { %5140 = vtanh.f32 %v3781_v38 }
0x192f   :  { %5142 = vtanh.f32 %v3779_v29 }
0x1930   :  { %4889 = vmatpush3.bf16.msra.mxu1 %v5029_v47 }
0x1936   :  { %v5137_v20 = vpop.eup %5136 }
0x1937   :  { %v5139_v14 = vpop.eup %5138  ;;  %v3788_v17 = vadd.f32 1.0, %v5137_v20 }
0x1938   :  { %v5141_v37 = vpop.eup %5140  ;;  %v3786_v16 = vadd.f32 1.0, %v5139_v14 }
0x1939   :  { %v5143_v54 = vpop.eup %5142  ;;  %v3789_v57 = vadd.f32 1.0, %v5141_v37  ;;  %v3792_v7 = vmul.f32 %v3788_v17, %v3760_v55  ;;  %v4371_v55 = vld [vmem:[%s6172_s8 + $0x10] ss:$0 sm:$0xff] }
0x193a   :  { %v3787_v33 = vadd.f32 1.0, %v5143_v54  ;;  %v3790_v3 = vmul.f32 %v3786_v16, %v3758_v61 }
0x193b   :  { %v3793_v9 = vmul.f32 %v3789_v57, %v3761_v56 }
0x193c   :  { %v3791_v11 = vmul.f32 %v3787_v33, %v3759_v0 }
0x193d   :  { %v3795_v53 = vpack.c.bf16 %v3793_v9, %v3792_v7  ;;  %v4372_v7 = vld [vmem:[%s6172_s8 + $0x11] ss:$0 sm:$0xff]  ;;  %s5152_s8 = scalar_lea.vmem %s4054_s23, 512 }
0x193e   :  { %v3794_v12 = vpack.c.bf16 %v3791_v11, %v3790_v3  ;;  %p5153_p0 = scmp.ne.s32.totalorder %s4054_s23, %s5152_s8  ;;  %p5158_p2 = scmp.lt.s32.totalorder %s5152_s8, %s5152_s8 }
0x1940   :  { %4882 = vmatprep.mubr.bf16.mxu0 %v3794_v12  ;;  %p5159_p3 = por %p5158_p2, %p5157_p1 }
0x1941   :  { %4883 = vmatmul.mubr.bf16.vlgmr.msra.gmra.mrb[76].mxu0 %v3795_v53 }
0x1942   :  { %p5160_p4 = pnand %p5159_p3, %p5153_p0 }
0x1a14   :  { %v4884_v19 = vpop.f32.mrb[76].mxu0 }
0x1a15   :  { %v3882_v21 = vpop.f32.mrb[77].mxu0  ;;  %v3891_v22 = vadd.f32 %v4884_v19, %v4360_v15 }
0x1a16   :  { %v3883_v13 = vadd.f32 %v4360_v15, %v3882_v21  ;;  %v4885_v8 = vpop.f32.mrb[78].mxu0 }
0x1a17   :  { %v3885_v63 = vpop.f32.mrb[79].mxu0  ;;  %v3894_v32 = vadd.f32 %v4885_v8, %v4360_v15  ;;  %v3899_v23 = vadd.f32 %v3891_v22, %v6060_v6 }
0x1a18   :  { %v3886_v62 = vadd.f32 %v4360_v15, %v3885_v63  ;;  %v3897_v1 = vadd.f32 %v3883_v13, %v6056_v4 }
0x1a19   :  { %v3900_v26 = vadd.f32 %v3894_v32, %v6066_v24  ;;  %v3909_v58 = vsel %vm1000_vm15, %v3899_v23, 0.0 }
0x1a1a   :  { %v3903_v2 = vsel %vm1000_vm15, %v3897_v1, 0.0  ;;  %v3898_v5 = vadd.f32 %v3886_v62, %v6062_v10 }
0x1a1b   :  { %3904 = vadd.xlane.f32.xlu1 %v3903_v2  ;;  %v3912_v27 = vsel %vm1000_vm15, %v3900_v26, 0.0 }
0x1a1c   :  { %v3906_v25 = vsel %vm1000_vm15, %v3898_v5, 0.0 }
0x1a1d   :  { %3907 = vadd.xlane.f32.xlu0 %v3906_v25 }
0x1a1f   :  { %3910 = vadd.xlane.f32.xlu1 %v3909_v58 }
0x1a21   :  { %3913 = vadd.xlane.f32.xlu0 %v3912_v27 }
0x1aa8   :  { %v3905_v34 = vpop.xlane.xlu1 %3904 }
0x1aa9   :  { %v3915_v4 = vmul.f32 0.03125, %v3905_v34 }
0x1aaa   :  { %v3908_v28 = vpop.xlane.xlu0 %3907 }
0x1aab   :  { %v3919_v30 = vsub.f32 %v3897_v1, %v3915_v4  ;;  %v3916_v59 = vmul.f32 0.03125, %v3908_v28 }
0x1aac   :  { %v3911_v10 = vpop.xlane.xlu1 %3910 }
0x1aad   :  { %v3920_v31 = vsub.f32 %v3898_v5, %v3916_v59  ;;  %v3917_v6 = vmul.f32 0.03125, %v3911_v10  ;;  %v3923_v18 = vmul.f32 %v3919_v30, %v3919_v30 }
0x1aae   :  { %v3914_v35 = vpop.xlane.xlu0 %3913 }
0x1aaf   :  { %v3921_v36 = vsub.f32 %v3899_v23, %v3917_v6  ;;  %v3918_v39 = vmul.f32 0.03125, %v3914_v35  ;;  %v3927_v24 = vsel %vm1000_vm15, %v3923_v18, 0.0  ;;  %v3924_v40 = vmul.f32 %v3920_v31, %v3920_v31 }
0x1ab0   :  { %3928 = vadd.xlane.f32.xlu1 %v3927_v24 }
0x1ab1   :  { %v3922_v41 = vsub.f32 %v3900_v26, %v3918_v39  ;;  %v3930_v42 = vsel %vm1000_vm15, %v3924_v40, 0.0  ;;  %v3925_v43 = vmul.f32 %v3921_v36, %v3921_v36 }
0x1ab2   :  { %3931 = vadd.xlane.f32.xlu0 %v3930_v42 }
0x1ab3   :  { %v3933_v60 = vsel %vm1000_vm15, %v3925_v43, 0.0  ;;  %v3926_v44 = vmul.f32 %v3922_v41, %v3922_v41 }
0x1ab4   :  { %3934 = vadd.xlane.f32.xlu1 %v3933_v60 }
0x1ab5   :  { %v3936_v45 = vsel %vm1000_vm15, %v3926_v44, 0.0 }
0x1ab6   :  { %3937 = vadd.xlane.f32.xlu0 %v3936_v45 }
0x1b3d   :  { %v3929_v48 = vpop.xlane.xlu1 %3928 }
0x1b3e   :  { %v3939_v49 = vmul.f32 0.03125, %v3929_v48 }
0x1b3f   :  { %v3932_v50 = vpop.xlane.xlu0 %3931 }
0x1b40   :  { %v3943_v51 = vadd.f32 1e-05, %v3939_v49  ;;  %v3940_v52 = vmul.f32 0.03125, %v3932_v50 }
0x1b41   :  { %v3935_v38 = vpop.xlane.xlu1 %3934 }
0x1b42   :  { %5144 = vrsqrt.f32 %v3943_v51  ;;  %v3944_v29 = vadd.f32 1e-05, %v3940_v52  ;;  %v3941_v20 = vmul.f32 0.03125, %v3935_v38 }
0x1b43   :  { %v3938_v14 = vpop.xlane.xlu0 %3937 }
0x1b44   :  { %5146 = vrsqrt.f32 %v3944_v29  ;;  %v3945_v17 = vadd.f32 1e-05, %v3941_v20  ;;  %v3942_v37 = vmul.f32 0.03125, %v3938_v14 }
0x1b46   :  { %5148 = vrsqrt.f32 %v3945_v17  ;;  %v3946_v16 = vadd.f32 1e-05, %v3942_v37 }
0x1b48   :  { %5150 = vrsqrt.f32 %v3946_v16 }
0x1b4c   :  { %v5145_v54 = vpop.eup %5144 }
0x1b4d   :  { %v3951_v56 = vmul.f32 %v5145_v54, %v3919_v30 }
0x1b4e   :  { %v5147_v57 = vpop.eup %5146 }
0x1b4f   :  { %v3952_v61 = vmul.f32 %v5147_v57, %v3920_v31  ;;  %v3959_v0 = vmul.f32 %v4371_v55, %v3951_v56 }
0x1b50   :  { %v5149_v33 = vpop.eup %5148 }
0x1b51   :  { %v3953_v9 = vmul.f32 %v5149_v33, %v3921_v36  ;;  %v3960_v3 = vmul.f32 %v4371_v55, %v3952_v61  ;;  %v3967_v15 = vadd.f32 %v4372_v7, %v3959_v0 }
0x1b52   :  { %v5151_v11 = vpop.eup %5150 }
0x1b53   :  { %v3961_v53 = vmul.f32 %v4371_v55, %v3953_v9  ;;  %v3954_v12 = vmul.f32 %v5151_v11, %v3922_v41  ;;  %v3968_v19 = vadd.f32 %v4372_v7, %v3960_v3 }
0x1b55   :  { %v3962_v21 = vmul.f32 %v4371_v55, %v3954_v12  ;;  %v3971_v22 = vpack.c.bf16 %v3968_v19, %v3967_v15  ;;  %v3969_v13 = vadd.f32 %v4372_v7, %v3961_v53 }
0x1b57   :  { %4890 = vmatprep.mubr.msk.bf16.mxu1 %vm1000_vm15, %v3971_v22  ;;  %v3970_v8 = vadd.f32 %v4372_v7, %v3962_v21 }
0x1b59   :  { %v3972_v63 = vpack.c.bf16 %v3970_v8, %v3969_v13 }
0x1b5b   :  { %4891 = vmatmul.mubr.msk.bf16.vlgmr.msra.gmra.mrb[80].mxu1 %vm1000_vm15, %v3972_v63 }
0x1c2e   :  { %v4892_v32 = vpop.f32.mrb[80].mxu1 }
0x1c2f   :  { %4046 = vst [vmem:[#allocation2 + $0x10] sm:$0xff] %v4892_v32  ;;  %v4029_v62 = vpop.f32.mrb[81].mxu1 }
0x1c30   :  { %4044 = vst [vmem:[#allocation2] sm:$0xff] %v4029_v62  ;;  %v4893_v1 = vpop.f32.mrb[82].mxu1 }
0x1c31   :  { %4047 = vst [vmem:[#allocation2 + $0x18] sm:$0xff] %v4893_v1  ;;  %v4032_v2 = vpop.f32.mrb[83].mxu1 }
0x1c32   :  { %4045 = vst [vmem:[#allocation2 + $0x8] sm:$0xff] %v4032_v2 }
0x1c33   :  { %5163 = shalt.err (!%p5160_p4)
}
0x1c34   :  { %s5164_s26 = scalar_lea.hbm %s6176_s12, 512 }
0x1c35   :  { %p5165_p5 = scmp.ne.s32.totalorder %s6176_s12, %s5164_s26  ;;  %p5168_p6 = scmp.lt.u32.totalorder %s5164_s26, %s6176_s12 }
0x1c37   :  { %p5170_p7 = pnand %p5168_p6, %p5165_p5 }
0x1c39   :  { %5173 = shalt.err (!%p5170_p7)
}
0x1c3a   :  { %s5182_s6 = smov 128   ;;  %s5183_s29 = smov 8  }
0x1c3b   :  { %4059 = dma.vmem_to_hbm [thread:$0]  %s4054_s23, 512, %s6176_s12, [#allocation3], %s5182_s6, %s5182_s6, %s5183_s29  }
0x1c3c   :  { %5174 = dma.done.wait [#allocation3], 512  }
0x1c3d   :  { %5175 = vsyncadd [#allocation3], 4294966784 }
0x1c3e   :  { %4063 = vsyncpa [#allocation3], 1 }

</bundles_post_ra>
